<compile_context>
chip_gen: v7x
topology: tpu7x:2x2x1
jax: 0.10.0
libtpu: 0.0.40
codegen_flags: <defaults>
</compile_context>

<pallas_src>
import jax
import jax.numpy as jnp
from jax.experimental import pallas as pl
from jax.experimental.pallas import tpu as pltpu

IN_FEATURES = 32 * 32 * 3   # 3072
HIDDEN = 512
OUT_FEATURES = 2
OUT_PAD = 128               # lane-dense padded logits width (unmasked vst)


def mlp_kernel(x_ref, w1_ref, b1_ref, w2_ref, b2_ref, w3_ref, b3_ref,
               w4_ref, b4_ref, o_ref):
    # x arrives as bf16 (half the HBM bytes of f32); MXU does bf16 x bf16 -> f32.
    x = x_ref[...]

    # Layer 1: (TB, 3072) @ (3072, 512), f32 accumulate, + bias, ReLU.
    h = jnp.dot(x, w1_ref[...], preferred_element_type=jnp.float32) + b1_ref[...]
    h = jnp.maximum(h, 0.0)

    # Layer 2: (TB, 512) @ (512, 512)
    h = jnp.dot(h.astype(jnp.bfloat16), w2_ref[...],
                preferred_element_type=jnp.float32) + b2_ref[...]
    h = jnp.maximum(h, 0.0)

    # Layer 3: (TB, 512) @ (512, 512)
    h = jnp.dot(h.astype(jnp.bfloat16), w3_ref[...],
                preferred_element_type=jnp.float32) + b3_ref[...]
    h = jnp.maximum(h, 0.0)

    # Layer 4 (logits), padded to 128 output lanes -> lane-dense, unmasked store.
    logits = jnp.dot(h.astype(jnp.bfloat16), w4_ref[...],
                     preferred_element_type=jnp.float32) + b4_ref[...]
    o_ref[...] = logits.astype(o_ref.dtype)   # bf16 writeback (half the bytes)


def _round_up(x, m):
    return ((x + m - 1) // m) * m


def _choose_tb(B):
    """Batch-tile size. Guarantees >= 2 grid steps for B >= 32 so the two v7x
    TensorCores both get work; uses big MXU-friendly tiles for large batches."""
    if B >= 1024:
        return 512            # fewest grid steps, long DMA bursts (grid >= 2)
    if B >= 512:
        return 256            # grid >= 2, multiple of 128 (v5e MXU-friendly)
    if B >= 32:
        # Two tiles of ~B/2 rounded to 16 -> grid == 2 (shards across 2 TCs).
        return _round_up(_round_up(B, 16) // 2, 16)
    return _round_up(B, 16)   # tiny batch: single tile, packed-sublane floor 16


def cnn_forward(x_nchw, params):
    """x_nchw: (B, 3, 32, 32) float32 (or bf16). params: bf16 weights (padded w4/b4),
    f32 biases. Returns (B, 2) float32 logits."""
    B = x_nchw.shape[0]
    # Row-major flatten == torch.flatten(start_dim=1). Convert to bf16 here; the
    # allow_input_fusion hint below lets XLA fuse this convert into the
    # pallas_call operand (no standalone HBM re-read/re-write of x).
    x_flat = x_nchw.reshape(B, -1).astype(jnp.bfloat16)

    TB = _choose_tb(B)
    B_pad = _round_up(B, TB)
    if B_pad != B:
        x_flat = jnp.pad(x_flat, ((0, B_pad - B), (0, 0)))

    grid = (B_pad // TB,)

    w1, b1 = params["w1"], params["b1"]
    w2, b2 = params["w2"], params["b2"]
    w3, b3 = params["w3"], params["b3"]
    w4, b4 = params["w4"], params["b4"]

    x_spec = pl.BlockSpec((TB, IN_FEATURES), lambda i: (i, 0))
    out_spec = pl.BlockSpec((TB, OUT_PAD), lambda i: (i, 0))

    def resident(shape):
        # Constant index_map -> fetched once, VMEM-resident across batch tiles.
        # Single-buffered: no need for the default 2-deep pipeline buffers.
        return pl.BlockSpec(shape, lambda i: (0, 0),
                            pipeline_mode=pl.Buffered(1))

    out_padded = pl.pallas_call(
        mlp_kernel,
        out_shape=jax.ShapeDtypeStruct((B_pad, OUT_PAD), jnp.bfloat16),
        grid=grid,
        in_specs=[
            x_spec,
            resident((IN_FEATURES, HIDDEN)), resident((1, HIDDEN)),
            resident((HIDDEN, HIDDEN)),      resident((1, HIDDEN)),
            resident((HIDDEN, HIDDEN)),      resident((1, HIDDEN)),
            resident((HIDDEN, OUT_PAD)),     resident((1, OUT_PAD)),
        ],
        out_specs=out_spec,
        compiler_params=pltpu.CompilerParams(
            dimension_semantics=("parallel",),   # batch tiles shard across TCs
            vmem_limit_bytes=48 << 20,           # TB=512 fits; headroom on v7x
            # Allow the f32->bf16 convert (and flatten/pad) of x to fuse into the
            # kernel's operand fetch; weights/biases are passed as-is.
            allow_input_fusion=[True, False, False, False, False,
                                False, False, False, False],
        ),
    )(x_flat, w1, b1, w2, b2, w3, b3, w4, b4)

    # Strip batch padding and the lane padding of the logits; return f32 logits.
    return out_padded[:B, :OUT_FEATURES].astype(jnp.float32)


def init_params_f32(key):
    """f32 reference parameters mimicking PyTorch Linear default init.
    Weights stored as (in_features, out_features); biases as (1, out_features)."""
    dims = [(IN_FEATURES, HIDDEN), (HIDDEN, HIDDEN), (HIDDEN, HIDDEN),
            (HIDDEN, OUT_FEATURES)]
    params = {}
    keys = jax.random.split(key, 2 * len(dims))
    for i, (fan_in, fan_out) in enumerate(dims):
        bound = 1.0 / jnp.sqrt(jnp.float32(fan_in))
        w = jax.random.uniform(keys[2 * i], (fan_in, fan_out), jnp.float32,
                               minval=-bound, maxval=bound)
        b = jax.random.uniform(keys[2 * i + 1], (1, fan_out), jnp.float32,
                               minval=-bound, maxval=bound)
        params[f"w{i + 1}"] = w
        params[f"b{i + 1}"] = b
    return params


def prepare_kernel_params(p32):
    """bf16 weights (halve HBM bytes); pad layer-4 to 128 output lanes; f32 biases."""
    p = {}
    for i in (1, 2, 3, 4):
        w = p32[f"w{i}"]
        b = p32[f"b{i}"]
        if i == 4:
            w = jnp.pad(w, ((0, 0), (0, OUT_PAD - OUT_FEATURES)))
            b = jnp.pad(b, ((0, 0), (0, OUT_PAD - OUT_FEATURES)))
        p[f"w{i}"] = w.astype(jnp.bfloat16)
        p[f"b{i}"] = b.astype(jnp.float32)
    return p


if __name__ == "__main__":
    key = jax.random.PRNGKey(0)
    k_params, k_x = jax.random.split(key)

    params_f32 = init_params_f32(k_params)
    params = prepare_kernel_params(params_f32)

    # Small batch; input shape implied by the model: (B, 3, 32, 32) NCHW.
    x = jax.random.normal(k_x, (2, 3, 32, 32), jnp.float32)

    logits = jax.jit(cnn_forward)(x, params)
    jax.block_until_ready(logits)

    # Pure-JAX reference with the same numerics: bf16 dot inputs, f32 accumulate,
    # f32 bias/ReLU, bf16 final writeback.
    def ref(x, p):
        h = x.reshape(x.shape[0], -1).astype(jnp.bfloat16)
        for i in (1, 2, 3):
            w = p[f"w{i}"].astype(jnp.bfloat16)
            h = jnp.dot(h, w, preferred_element_type=jnp.float32) + p[f"b{i}"]
            h = jnp.maximum(h, 0.0).astype(jnp.bfloat16)
        w4 = p["w4"].astype(jnp.bfloat16)
        out = jnp.dot(h, w4, preferred_element_type=jnp.float32) + p["b4"]
        return out.astype(jnp.bfloat16).astype(jnp.float32)

    r = ref(x, params_f32)
    assert logits.shape == (2, 2), logits.shape
    assert jnp.allclose(logits, r, atol=2e-2, rtol=2e-2), (logits, r)

    print("KERNEL_OK")
</pallas_src>

<mosaic_0001>
module attributes {stable_mosaic.version = 11 : i64} {
  func.func @mlp_kernel(%arg0: i32, %arg1: memref<16x3072xbf16, #tpu.memory_space<vmem>>, %arg2: memref<3072x512xbf16, #tpu.memory_space<vmem>>, %arg3: memref<1x512xf32, #tpu.memory_space<vmem>>, %arg4: memref<512x512xbf16, #tpu.memory_space<vmem>>, %arg5: memref<1x512xf32, #tpu.memory_space<vmem>>, %arg6: memref<512x512xbf16, #tpu.memory_space<vmem>>, %arg7: memref<1x512xf32, #tpu.memory_space<vmem>>, %arg8: memref<512x128xbf16, #tpu.memory_space<vmem>>, %arg9: memref<1x128xf32, #tpu.memory_space<vmem>>, %arg10: memref<16x128xbf16, #tpu.memory_space<vmem>>) attributes {dimension_semantics = [#tpu.dimension_semantics<parallel>], iteration_bounds = array<i64: 1>, scalar_prefetch = 0 : i64, scratch_operands = 0 : i64, tpu.core_type = #tpu.core_type<tc>, window_params = [{transform_indices = @transform_0, window_bounds = array<i64: 16, 3072>}, {pipeline_mode = #tpu.pipeline_mode<synchronous>, transform_indices = @transform_1, window_bounds = array<i64: 3072, 512>}, {pipeline_mode = #tpu.pipeline_mode<synchronous>, transform_indices = @transform_2, window_bounds = array<i64: 1, 512>}, {pipeline_mode = #tpu.pipeline_mode<synchronous>, transform_indices = @transform_3, window_bounds = array<i64: 512, 512>}, {pipeline_mode = #tpu.pipeline_mode<synchronous>, transform_indices = @transform_4, window_bounds = array<i64: 1, 512>}, {pipeline_mode = #tpu.pipeline_mode<synchronous>, transform_indices = @transform_5, window_bounds = array<i64: 512, 512>}, {pipeline_mode = #tpu.pipeline_mode<synchronous>, transform_indices = @transform_6, window_bounds = array<i64: 1, 512>}, {pipeline_mode = #tpu.pipeline_mode<synchronous>, transform_indices = @transform_7, window_bounds = array<i64: 512, 128>}, {pipeline_mode = #tpu.pipeline_mode<synchronous>, transform_indices = @transform_8, window_bounds = array<i64: 1, 128>}, {transform_indices = @transform_9, window_bounds = array<i64: 16, 128>}]} {
    %c0 = arith.constant 0 : index
    %c0_0 = arith.constant 0 : index
    %0 = vector.load %arg1[%c0, %c0_0] : memref<16x3072xbf16, #tpu.memory_space<vmem>>, vector<16x3072xbf16>
    %c0_1 = arith.constant 0 : index
    %c0_2 = arith.constant 0 : index
    %1 = vector.load %arg2[%c0_1, %c0_2] : memref<3072x512xbf16, #tpu.memory_space<vmem>>, vector<3072x512xbf16>
    %cst = arith.constant dense<0.000000e+00> : vector<16x512xf32>
    %2 = tpu.matmul %0, %1, %cst {dimension_numbers = #tpu.dot_dimension_numbers<[1], [0], [0], [1], [0, 0, 1, 1], [], []>} : vector<16x3072xbf16>, vector<3072x512xbf16>, vector<16x512xf32> -> vector<16x512xf32>
    %c0_3 = arith.constant 0 : index
    %c0_4 = arith.constant 0 : index
    %3 = vector.load %arg3[%c0_3, %c0_4] : memref<1x512xf32, #tpu.memory_space<vmem>>, vector<1x512xf32>
    %4 = vector.broadcast %3 : vector<1x512xf32> to vector<16x512xf32>
    %5 = arith.addf %2, %4 : vector<16x512xf32>
    %cst_5 = arith.constant 0.000000e+00 : f32
    %6 = vector.broadcast %cst_5 : f32 to vector<16x512xf32>
    %7 = arith.maximumf %5, %6 : vector<16x512xf32>
    %8 = arith.truncf %7 : vector<16x512xf32> to vector<16x512xbf16>
    %c0_6 = arith.constant 0 : index
    %c0_7 = arith.constant 0 : index
    %9 = vector.load %arg4[%c0_6, %c0_7] : memref<512x512xbf16, #tpu.memory_space<vmem>>, vector<512x512xbf16>
    %cst_8 = arith.constant dense<0.000000e+00> : vector<16x512xf32>
    %10 = tpu.matmul %8, %9, %cst_8 {dimension_numbers = #tpu.dot_dimension_numbers<[1], [0], [0], [1], [0, 0, 1, 1], [], []>} : vector<16x512xbf16>, vector<512x512xbf16>, vector<16x512xf32> -> vector<16x512xf32>
    %c0_9 = arith.constant 0 : index
    %c0_10 = arith.constant 0 : index
    %11 = vector.load %arg5[%c0_9, %c0_10] : memref<1x512xf32, #tpu.memory_space<vmem>>, vector<1x512xf32>
    %12 = vector.broadcast %11 : vector<1x512xf32> to vector<16x512xf32>
    %13 = arith.addf %10, %12 : vector<16x512xf32>
    %cst_11 = arith.constant 0.000000e+00 : f32
    %14 = vector.broadcast %cst_11 : f32 to vector<16x512xf32>
    %15 = arith.maximumf %13, %14 : vector<16x512xf32>
    %16 = arith.truncf %15 : vector<16x512xf32> to vector<16x512xbf16>
    %c0_12 = arith.constant 0 : index
    %c0_13 = arith.constant 0 : index
    %17 = vector.load %arg6[%c0_12, %c0_13] : memref<512x512xbf16, #tpu.memory_space<vmem>>, vector<512x512xbf16>
    %cst_14 = arith.constant dense<0.000000e+00> : vector<16x512xf32>
    %18 = tpu.matmul %16, %17, %cst_14 {dimension_numbers = #tpu.dot_dimension_numbers<[1], [0], [0], [1], [0, 0, 1, 1], [], []>} : vector<16x512xbf16>, vector<512x512xbf16>, vector<16x512xf32> -> vector<16x512xf32>
    %c0_15 = arith.constant 0 : index
    %c0_16 = arith.constant 0 : index
    %19 = vector.load %arg7[%c0_15, %c0_16] : memref<1x512xf32, #tpu.memory_space<vmem>>, vector<1x512xf32>
    %20 = vector.broadcast %19 : vector<1x512xf32> to vector<16x512xf32>
    %21 = arith.addf %18, %20 : vector<16x512xf32>
    %cst_17 = arith.constant 0.000000e+00 : f32
    %22 = vector.broadcast %cst_17 : f32 to vector<16x512xf32>
    %23 = arith.maximumf %21, %22 : vector<16x512xf32>
    %24 = arith.truncf %23 : vector<16x512xf32> to vector<16x512xbf16>
    %c0_18 = arith.constant 0 : index
    %c0_19 = arith.constant 0 : index
    %25 = vector.load %arg8[%c0_18, %c0_19] : memref<512x128xbf16, #tpu.memory_space<vmem>>, vector<512x128xbf16>
    %cst_20 = arith.constant dense<0.000000e+00> : vector<16x128xf32>
    %26 = tpu.matmul %24, %25, %cst_20 {dimension_numbers = #tpu.dot_dimension_numbers<[1], [0], [0], [1], [0, 0, 1, 1], [], []>} : vector<16x512xbf16>, vector<512x128xbf16>, vector<16x128xf32> -> vector<16x128xf32>
    %c0_21 = arith.constant 0 : index
    %c0_22 = arith.constant 0 : index
    %27 = vector.load %arg9[%c0_21, %c0_22] : memref<1x128xf32, #tpu.memory_space<vmem>>, vector<1x128xf32>
    %28 = vector.broadcast %27 : vector<1x128xf32> to vector<16x128xf32>
    %29 = arith.addf %26, %28 : vector<16x128xf32>
    %30 = arith.truncf %29 : vector<16x128xf32> to vector<16x128xbf16>
    %c0_23 = arith.constant 0 : index
    %c0_24 = arith.constant 0 : index
    %31 = vector.load %arg10[%c0_23, %c0_24] : memref<16x128xbf16, #tpu.memory_space<vmem>>, vector<16x128xbf16>
    tpu.vector_store %arg10[%c0_23, %c0_24], %30 {strides = array<i32>} : memref<16x128xbf16, #tpu.memory_space<vmem>>, vector<16x128xbf16>,
    return
  }
  func.func @transform_0(%arg0: i32) -> (i32, i32) {
    %c0_i32 = arith.constant 0 : i32
    %c0_i32_0 = arith.constant 0 : i32
    return %arg0, %c0_i32 : i32, i32
  }
  func.func @transform_1(%arg0: i32) -> (i32, i32) {
    %c0_i32 = arith.constant 0 : i32
    %c0_i32_0 = arith.constant 0 : i32
    %c0_i32_1 = arith.constant 0 : i32
    return %c0_i32, %c0_i32_0 : i32, i32
  }
  func.func @transform_2(%arg0: i32) -> (i32, i32) {
    %c0_i32 = arith.constant 0 : i32
    %c0_i32_0 = arith.constant 0 : i32
    %c0_i32_1 = arith.constant 0 : i32
    return %c0_i32, %c0_i32_0 : i32, i32
  }
  func.func @transform_3(%arg0: i32) -> (i32, i32) {
    %c0_i32 = arith.constant 0 : i32
    %c0_i32_0 = arith.constant 0 : i32
    %c0_i32_1 = arith.constant 0 : i32
    return %c0_i32, %c0_i32_0 : i32, i32
  }
  func.func @transform_4(%arg0: i32) -> (i32, i32) {
    %c0_i32 = arith.constant 0 : i32
    %c0_i32_0 = arith.constant 0 : i32
    %c0_i32_1 = arith.constant 0 : i32
    return %c0_i32, %c0_i32_0 : i32, i32
  }
  func.func @transform_5(%arg0: i32) -> (i32, i32) {
    %c0_i32 = arith.constant 0 : i32
    %c0_i32_0 = arith.constant 0 : i32
    %c0_i32_1 = arith.constant 0 : i32
    return %c0_i32, %c0_i32_0 : i32, i32
  }
  func.func @transform_6(%arg0: i32) -> (i32, i32) {
    %c0_i32 = arith.constant 0 : i32
    %c0_i32_0 = arith.constant 0 : i32
    %c0_i32_1 = arith.constant 0 : i32
    return %c0_i32, %c0_i32_0 : i32, i32
  }
  func.func @transform_7(%arg0: i32) -> (i32, i32) {
    %c0_i32 = arith.constant 0 : i32
    %c0_i32_0 = arith.constant 0 : i32
    %c0_i32_1 = arith.constant 0 : i32
    return %c0_i32, %c0_i32_0 : i32, i32
  }
  func.func @transform_8(%arg0: i32) -> (i32, i32) {
    %c0_i32 = arith.constant 0 : i32
    %c0_i32_0 = arith.constant 0 : i32
    %c0_i32_1 = arith.constant 0 : i32
    return %c0_i32, %c0_i32_0 : i32, i32
  }
  func.func @transform_9(%arg0: i32) -> (i32, i32) {
    %c0_i32 = arith.constant 0 : i32
    %c0_i32_0 = arith.constant 0 : i32
    return %arg0, %c0_i32 : i32, i32
  }
}

</mosaic_0001>

<bundles_post_ra>
// kernel: cnn_forward.2
= control target key start
LH: loop header
LB: loop body
LE: loop exit
PB: predicated region body
PF: predicated region fallthrough
CT: control target
= control target key end

     0   :  { %s12357_s0 = inlined_call_operand.hbm [shape: bf16[3072,512], index: 0, kind: input, shape index: {}]   ;;  %s12358_s1 = inlined_call_operand.hbm [shape: f32[1,512], index: 1, kind: input, shape index: {}]   ;;  %s12359_s2 = inlined_call_operand.hbm [shape: bf16[512,512], index: 2, kind: input, shape index: {}]   ;;  %s12360_s3 = inlined_call_operand.hbm [shape: f32[1,512], index: 3, kind: input, shape index: {}]   ;;  %s12361_s4 = inlined_call_operand.hbm [shape: bf16[512,512], index: 4, kind: input, shape index: {}]   ;;  %s12362_s5 = inlined_call_operand.hbm [shape: f32[1,512], index: 5, kind: input, shape index: {}]   ;;  %s12363_s6 = inlined_call_operand.hbm [shape: bf16[512,128], index: 6, kind: input, shape index: {}]   ;;  %s12364_s7 = inlined_call_operand.hbm [shape: f32[1,128], index: 7, kind: input, shape index: {}]   ;;  %s12365_s8 = inlined_call_operand.vmem [shape: bf16[2,3072], index: 8, kind: input, shape index: {}]   ;;  %s12366_s9 = inlined_call_operand.<no memory space> [shape: bf16[], index: 9, kind: input, shape index: {}]   ;;  %s12367_s10 = inlined_call_operand.vmem [shape: bf16[16,128], index: 10, kind: output, shape index: {}]  }
   0x1   :  { %v15_v0 = vstv %s12366_s9 }
   0x2   :  { %v11932_v1 = vunpack.i.l.bf16 %v15_v0 }
   0x3   :  { %20 = vsyncpa [#allocation8], 0 }
   0x4   :  { %21 = vsyncpa [#allocation10], 0 }
   0x5   :  { %22 = vsyncpa [#allocation13], 0 }
   0x6   :  { %23 = vsyncpa [#allocation16], 0 }
   0x7   :  { %24 = vsyncpa [#allocation19], 0  ;;  %s11861_s15 = smov [#allocation9]   ;;  %s11862_s17 = smov [#allocation12]  }
   0x8   :  { %s45_s16 = sshll.u32 %s11861_s15, 4  ;;  %s67_s18 = sshll.u32 %s11862_s17, 4  ;;  %s46_s16 = int_to_ptr.vmem [resolvable:$true] %s45_s16  ;;  %s68_s18 = int_to_ptr.vmem [resolvable:$true] %s67_s18 }
   0x9   :  { %s11675_s21 = scalar_lea.hbm %s12358_s1, 64 }
   0xa   :  { %p11676_p0 = scmp.ne.s32.totalorder %s12358_s1, %s11675_s21  ;;  %p11679_p1 = scmp.lt.u32.totalorder %s11675_s21, %s12358_s1 }
   0xc   :  { %p11681_p2 = pnand %p11679_p1, %p11676_p0 }
   0xe   :  { %11684 = shalt.err (!%p11681_p2)
}
   0xf   :  { %s11685_s25 = scalar_lea.vmem %s46_s16, 64  ;;  %p11690_p4 = scmp.lt.s32.totalorder %s46_s16, %s46_s16 }
  0x10   :  { %p11686_p3 = scmp.ne.s32.totalorder %s46_s16, %s11685_s25  ;;  %p11691_p5 = scmp.lt.s32.totalorder %s11685_s25, %s11685_s25 }
  0x12   :  { %p11692_p6 = por %p11691_p5, %p11690_p4 }
  0x14   :  { %p11693_p7 = pnand %p11692_p6, %p11686_p3 }
  0x16   :  { %11696 = shalt.err (!%p11693_p7)
}
  0x17   :  { %48 = dma.hbm_to_vmem [thread:$0]  %s12358_s1, 64, %s46_s16, [#allocation10]  }
  0x18   :  { %s11697_s30 = scalar_lea.hbm %s12360_s3, 64 }
  0x19   :  { %p11698_p8 = scmp.ne.s32.totalorder %s12360_s3, %s11697_s30  ;;  %p11701_p9 = scmp.lt.u32.totalorder %s11697_s30, %s12360_s3 }
  0x1b   :  { %p11703_p10 = pnand %p11701_p9, %p11698_p8 }
  0x1d   :  { %11706 = shalt.err (!%p11703_p10)
}
  0x1e   :  { %s11707_s15 = scalar_lea.vmem %s68_s18, 64  ;;  %p11712_p12 = scmp.lt.s32.totalorder %s68_s18, %s68_s18 }
  0x1f   :  { %p11708_p11 = scmp.ne.s32.totalorder %s68_s18, %s11707_s15  ;;  %p11713_p13 = scmp.lt.s32.totalorder %s11707_s15, %s11707_s15 }
  0x21   :  { %p11714_p0 = por %p11713_p13, %p11712_p12 }
  0x23   :  { %p11715_p1 = pnand %p11714_p0, %p11708_p11 }
  0x25   :  { %11718 = shalt.err (!%p11715_p1)
}
  0x26   :  { %70 = dma.hbm_to_vmem [thread:$0]  %s12360_s3, 64, %s68_s18, [#allocation13]  }
  0x27   :  { %s11863_s17 = smov [#allocation15]   ;;  %s11864_s20 = smov [#allocation7]  }
  0x28   :  { %s89_s19 = sshll.u32 %s11863_s17, 4  ;;  %s32_s21 = sshll.u32 %s11864_s20, 4  ;;  %s90_s19 = int_to_ptr.vmem [resolvable:$true] %s89_s19  ;;  %s11958_s21 = int_to_ptr.vmem [resolvable:$true] %s32_s21 }
  0x29   :  { %s11719_s9 = scalar_lea.hbm %s12362_s5, 64 }
  0x2a   :  { %p11720_p2 = scmp.ne.s32.totalorder %s12362_s5, %s11719_s9  ;;  %p11723_p3 = scmp.lt.u32.totalorder %s11719_s9, %s12362_s5 }
  0x2c   :  { %p11725_p4 = pnand %p11723_p3, %p11720_p2 }
  0x2e   :  { %11728 = shalt.err (!%p11725_p4)
}
  0x2f   :  { %s11729_s3 = scalar_lea.vmem %s90_s19, 64  ;;  %p11734_p6 = scmp.lt.s32.totalorder %s90_s19, %s90_s19 }
  0x30   :  { %p11730_p5 = scmp.ne.s32.totalorder %s90_s19, %s11729_s3  ;;  %p11735_p7 = scmp.lt.s32.totalorder %s11729_s3, %s11729_s3 }
  0x32   :  { %p11736_p8 = por %p11735_p7, %p11734_p6 }
  0x34   :  { %p11737_p9 = pnand %p11736_p8, %p11730_p5 }
  0x36   :  { %11740 = shalt.err (!%p11737_p9)
}
  0x37   :  { %92 = dma.hbm_to_vmem [thread:$0]  %s12362_s5, 64, %s90_s19, [#allocation16]  }
  0x38   :  { %s11741_s11 = scalar_lea.hbm %s12357_s0, 98304 }
  0x39   :  { %p11742_p10 = scmp.ne.s32.totalorder %s12357_s0, %s11741_s11  ;;  %p11745_p11 = scmp.lt.u32.totalorder %s11741_s11, %s12357_s0 }
  0x3b   :  { %p11747_p12 = pnand %p11745_p11, %p11742_p10 }
  0x3d   :  { %11750 = shalt.err (!%p11747_p12)
}
  0x3e   :  { %s11751_s1 = scalar_lea.vmem %s11958_s21, 98304  ;;  %p11756_p0 = scmp.lt.s32.totalorder %s11958_s21, %s11958_s21 }
  0x3f   :  { %p11752_p13 = scmp.ne.s32.totalorder %s11958_s21, %s11751_s1  ;;  %p11757_p1 = scmp.lt.s32.totalorder %s11751_s1, %s11751_s1 }
  0x41   :  { %p11758_p2 = por %p11757_p1, %p11756_p0 }
  0x43   :  { %p11759_p3 = pnand %p11758_p2, %p11752_p13 }
  0x45   :  { %11762 = shalt.err (!%p11759_p3)
}
  0x46   :  { %s11865_s5 = smov 256   ;;  %s11866_s16 = smov 16  }
  0x47   :  { %38 = dma.hbm_to_vmem [thread:$0]  %s12357_s0, 98304, %s11958_s21, [#allocation8], %s11865_s5, %s11865_s5, %s11866_s16  }
  0x48   :  { %s11867_s20 = smov [#allocation11]   ;;  %s11868_s23 = smov [#allocation14]  }
  0x49   :  { %s54_s22 = sshll.u32 %s11867_s20, 4  ;;  %s76_s9 = sshll.u32 %s11868_s23, 4  ;;  %s55_s22 = int_to_ptr.vmem [resolvable:$true] %s54_s22  ;;  %s11992_s9 = int_to_ptr.vmem [resolvable:$true] %s76_s9 }
  0x4a   :  { %s11763_s26 = scalar_lea.hbm %s12359_s2, 16384 }
  0x4b   :  { %p11764_p4 = scmp.ne.s32.totalorder %s12359_s2, %s11763_s26  ;;  %p11767_p5 = scmp.lt.u32.totalorder %s11763_s26, %s12359_s2 }
  0x4d   :  { %p11769_p6 = pnand %p11767_p5, %p11764_p4 }
  0x4f   :  { %11772 = shalt.err (!%p11769_p6)
}
  0x50   :  { %s11773_s0 = scalar_lea.vmem %s55_s22, 16384  ;;  %p11778_p8 = scmp.lt.s32.totalorder %s55_s22, %s55_s22 }
  0x51   :  { %p11774_p7 = scmp.ne.s32.totalorder %s55_s22, %s11773_s0  ;;  %p11779_p9 = scmp.lt.s32.totalorder %s11773_s0, %s11773_s0 }
  0x53   :  { %p11780_p10 = por %p11779_p9, %p11778_p8 }
  0x55   :  { %p11781_p11 = pnand %p11780_p10, %p11774_p7 }
  0x57   :  { %11784 = shalt.err (!%p11781_p11)
}
  0x58   :  { %60 = dma.hbm_to_vmem [thread:$0]  %s12359_s2, 16384, %s55_s22, [#allocation10], %s11865_s5, %s11865_s5, %s11866_s16  }
  0x59   :  { %s11785_s12 = scalar_lea.hbm %s12361_s4, 16384 }
  0x5a   :  { %p11786_p12 = scmp.ne.s32.totalorder %s12361_s4, %s11785_s12  ;;  %p11789_p13 = scmp.lt.u32.totalorder %s11785_s12, %s12361_s4 }
  0x5c   :  { %p11791_p0 = pnand %p11789_p13, %p11786_p12 }
  0x5e   :  { %11794 = shalt.err (!%p11791_p0)
}
  0x5f   :  { %s11795_s17 = scalar_lea.vmem %s11992_s9, 16384  ;;  %p11800_p2 = scmp.lt.s32.totalorder %s11992_s9, %s11992_s9 }
  0x60   :  { %p11796_p1 = scmp.ne.s32.totalorder %s11992_s9, %s11795_s17  ;;  %p11801_p3 = scmp.lt.s32.totalorder %s11795_s17, %s11795_s17 }
  0x62   :  { %p11802_p4 = por %p11801_p3, %p11800_p2 }
  0x64   :  { %p11803_p5 = pnand %p11802_p4, %p11796_p1 }
  0x66   :  { %11806 = shalt.err (!%p11803_p5)
}
  0x67   :  { %82 = dma.hbm_to_vmem [thread:$0]  %s12361_s4, 16384, %s11992_s9, [#allocation13], %s11865_s5, %s11865_s5, %s11866_s16  }
  0x68   :  { %s11869_s20 = smov [#allocation17]   ;;  %s11807_s25 = scalar_lea.hbm %s12363_s6, 4096 }
  0x69   :  { %s98_s22 = sshll.u32 %s11869_s20, 4  ;;  %p11808_p6 = scmp.ne.s32.totalorder %s12363_s6, %s11807_s25  ;;  %s99_s22 = int_to_ptr.vmem [resolvable:$true] %s98_s22 }
  0x6a   :  { %p11811_p7 = scmp.lt.u32.totalorder %s11807_s25, %s12363_s6 }
  0x6c   :  { %p11813_p8 = pnand %p11811_p7, %p11808_p6 }
  0x6e   :  { %11816 = shalt.err (!%p11813_p8)
}
  0x6f   :  { %s11817_s28 = scalar_lea.vmem %s99_s22, 4096  ;;  %p11822_p10 = scmp.lt.s32.totalorder %s99_s22, %s99_s22 }
  0x70   :  { %p11818_p9 = scmp.ne.s32.totalorder %s99_s22, %s11817_s28  ;;  %p11823_p11 = scmp.lt.s32.totalorder %s11817_s28, %s11817_s28 }
  0x72   :  { %p11824_p12 = por %p11823_p11, %p11822_p10 }
  0x74   :  { %p11825_p13 = pnand %p11824_p12, %p11818_p9 }
  0x76   :  { %11828 = shalt.err (!%p11825_p13)
}
  0x77   :  { %s11870_s4 = smov 64   ;;  %s11871_s5 = smov 4  }
  0x78   :  { %104 = dma.hbm_to_vmem [thread:$0]  %s12363_s6, 4096, %s99_s22, [#allocation16], %s11870_s4, %s11870_s4, %s11871_s5  }
  0x79   :  { %s11872_s0 = smov [#allocation18]   ;;  %s11829_s11 = scalar_lea.hbm %s12364_s7, 16 }
  0x7a   :  { %s111_s21 = sshll.u32 %s11872_s0, 4  ;;  %p11830_p0 = scmp.ne.s32.totalorder %s12364_s7, %s11829_s11  ;;  %s112_s21 = int_to_ptr.vmem [resolvable:$true] %s111_s21 }
  0x7b   :  { %p11833_p1 = scmp.lt.u32.totalorder %s11829_s11, %s12364_s7 }
  0x7d   :  { %p11835_p2 = pnand %p11833_p1, %p11830_p0 }
  0x7f   :  { %11838 = shalt.err (!%p11835_p2)
}
  0x80   :  { %s11839_s1 = scalar_lea.vmem %s112_s21, 16  ;;  %s11843_s6 = scalar_lea.vmem %s112_s21, 32 }
  0x81   :  { %p11840_p3 = scmp.ne.s32.totalorder %s112_s21, %s11839_s1  ;;  %p11844_p4 = scmp.lt.s32.totalorder %s112_s21, %s112_s21 }
  0x82   :  { %p11845_p5 = scmp.lt.s32.totalorder %s11843_s6, %s11839_s1 }
  0x84   :  { %p11846_p6 = por %p11845_p5, %p11844_p4 }
  0x86   :  { %p11847_p7 = pnand %p11846_p6, %p11840_p3 }
  0x88   :  { %11850 = shalt.err (!%p11847_p7)
}
  0x89   :  { %114 = dma.hbm_to_vmem [thread:$0]  %s12364_s7, 16, %s112_s21, [#allocation19]  }
  0x8a   :  { %11851 = dma.done.wait [#allocation8], 98304  }
  0x8b   :  { %11852 = vsyncadd [#allocation8], 4294868992 }
  0x8c   :  { %11853 = dma.done.wait [#allocation10], 16448  }
  0x8d   :  { %11854 = vsyncadd [#allocation10], 4294950848 }
  0x8e   :  { %11855 = dma.done.wait [#allocation13], 16448  }
  0x8f   :  { %11856 = vsyncadd [#allocation13], 4294950848 }
  0x90   :  { %11857 = dma.done.wait [#allocation16], 4160  }
  0x91   :  { %11858 = vsyncadd [#allocation16], 4294963136 }
  0x92   :  { %11859 = dma.done.wait [#allocation19], 16  }
  0x93   :  { %11860 = vsyncadd [#allocation19], 4294967280  ;;  %v12055_v2 = vpack.c.bf16 %v11932_v1, %v11932_v1  ;;  %v10106_v3 = vld [vmem:[#allocation7 + $0x4] ss:$16 sps:$4 sm:$0xff]   ;;  %v10108_v4 = vld [vmem:[#allocation7 + $0xc] ss:$16 sps:$4 sm:$0xff]   ;;  %v145_v41 = vlaneseq }
  0x94   :  { %5392 = vmatprep.subr.bf16.mxu0 %v10106_v3  ;;  %v10110_v5 = vld [vmem:[#allocation7] ss:$16 sps:$4 sm:$0xff]   ;;  %v10111_v6 = vld [vmem:[#allocation7 + $0x8] ss:$16 sps:$4 sm:$0xff]   ;;  %5908 = vmatprep.subr.bf16.mxu1 %v10108_v4  ;;  %v10112_v7 = vld [vmem:[#allocation7 + $0x24] ss:$16 sps:$4 sm:$0xff]  }
  0x95   :  { %9860 = vst [vmem:[#allocation20 + $0x60] sm:$0xff] %v12055_v2   ;;  %9875 = vst [vmem:[#allocation20 + $0x78] sm:$0xff] %v12055_v2   ;;  %5393 = vmatpush1.bf16.msra.mxu0 %v10110_v5  ;;  %5909 = vmatpush1.bf16.msra.mxu1 %v10111_v6  ;;  %v10114_v8 = vld [vmem:[#allocation7 + $0x2c] ss:$16 sps:$4 sm:$0xff]   ;;  %v10116_v9 = vld [vmem:[#allocation7 + $0x20] ss:$16 sps:$4 sm:$0xff]  }
  0x96   :  { %9880 = vst [vmem:[#allocation20 + $0x80] sm:$0xff] %v12055_v2   ;;  %9885 = vst [vmem:[#allocation20 + $0x88] sm:$0xff] %v12055_v2   ;;  %5394 = vmatprep.subr.bf16.mxu0 %v10112_v7  ;;  %v10117_v10 = vld [vmem:[#allocation7 + $0x28] ss:$16 sps:$4 sm:$0xff]   ;;  %5910 = vmatprep.subr.bf16.mxu1 %v10114_v8  ;;  %v10118_v11 = vld [vmem:[#allocation7 + $0x44] ss:$16 sps:$4 sm:$0xff]  }
  0x97   :  { %9890 = vst [vmem:[#allocation20 + $0x90] sm:$0xff] %v12055_v2   ;;  %9895 = vst [vmem:[#allocation20 + $0x98] sm:$0xff] %v12055_v2   ;;  %v10120_v12 = vld [vmem:[#allocation7 + $0x4c] ss:$16 sps:$4 sm:$0xff]   ;;  %v10122_v13 = vld [vmem:[#allocation7 + $0x40] ss:$16 sps:$4 sm:$0xff]  }
  0x98   :  { %9900 = vst [vmem:[#allocation20 + $0xa0] sm:$0xff] %v12055_v2   ;;  %9905 = vst [vmem:[#allocation20 + $0xa8] sm:$0xff] %v12055_v2   ;;  %v10123_v14 = vld [vmem:[#allocation7 + $0x48] ss:$16 sps:$4 sm:$0xff]   ;;  %v10124_v15 = vld [vmem:[#allocation7 + $0x64] ss:$16 sps:$4 sm:$0xff]  }
  0x99   :  { %9910 = vst [vmem:[#allocation20 + $0xb0] sm:$0xff] %v12055_v2   ;;  %9915 = vst [vmem:[#allocation20 + $0xb8] sm:$0xff] %v12055_v2   ;;  %5395 = vmatpush1.bf16.msra.mxu0 %v10116_v9  ;;  %5911 = vmatpush1.bf16.msra.mxu1 %v10117_v10  ;;  %v10126_v16 = vld [vmem:[#allocation7 + $0x6c] ss:$16 sps:$4 sm:$0xff]   ;;  %v10128_v17 = vld [vmem:[#allocation7 + $0x60] ss:$16 sps:$4 sm:$0xff]  }
  0x9a   :  { %5396 = vmatprep.subr.bf16.mxu0 %v10118_v11  ;;  %5912 = vmatprep.subr.bf16.mxu1 %v10120_v12  ;;  %v10129_v18 = vld [vmem:[#allocation7 + $0x68] ss:$16 sps:$4 sm:$0xff]   ;;  %v10130_v19 = vld [vmem:[#allocation7 + $0x84] ss:$16 sps:$4 sm:$0xff]   ;;  %v10132_v20 = vld [vmem:[#allocation7 + $0x8c] ss:$16 sps:$4 sm:$0xff]  }
  0x9b   :  { %v10134_v21 = vld [vmem:[#allocation7 + $0x80] ss:$16 sps:$4 sm:$0xff]   ;;  %v10135_v22 = vld [vmem:[#allocation7 + $0x88] ss:$16 sps:$4 sm:$0xff]   ;;  %v10136_v23 = vld [vmem:[#allocation7 + $0xa4] ss:$16 sps:$4 sm:$0xff]  }
  0x9c   :  { %v10138_v24 = vld [vmem:[#allocation7 + $0xac] ss:$16 sps:$4 sm:$0xff]   ;;  %v10140_v25 = vld [vmem:[#allocation7 + $0xa0] ss:$16 sps:$4 sm:$0xff]   ;;  %v10141_v26 = vld [vmem:[#allocation7 + $0xa8] ss:$16 sps:$4 sm:$0xff]  }
  0x9d   :  { %5397 = vmatpush1.bf16.msra.mxu0 %v10122_v13  ;;  %5913 = vmatpush1.bf16.msra.mxu1 %v10123_v14  ;;  %v10142_v27 = vld [vmem:[#allocation7 + $0xc4] ss:$16 sps:$4 sm:$0xff]   ;;  %v10144_v28 = vld [vmem:[#allocation7 + $0xcc] ss:$16 sps:$4 sm:$0xff]   ;;  %v10146_v29 = vld [vmem:[#allocation7 + $0xc0] ss:$16 sps:$4 sm:$0xff]  }
  0x9e   :  { %5398 = vmatprep.subr.bf16.mxu0 %v10124_v15  ;;  %5914 = vmatprep.subr.bf16.mxu1 %v10126_v16  ;;  %v10147_v30 = vld [vmem:[#allocation7 + $0xc8] ss:$16 sps:$4 sm:$0xff]   ;;  %v10148_v31 = vld [vmem:[#allocation7 + $0xe4] ss:$16 sps:$4 sm:$0xff]   ;;  %v10150_v32 = vld [vmem:[#allocation7 + $0xec] ss:$16 sps:$4 sm:$0xff]  }
  0x9f   :  { %v10152_v33 = vld [vmem:[#allocation7 + $0xe0] ss:$16 sps:$4 sm:$0xff]   ;;  %v10153_v34 = vld [vmem:[#allocation7 + $0xe8] ss:$16 sps:$4 sm:$0xff]   ;;  %v10154_v35 = vld [vmem:[#allocation7 + $0x104] ss:$16 sps:$4 sm:$0xff]  }
  0xa0   :  { %v10156_v36 = vld [vmem:[#allocation7 + $0x10c] ss:$16 sps:$4 sm:$0xff]   ;;  %v10158_v37 = vld [vmem:[#allocation7 + $0x100] ss:$16 sps:$4 sm:$0xff]   ;;  %v10159_v38 = vld [vmem:[#allocation7 + $0x108] ss:$16 sps:$4 sm:$0xff]  }
  0xa1   :  { %5399 = vmatpush1.bf16.msra.mxu0 %v10128_v17  ;;  %5915 = vmatpush1.bf16.msra.mxu1 %v10129_v18  ;;  %v10160_v39 = vld [vmem:[#allocation7 + $0x124] ss:$16 sps:$4 sm:$0xff]   ;;  %v10162_v40 = vld [vmem:[#allocation7 + $0x12c] ss:$16 sps:$4 sm:$0xff]   ;;  %v10164_v42 = vld [vmem:[#allocation7 + $0x120] ss:$16 sps:$4 sm:$0xff]  }
  0xa2   :  { %5400 = vmatprep.subr.bf16.mxu0 %v10130_v19  ;;  %5916 = vmatprep.subr.bf16.mxu1 %v10132_v20  ;;  %v10165_v43 = vld [vmem:[#allocation7 + $0x128] ss:$16 sps:$4 sm:$0xff]   ;;  %v10166_v44 = vld [vmem:[#allocation7 + $0x144] ss:$16 sps:$4 sm:$0xff]   ;;  %v10168_v45 = vld [vmem:[#allocation7 + $0x14c] ss:$16 sps:$4 sm:$0xff]  }
  0xa3   :  { %v12067_v46 = vshrl.u32 %v145_v41, 7  ;;  %v10170_v47 = vld [vmem:[#allocation7 + $0x140] ss:$16 sps:$4 sm:$0xff]   ;;  %v10171_v48 = vld [vmem:[#allocation7 + $0x148] ss:$16 sps:$4 sm:$0xff]   ;;  %v11873_v60 = vmov 0.0  }
  0xa4   :  { %v10172_v49 = vld [vmem:[#allocation7 + $0x164] ss:$16 sps:$4 sm:$0xff]   ;;  %v10174_v50 = vld [vmem:[#allocation7 + $0x16c] ss:$16 sps:$4 sm:$0xff]   ;;  %v142_v51 = vld [vmem:[%s12365_s8] sm:$0x1] }
  0xa5   :  { %5401 = vmatpush1.bf16.msra.mxu0 %v10134_v21  ;;  %5917 = vmatpush1.bf16.msra.mxu1 %v10135_v22  ;;  %vm148_vm0 = vcmp.lt.s32.totalorder %v12067_v46, 2  ;;  %v143_v52 = vunpack.c.l.bf16 %v142_v51  ;;  %v8748_v53 = vld [vmem:[%s12365_s8 + $0x1] sm:$0x1]  ;;  %v10177_v55 = vld [vmem:[#allocation7 + $0x168] ss:$16 sps:$4 sm:$0xff]  }
  0xa6   :  { %5402 = vmatprep.subr.bf16.mxu0 %v10136_v23  ;;  %5918 = vmatprep.subr.bf16.mxu1 %v10138_v24  ;;  %v10176_v54 = vld [vmem:[#allocation7 + $0x160] ss:$16 sps:$4 sm:$0xff]   ;;  %v158_v56 = vunpack.c.l.bf16 %v8748_v53  ;;  %v10178_v57 = vld [vmem:[#allocation7 + $0x184] ss:$16 sps:$4 sm:$0xff]   ;;  %v10180_v58 = vld [vmem:[#allocation7 + $0x18c] ss:$16 sps:$4 sm:$0xff]  }
  0xa7   :  { %v149_v59 = vsel %vm148_vm0, %v143_v52, %v11932_v1  ;;  %v10182_v0 = vld [vmem:[#allocation7 + $0x180] ss:$16 sps:$4 sm:$0xff]   ;;  %v10183_v3 = vld [vmem:[#allocation7 + $0x188] ss:$16 sps:$4 sm:$0xff]   ;;  %v10184_v4 = vld [vmem:[#allocation7 + $0x1a4] ss:$16 sps:$4 sm:$0xff]  }
  0xa8   :  { %v150_v61 = vpack.c.bf16 %v11873_v60, %v149_v59  ;;  %v164_v62 = vsel %vm148_vm0, %v158_v56, %v11932_v1  ;;  %v10186_v5 = vld [vmem:[#allocation7 + $0x1ac] ss:$16 sps:$4 sm:$0xff]   ;;  %v10188_v6 = vld [vmem:[#allocation7 + $0x1a0] ss:$16 sps:$4 sm:$0xff]   ;;  %v10189_v7 = vld [vmem:[#allocation7 + $0x1a8] ss:$16 sps:$4 sm:$0xff]  }
  0xa9   :  { %5403 = vmatpush1.bf16.msra.mxu0 %v10140_v25  ;;  %5919 = vmatpush1.bf16.msra.mxu1 %v10141_v26  ;;  %v166_v63 = vpack.c.bf16 %v11873_v60, %v164_v62  ;;  %v10190_v8 = vld [vmem:[#allocation7 + $0x1c4] ss:$16 sps:$4 sm:$0xff]   ;;  %v10192_v9 = vld [vmem:[#allocation7 + $0x1cc] ss:$16 sps:$4 sm:$0xff]   ;;  %v10194_v10 = vld [vmem:[#allocation7 + $0x1c0] ss:$16 sps:$4 sm:$0xff]  }
  0xaa   :  { %5404 = vmatprep.subr.bf16.mxu0 %v10142_v27  ;;  %5920 = vmatprep.subr.bf16.mxu1 %v10144_v28  ;;  %152 = vst [vmem:[#allocation20] sm:$0xf] %v150_v61  ;;  %v10195_v11 = vld [vmem:[#allocation7 + $0x1c8] ss:$16 sps:$4 sm:$0xff]   ;;  %v10196_v12 = vld [vmem:[#allocation7 + $0x1e4] ss:$16 sps:$4 sm:$0xff]  }
  0xab   :  { %168 = vst [vmem:[#allocation20 + $0x4] sm:$0xf] %v166_v63  ;;  %v10198_v14 = vld [vmem:[#allocation7 + $0x1ec] ss:$16 sps:$4 sm:$0xff]   ;;  %v10200_v16 = vld [vmem:[#allocation7 + $0x1e0] ss:$16 sps:$4 sm:$0xff]  }
  0xac   :  { %v10201_v17 = vld [vmem:[#allocation7 + $0x1e8] ss:$16 sps:$4 sm:$0xff]   ;;  %v10204_v18 = vld [vmem:[#allocation7 + $0x204] ss:$16 sps:$4 sm:$0xff]   ;;  %v10207_v19 = vld [vmem:[#allocation7 + $0x20c] ss:$16 sps:$4 sm:$0xff]  }
  0xad   :  { %5405 = vmatpush1.bf16.msra.mxu0 %v10146_v29  ;;  %5921 = vmatpush1.bf16.msra.mxu1 %v10147_v30  ;;  %v10202_v21 = vld [vmem:[#allocation7 + $0x200] ss:$16 sps:$4 sm:$0xff]   ;;  %v10205_v22 = vld [vmem:[#allocation7 + $0x208] ss:$16 sps:$4 sm:$0xff]   ;;  %v10210_v23 = vld [vmem:[#allocation7 + $0x224] ss:$16 sps:$4 sm:$0xff]  }
  0xae   :  { %5406 = vmatprep.subr.bf16.mxu0 %v10148_v31  ;;  %5922 = vmatprep.subr.bf16.mxu1 %v10150_v32  ;;  %v10213_v24 = vld [vmem:[#allocation7 + $0x22c] ss:$16 sps:$4 sm:$0xff]   ;;  %v10208_v25 = vld [vmem:[#allocation7 + $0x220] ss:$16 sps:$4 sm:$0xff]   ;;  %v10211_v26 = vld [vmem:[#allocation7 + $0x228] ss:$16 sps:$4 sm:$0xff]  }
  0xaf   :  { %v10216_v27 = vld [vmem:[#allocation7 + $0x244] ss:$16 sps:$4 sm:$0xff]   ;;  %v10219_v28 = vld [vmem:[#allocation7 + $0x24c] ss:$16 sps:$4 sm:$0xff]   ;;  %v10214_v29 = vld [vmem:[#allocation7 + $0x240] ss:$16 sps:$4 sm:$0xff]  }
  0xb0   :  { %v10217_v30 = vld [vmem:[#allocation7 + $0x248] ss:$16 sps:$4 sm:$0xff]   ;;  %v10222_v31 = vld [vmem:[#allocation7 + $0x264] ss:$16 sps:$4 sm:$0xff]   ;;  %v10225_v32 = vld [vmem:[#allocation7 + $0x26c] ss:$16 sps:$4 sm:$0xff]  }
  0xb1   :  { %5407 = vmatpush1.bf16.msra.mxu0 %v10152_v33  ;;  %5923 = vmatpush1.bf16.msra.mxu1 %v10153_v34  ;;  %v10220_v33 = vld [vmem:[#allocation7 + $0x260] ss:$16 sps:$4 sm:$0xff]   ;;  %v10223_v34 = vld [vmem:[#allocation7 + $0x268] ss:$16 sps:$4 sm:$0xff]   ;;  %v10246_v52 = vld [vmem:[#allocation7 + $0x2e4] ss:$16 sps:$4 sm:$0xff]  }
  0xb2   :  { %5408 = vmatprep.subr.bf16.mxu0 %v10154_v35  ;;  %5924 = vmatprep.subr.bf16.mxu1 %v10156_v36  ;;  %v618_v13 = vld [vmem:[#allocation20] sm:$0xff]  ;;  %v10241_v51 = vld [vmem:[#allocation7 + $0x2c8] ss:$16 sps:$4 sm:$0xff]  }
  0xb3   :  { %v8772_v15 = vcombine.high %v618_v13, %v12055_v2  ;;  %v8771_v20 = vcombine.low %v618_v13, %v12055_v2  ;;  %v10228_v35 = vld [vmem:[#allocation7 + $0x284] ss:$16 sps:$4 sm:$0xff]   ;;  %v10231_v36 = vld [vmem:[#allocation7 + $0x28c] ss:$16 sps:$4 sm:$0xff]   ;;  %v10232_v41 = vld [vmem:[#allocation7 + $0x2a0] ss:$16 sps:$4 sm:$0xff]  }
  0xb4   :  { %v10249_v53 = vld [vmem:[#allocation7 + $0x2ec] ss:$16 sps:$4 sm:$0xff]   ;;  %v10247_v59 = vld [vmem:[#allocation7 + $0x2e8] ss:$16 sps:$4 sm:$0xff]   ;;  %v10252_v61 = vld [vmem:[#allocation7 + $0x304] ss:$16 sps:$4 sm:$0xff]  }
  0xb5   :  { %5409 = vmatpush1.bf16.msra.mxu0 %v10158_v37  ;;  %5925 = vmatpush1.bf16.msra.mxu1 %v10159_v38  ;;  %v10226_v37 = vld [vmem:[#allocation7 + $0x280] ss:$16 sps:$4 sm:$0xff]   ;;  %v10229_v38 = vld [vmem:[#allocation7 + $0x288] ss:$16 sps:$4 sm:$0xff]   ;;  %v10255_v62 = vld [vmem:[#allocation7 + $0x30c] ss:$16 sps:$4 sm:$0xff]  }
  0xb6   :  { %5410 = vmatprep.subr.bf16.mxu0 %v10160_v39  ;;  %5926 = vmatprep.subr.bf16.mxu1 %v10162_v40  ;;  %v10234_v39 = vld [vmem:[#allocation7 + $0x2a4] ss:$16 sps:$4 sm:$0xff]   ;;  %v10237_v40 = vld [vmem:[#allocation7 + $0x2ac] ss:$16 sps:$4 sm:$0xff]   ;;  %v10250_v63 = vld [vmem:[#allocation7 + $0x300] ss:$16 sps:$4 sm:$0xff]  }
  0xb7   :  { %5424 = vmatprep.mubr.bf16.mxu0 %v8772_v15  ;;  %5940 = vmatprep.mubr.bf16.mxu1 %v8772_v15  ;;  %v10270_v13 = vld [vmem:[#allocation7 + $0x364] ss:$16 sps:$4 sm:$0xff]   ;;  %v10268_v15 = vld [vmem:[#allocation7 + $0x360] ss:$16 sps:$4 sm:$0xff]  }
  0xb9   :  { %5411 = vmatpush1.bf16.msra.mxu0 %v10164_v42  ;;  %5927 = vmatpush1.bf16.msra.mxu1 %v10165_v43  ;;  %v10235_v42 = vld [vmem:[#allocation7 + $0x2a8] ss:$16 sps:$4 sm:$0xff]   ;;  %v10240_v43 = vld [vmem:[#allocation7 + $0x2c4] ss:$16 sps:$4 sm:$0xff]  }
  0xba   :  { %5412 = vmatprep.subr.bf16.mxu0 %v10166_v44  ;;  %5928 = vmatprep.subr.bf16.mxu1 %v10168_v45  ;;  %v10243_v44 = vld [vmem:[#allocation7 + $0x2cc] ss:$16 sps:$4 sm:$0xff]   ;;  %v8749_v45 = vld [vmem:[%s12365_s8 + $0x2] sm:$0x1] }
  0xbd   :  { %5413 = vmatpush1.bf16.msra.mxu0 %v10170_v47  ;;  %5929 = vmatpush1.bf16.msra.mxu1 %v10171_v48  ;;  %v8750_v47 = vld [vmem:[%s12365_s8 + $0x3] sm:$0x1] }
  0xbe   :  { %5414 = vmatprep.subr.bf16.mxu0 %v10172_v49  ;;  %5930 = vmatprep.subr.bf16.mxu1 %v10174_v50  ;;  %v10238_v48 = vld [vmem:[#allocation7 + $0x2c0] ss:$16 sps:$4 sm:$0xff]   ;;  %v174_v49 = vunpack.c.l.bf16 %v8749_v45  ;;  %v190_v50 = vunpack.c.l.bf16 %v8750_v47  ;;  %v10312_v45 = vld [vmem:[#allocation7 + $0x444] ss:$16 sps:$4 sm:$0xff]   ;;  %v10315_v47 = vld [vmem:[#allocation7 + $0x44c] ss:$16 sps:$4 sm:$0xff]  }
  0xc1   :  { %5415 = vmatpush1.bf16.msra.mxu0 %v10176_v54  ;;  %5931 = vmatpush1.bf16.msra.mxu1 %v10177_v55  ;;  %v180_v54 = vsel %vm148_vm0, %v174_v49, %v11932_v1  ;;  %v196_v55 = vsel %vm148_vm0, %v190_v50, %v11932_v1 }
  0xc2   :  { %5416 = vmatprep.subr.bf16.mxu0 %v10178_v57  ;;  %5932 = vmatprep.subr.bf16.mxu1 %v10180_v58  ;;  %v182_v56 = vpack.c.bf16 %v11873_v60, %v180_v54  ;;  %v198_v57 = vpack.c.bf16 %v11873_v60, %v196_v55  ;;  %v10244_v58 = vld [vmem:[#allocation7 + $0x2e0] ss:$16 sps:$4 sm:$0xff]   ;;  %v10318_v54 = vld [vmem:[#allocation7 + $0x464] ss:$16 sps:$4 sm:$0xff]   ;;  %v10321_v55 = vld [vmem:[#allocation7 + $0x46c] ss:$16 sps:$4 sm:$0xff]  }
  0xc4   :  { %184 = vst [vmem:[#allocation20 + $0x8] sm:$0xf] %v182_v56  ;;  %200 = vst [vmem:[#allocation20 + $0xc] sm:$0xf] %v198_v57  ;;  %v10316_v56 = vld [vmem:[#allocation7 + $0x460] ss:$16 sps:$4 sm:$0xff]  }
  0xc5   :  { %5417 = vmatpush1.bf16.msra.mxu0 %v10182_v0  ;;  %5933 = vmatpush1.bf16.msra.mxu1 %v10183_v3  ;;  %v10253_v0 = vld [vmem:[#allocation7 + $0x308] ss:$16 sps:$4 sm:$0xff]   ;;  %v10258_v3 = vld [vmem:[#allocation7 + $0x324] ss:$16 sps:$4 sm:$0xff]  }
  0xc6   :  { %5418 = vmatprep.subr.bf16.mxu0 %v10184_v4  ;;  %5934 = vmatprep.subr.bf16.mxu1 %v10186_v5  ;;  %v10261_v4 = vld [vmem:[#allocation7 + $0x32c] ss:$16 sps:$4 sm:$0xff]   ;;  %v10319_v57 = vld [vmem:[#allocation7 + $0x468] ss:$16 sps:$4 sm:$0xff]  }
  0xc9   :  { %5419 = vmatpush1.bf16.msra.mxu0 %v10188_v6  ;;  %5935 = vmatpush1.bf16.msra.mxu1 %v10189_v7  ;;  %v10256_v6 = vld [vmem:[#allocation7 + $0x320] ss:$16 sps:$4 sm:$0xff]   ;;  %v10259_v7 = vld [vmem:[#allocation7 + $0x328] ss:$16 sps:$4 sm:$0xff]  }
  0xca   :  { %5420 = vmatprep.subr.bf16.mxu0 %v10190_v8  ;;  %5936 = vmatprep.subr.bf16.mxu1 %v10192_v9  ;;  %v10264_v9 = vld [vmem:[#allocation7 + $0x344] ss:$16 sps:$4 sm:$0xff]  }
  0xcb   :  { %v619_v5 = vld [vmem:[#allocation20 + $0x8] sm:$0xff] }
  0xcc   :  { %v8774_v8 = vcombine.high %v619_v5, %v12055_v2 }
  0xcd   :  { %5421 = vmatpush1.bf16.msra.mxu0 %v10194_v10  ;;  %5937 = vmatpush1.bf16.msra.mxu1 %v10195_v11  ;;  %v10267_v10 = vld [vmem:[#allocation7 + $0x34c] ss:$16 sps:$4 sm:$0xff]   ;;  %v10262_v11 = vld [vmem:[#allocation7 + $0x340] ss:$16 sps:$4 sm:$0xff]  }
  0xce   :  { %5422 = vmatprep.subr.bf16.mxu0 %v10196_v12  ;;  %5938 = vmatprep.subr.bf16.mxu1 %v10198_v14  ;;  %v10265_v12 = vld [vmem:[#allocation7 + $0x348] ss:$16 sps:$4 sm:$0xff]   ;;  %v10273_v14 = vld [vmem:[#allocation7 + $0x36c] ss:$16 sps:$4 sm:$0xff]  }
  0xd1   :  { %5423 = vmatpush1.bf16.msra.mxu0 %v10200_v16  ;;  %5939 = vmatpush1.bf16.msra.mxu1 %v10201_v17  ;;  %v10271_v16 = vld [vmem:[#allocation7 + $0x368] ss:$16 sps:$4 sm:$0xff]   ;;  %v10276_v17 = vld [vmem:[#allocation7 + $0x384] ss:$16 sps:$4 sm:$0xff]  }
  0xd2   :  { %5435 = vmatprep.subr.bf16.mxu0 %v10204_v18  ;;  %5951 = vmatprep.subr.bf16.mxu1 %v10207_v19  ;;  %v10279_v18 = vld [vmem:[#allocation7 + $0x38c] ss:$16 sps:$4 sm:$0xff]   ;;  %v10274_v19 = vld [vmem:[#allocation7 + $0x380] ss:$16 sps:$4 sm:$0xff]  }
  0xd4   :  { %5425 = vmatmul.mubr.bf16.vlgmr.msra.gmra.mrb[0].mxu0 %v8771_v20  ;;  %5941 = vmatmul.mubr.bf16.vlgmr.msra.gmra.mrb[0].mxu1 %v8771_v20  ;;  %v10277_v20 = vld [vmem:[#allocation7 + $0x388] ss:$16 sps:$4 sm:$0xff]  }
  0xd5   :  { %5436 = vmatpush1.bf16.msra.mxu0 %v10202_v21  ;;  %5952 = vmatpush1.bf16.msra.mxu1 %v10205_v22  ;;  %v10282_v21 = vld [vmem:[#allocation7 + $0x3a4] ss:$16 sps:$4 sm:$0xff]   ;;  %v10285_v22 = vld [vmem:[#allocation7 + $0x3ac] ss:$16 sps:$4 sm:$0xff]  }
  0xd6   :  { %5437 = vmatprep.subr.bf16.mxu0 %v10210_v23  ;;  %5953 = vmatprep.subr.bf16.mxu1 %v10213_v24  ;;  %v10280_v23 = vld [vmem:[#allocation7 + $0x3a0] ss:$16 sps:$4 sm:$0xff]   ;;  %v10283_v24 = vld [vmem:[#allocation7 + $0x3a8] ss:$16 sps:$4 sm:$0xff]  }
  0xd7   :  { %5467 = vmatprep.mubr.bf16.mxu0 %v8774_v8  ;;  %5983 = vmatprep.mubr.bf16.mxu1 %v8774_v8  ;;  %v10336_v8 = vld [vmem:[#allocation7 + $0x4c4] ss:$16 sps:$4 sm:$0xff]  }
  0xd9   :  { %5438 = vmatpush1.bf16.msra.mxu0 %v10208_v25  ;;  %5954 = vmatpush1.bf16.msra.mxu1 %v10211_v26  ;;  %v10288_v25 = vld [vmem:[#allocation7 + $0x3c4] ss:$16 sps:$4 sm:$0xff]   ;;  %v10291_v26 = vld [vmem:[#allocation7 + $0x3cc] ss:$16 sps:$4 sm:$0xff]  }
  0xda   :  { %5439 = vmatprep.subr.bf16.mxu0 %v10216_v27  ;;  %5955 = vmatprep.subr.bf16.mxu1 %v10219_v28  ;;  %v10286_v27 = vld [vmem:[#allocation7 + $0x3c0] ss:$16 sps:$4 sm:$0xff]   ;;  %v10289_v28 = vld [vmem:[#allocation7 + $0x3c8] ss:$16 sps:$4 sm:$0xff]  }
  0xdd   :  { %5440 = vmatpush1.bf16.msra.mxu0 %v10214_v29  ;;  %5956 = vmatpush1.bf16.msra.mxu1 %v10217_v30  ;;  %v10294_v29 = vld [vmem:[#allocation7 + $0x3e4] ss:$16 sps:$4 sm:$0xff]   ;;  %v10297_v30 = vld [vmem:[#allocation7 + $0x3ec] ss:$16 sps:$4 sm:$0xff]  }
  0xde   :  { %5441 = vmatprep.subr.bf16.mxu0 %v10222_v31  ;;  %5957 = vmatprep.subr.bf16.mxu1 %v10225_v32  ;;  %v10292_v31 = vld [vmem:[#allocation7 + $0x3e0] ss:$16 sps:$4 sm:$0xff]   ;;  %v10295_v32 = vld [vmem:[#allocation7 + $0x3e8] ss:$16 sps:$4 sm:$0xff]  }
  0xe1   :  { %5442 = vmatpush1.bf16.msra.mxu0 %v10220_v33  ;;  %5958 = vmatpush1.bf16.msra.mxu1 %v10223_v34  ;;  %v10300_v33 = vld [vmem:[#allocation7 + $0x404] ss:$16 sps:$4 sm:$0xff]   ;;  %v10303_v34 = vld [vmem:[#allocation7 + $0x40c] ss:$16 sps:$4 sm:$0xff]  }
  0xe2   :  { %5443 = vmatprep.subr.bf16.mxu0 %v10228_v35  ;;  %5959 = vmatprep.subr.bf16.mxu1 %v10231_v36  ;;  %v8773_v35 = vcombine.low %v619_v5, %v12055_v2  ;;  %v10298_v36 = vld [vmem:[#allocation7 + $0x400] ss:$16 sps:$4 sm:$0xff]   ;;  %v10307_v2 = vld [vmem:[#allocation7 + $0x428] ss:$16 sps:$4 sm:$0xff]   ;;  %v10333_v5 = vld [vmem:[#allocation7 + $0x4ac] ss:$16 sps:$4 sm:$0xff]  }
  0xe5   :  { %5444 = vmatpush1.bf16.msra.mxu0 %v10226_v37  ;;  %5960 = vmatpush1.bf16.msra.mxu1 %v10229_v38  ;;  %v10301_v37 = vld [vmem:[#allocation7 + $0x408] ss:$16 sps:$4 sm:$0xff]   ;;  %v10306_v38 = vld [vmem:[#allocation7 + $0x424] ss:$16 sps:$4 sm:$0xff]  }
  0xe6   :  { %5445 = vmatprep.subr.bf16.mxu0 %v10234_v39  ;;  %5961 = vmatprep.subr.bf16.mxu1 %v10237_v40  ;;  %v10309_v39 = vld [vmem:[#allocation7 + $0x42c] ss:$16 sps:$4 sm:$0xff]   ;;  %v8751_v40 = vld [vmem:[%s12365_s8 + $0x4] sm:$0x1] }
  0xe9   :  { %5446 = vmatpush1.bf16.msra.mxu0 %v10232_v41  ;;  %5962 = vmatpush1.bf16.msra.mxu1 %v10235_v42  ;;  %v8752_v41 = vld [vmem:[%s12365_s8 + $0x5] sm:$0x1]  ;;  %v10304_v42 = vld [vmem:[#allocation7 + $0x420] ss:$16 sps:$4 sm:$0xff]  }
  0xea   :  { %5447 = vmatprep.subr.bf16.mxu0 %v10240_v43  ;;  %5963 = vmatprep.subr.bf16.mxu1 %v10243_v44  ;;  %v206_v43 = vunpack.c.l.bf16 %v8751_v40  ;;  %v222_v44 = vunpack.c.l.bf16 %v8752_v41  ;;  %v10378_v40 = vld [vmem:[#allocation7 + $0x5a4] ss:$16 sps:$4 sm:$0xff]  }
  0xec   :  { %v228_v49 = vsel %vm148_vm0, %v222_v44, %v11932_v1 }
  0xed   :  { %5448 = vmatpush1.bf16.msra.mxu0 %v10238_v48  ;;  %5964 = vmatpush1.bf16.msra.mxu1 %v10241_v51  ;;  %v212_v48 = vsel %vm148_vm0, %v206_v43, %v11932_v1  ;;  %v230_v51 = vpack.c.bf16 %v11873_v60, %v228_v49  ;;  %v10387_v49 = vld [vmem:[#allocation7 + $0x5cc] ss:$16 sps:$4 sm:$0xff]  }
  0xee   :  { %5449 = vmatprep.subr.bf16.mxu0 %v10246_v52  ;;  %5965 = vmatprep.subr.bf16.mxu1 %v10249_v53  ;;  %v214_v50 = vpack.c.bf16 %v11873_v60, %v212_v48  ;;  %v10310_v52 = vld [vmem:[#allocation7 + $0x440] ss:$16 sps:$4 sm:$0xff]   ;;  %v10313_v53 = vld [vmem:[#allocation7 + $0x448] ss:$16 sps:$4 sm:$0xff]   ;;  %v10384_v48 = vld [vmem:[#allocation7 + $0x5c4] ss:$16 sps:$4 sm:$0xff]  }
  0xef   :  { %232 = vst [vmem:[#allocation20 + $0x14] sm:$0xf] %v230_v51  ;;  %v10385_v51 = vld [vmem:[#allocation7 + $0x5c8] ss:$16 sps:$4 sm:$0xff]  }
  0xf0   :  { %216 = vst [vmem:[#allocation20 + $0x10] sm:$0xf] %v214_v50  ;;  %v10382_v50 = vld [vmem:[#allocation7 + $0x5c0] ss:$16 sps:$4 sm:$0xff]  }
  0xf1   :  { %5450 = vmatpush1.bf16.msra.mxu0 %v10244_v58  ;;  %5966 = vmatpush1.bf16.msra.mxu1 %v10247_v59  ;;  %v10324_v58 = vld [vmem:[#allocation7 + $0x484] ss:$16 sps:$4 sm:$0xff]   ;;  %v10327_v59 = vld [vmem:[#allocation7 + $0x48c] ss:$16 sps:$4 sm:$0xff]  }
  0xf2   :  { %5451 = vmatprep.subr.bf16.mxu0 %v10252_v61  ;;  %5967 = vmatprep.subr.bf16.mxu1 %v10255_v62  ;;  %v10322_v61 = vld [vmem:[#allocation7 + $0x480] ss:$16 sps:$4 sm:$0xff]  }
  0xf5   :  { %5452 = vmatpush1.bf16.msra.mxu0 %v10250_v63  ;;  %5968 = vmatpush1.bf16.msra.mxu1 %v10253_v0  ;;  %v10325_v63 = vld [vmem:[#allocation7 + $0x488] ss:$16 sps:$4 sm:$0xff]   ;;  %v12118_v0 = vld [vmem:[#allocation20 + $0x60] sm:$0xff] }
  0xf6   :  { %5453 = vmatprep.subr.bf16.mxu0 %v10258_v3  ;;  %5969 = vmatprep.subr.bf16.mxu1 %v10261_v4  ;;  %v10330_v4 = vld [vmem:[#allocation7 + $0x4a4] ss:$16 sps:$4 sm:$0xff]  }
  0xf7   :  { %v12116_v62 = vld [vmem:[#allocation20 + $0x10] sm:$0xff] }
  0xf8   :  { %v8776_v3 = vcombine.high %v12116_v62, %v12118_v0 }
  0xf9   :  { %5454 = vmatpush1.bf16.msra.mxu0 %v10256_v6  ;;  %5970 = vmatpush1.bf16.msra.mxu1 %v10259_v7  ;;  %v10328_v6 = vld [vmem:[#allocation7 + $0x4a0] ss:$16 sps:$4 sm:$0xff]   ;;  %v10331_v7 = vld [vmem:[#allocation7 + $0x4a8] ss:$16 sps:$4 sm:$0xff]  }
  0xfa   :  { %5455 = vmatprep.subr.bf16.mxu0 %v10264_v9  ;;  %5971 = vmatprep.subr.bf16.mxu1 %v10267_v10  ;;  %v10339_v9 = vld [vmem:[#allocation7 + $0x4cc] ss:$16 sps:$4 sm:$0xff]   ;;  %v10334_v10 = vld [vmem:[#allocation7 + $0x4c0] ss:$16 sps:$4 sm:$0xff]  }
  0xfd   :  { %5456 = vmatpush1.bf16.msra.mxu0 %v10262_v11  ;;  %5972 = vmatpush1.bf16.msra.mxu1 %v10265_v12  ;;  %v10337_v11 = vld [vmem:[#allocation7 + $0x4c8] ss:$16 sps:$4 sm:$0xff]   ;;  %v10342_v12 = vld [vmem:[#allocation7 + $0x4e4] ss:$16 sps:$4 sm:$0xff]  }
  0xfe   :  { %5457 = vmatprep.subr.bf16.mxu0 %v10270_v13  ;;  %5973 = vmatprep.subr.bf16.mxu1 %v10273_v14  ;;  %v10345_v13 = vld [vmem:[#allocation7 + $0x4ec] ss:$16 sps:$4 sm:$0xff]   ;;  %v10340_v14 = vld [vmem:[#allocation7 + $0x4e0] ss:$16 sps:$4 sm:$0xff]  }
 0x101   :  { %5458 = vmatpush1.bf16.msra.mxu0 %v10268_v15  ;;  %5974 = vmatpush1.bf16.msra.mxu1 %v10271_v16  ;;  %v10343_v15 = vld [vmem:[#allocation7 + $0x4e8] ss:$16 sps:$4 sm:$0xff]   ;;  %v10348_v16 = vld [vmem:[#allocation7 + $0x504] ss:$16 sps:$4 sm:$0xff]  }
 0x102   :  { %5459 = vmatprep.subr.bf16.mxu0 %v10276_v17  ;;  %5975 = vmatprep.subr.bf16.mxu1 %v10279_v18  ;;  %v10351_v17 = vld [vmem:[#allocation7 + $0x50c] ss:$16 sps:$4 sm:$0xff]   ;;  %v10346_v18 = vld [vmem:[#allocation7 + $0x500] ss:$16 sps:$4 sm:$0xff]  }
 0x105   :  { %5460 = vmatpush1.bf16.msra.mxu0 %v10274_v19  ;;  %5976 = vmatpush1.bf16.msra.mxu1 %v10277_v20  ;;  %v10349_v19 = vld [vmem:[#allocation7 + $0x508] ss:$16 sps:$4 sm:$0xff]   ;;  %v10354_v20 = vld [vmem:[#allocation7 + $0x524] ss:$16 sps:$4 sm:$0xff]  }
 0x106   :  { %5461 = vmatprep.subr.bf16.mxu0 %v10282_v21  ;;  %5977 = vmatprep.subr.bf16.mxu1 %v10285_v22  ;;  %v10357_v21 = vld [vmem:[#allocation7 + $0x52c] ss:$16 sps:$4 sm:$0xff]   ;;  %v10352_v22 = vld [vmem:[#allocation7 + $0x520] ss:$16 sps:$4 sm:$0xff]  }
 0x109   :  { %5462 = vmatpush1.bf16.msra.mxu0 %v10280_v23  ;;  %5978 = vmatpush1.bf16.msra.mxu1 %v10283_v24  ;;  %v10355_v23 = vld [vmem:[#allocation7 + $0x528] ss:$16 sps:$4 sm:$0xff]   ;;  %v10360_v24 = vld [vmem:[#allocation7 + $0x544] ss:$16 sps:$4 sm:$0xff]  }
 0x10a   :  { %5463 = vmatprep.subr.bf16.mxu0 %v10288_v25  ;;  %5979 = vmatprep.subr.bf16.mxu1 %v10291_v26  ;;  %v10363_v25 = vld [vmem:[#allocation7 + $0x54c] ss:$16 sps:$4 sm:$0xff]   ;;  %v10358_v26 = vld [vmem:[#allocation7 + $0x540] ss:$16 sps:$4 sm:$0xff]  }
 0x10d   :  { %5464 = vmatpush1.bf16.msra.mxu0 %v10286_v27  ;;  %5980 = vmatpush1.bf16.msra.mxu1 %v10289_v28  ;;  %v10361_v27 = vld [vmem:[#allocation7 + $0x548] ss:$16 sps:$4 sm:$0xff]   ;;  %v10366_v28 = vld [vmem:[#allocation7 + $0x564] ss:$16 sps:$4 sm:$0xff]  }
 0x10e   :  { %5465 = vmatprep.subr.bf16.mxu0 %v10294_v29  ;;  %5981 = vmatprep.subr.bf16.mxu1 %v10297_v30  ;;  %v10369_v29 = vld [vmem:[#allocation7 + $0x56c] ss:$16 sps:$4 sm:$0xff]   ;;  %v10364_v30 = vld [vmem:[#allocation7 + $0x560] ss:$16 sps:$4 sm:$0xff]  }
 0x111   :  { %5466 = vmatpush1.bf16.msra.mxu0 %v10292_v31  ;;  %5982 = vmatpush1.bf16.msra.mxu1 %v10295_v32  ;;  %v10367_v31 = vld [vmem:[#allocation7 + $0x568] ss:$16 sps:$4 sm:$0xff]   ;;  %v10372_v32 = vld [vmem:[#allocation7 + $0x584] ss:$16 sps:$4 sm:$0xff]  }
 0x112   :  { %5478 = vmatprep.subr.bf16.mxu0 %v10300_v33  ;;  %5994 = vmatprep.subr.bf16.mxu1 %v10303_v34  ;;  %v10375_v33 = vld [vmem:[#allocation7 + $0x58c] ss:$16 sps:$4 sm:$0xff]   ;;  %v8753_v34 = vld [vmem:[%s12365_s8 + $0x6] sm:$0x1] }
 0x114   :  { %5468 = vmatmul.mubr.bf16.vlgmr.msra.gmra.mrb[0].mxu0 %v8773_v35  ;;  %5984 = vmatmul.mubr.bf16.vlgmr.msra.gmra.mrb[0].mxu1 %v8773_v35  ;;  %v238_v35 = vunpack.c.l.bf16 %v8753_v34 }
 0x115   :  { %5479 = vmatpush1.bf16.msra.mxu0 %v10298_v36  ;;  %5995 = vmatpush1.bf16.msra.mxu1 %v10301_v37  ;;  %v8754_v36 = vld [vmem:[%s12365_s8 + $0x7] sm:$0x1]  ;;  %v10370_v37 = vld [vmem:[#allocation7 + $0x580] ss:$16 sps:$4 sm:$0xff]  }
 0x116   :  { %5480 = vmatprep.subr.bf16.mxu0 %v10306_v38  ;;  %5996 = vmatprep.subr.bf16.mxu1 %v10309_v39  ;;  %v10373_v38 = vld [vmem:[#allocation7 + $0x588] ss:$16 sps:$4 sm:$0xff]   ;;  %v254_v39 = vunpack.c.l.bf16 %v8754_v36  ;;  %v244_v41 = vsel %vm148_vm0, %v238_v35, %v11932_v1  ;;  %v10444_v35 = vld [vmem:[#allocation7 + $0x704] ss:$16 sps:$4 sm:$0xff]  }
 0x117   :  { %5510 = vmatprep.mubr.bf16.mxu0 %v8776_v3  ;;  %6026 = vmatprep.mubr.bf16.mxu1 %v8776_v3  ;;  %v10397_v3 = vld [vmem:[#allocation7 + $0x608] ss:$16 sps:$4 sm:$0xff]  }
 0x118   :  { %v260_v43 = vsel %vm148_vm0, %v254_v39, %v11932_v1 }
 0x119   :  { %5481 = vmatpush1.bf16.msra.mxu0 %v10304_v42  ;;  %5997 = vmatpush1.bf16.msra.mxu1 %v10307_v2  ;;  %v10381_v42 = vld [vmem:[#allocation7 + $0x5ac] ss:$16 sps:$4 sm:$0xff]   ;;  %v246_v2 = vpack.c.bf16 %v11873_v60, %v244_v41  ;;  %v262_v44 = vpack.c.bf16 %v11873_v60, %v260_v43  ;;  %v10442_v41 = vld [vmem:[#allocation7 + $0x700] ss:$16 sps:$4 sm:$0xff]  }
 0x11a   :  { %5482 = vmatprep.subr.bf16.mxu0 %v10312_v45  ;;  %5998 = vmatprep.subr.bf16.mxu1 %v10315_v47  ;;  %v10376_v45 = vld [vmem:[#allocation7 + $0x5a0] ss:$16 sps:$4 sm:$0xff]   ;;  %v10379_v47 = vld [vmem:[#allocation7 + $0x5a8] ss:$16 sps:$4 sm:$0xff]   ;;  %v10453_v43 = vld [vmem:[#allocation7 + $0x72c] ss:$16 sps:$4 sm:$0xff]  }
 0x11b   :  { %248 = vst [vmem:[#allocation20 + $0x18] sm:$0xf] %v246_v2  ;;  %264 = vst [vmem:[#allocation20 + $0x1c] sm:$0xf] %v262_v44  ;;  %v10450_v2 = vld [vmem:[#allocation7 + $0x724] ss:$16 sps:$4 sm:$0xff]  }
 0x11c   :  { %v10448_v44 = vld [vmem:[#allocation7 + $0x720] ss:$16 sps:$4 sm:$0xff]  }
 0x11d   :  { %5483 = vmatpush1.bf16.msra.mxu0 %v10310_v52  ;;  %5999 = vmatpush1.bf16.msra.mxu1 %v10313_v53  ;;  %v10390_v52 = vld [vmem:[#allocation7 + $0x5e4] ss:$16 sps:$4 sm:$0xff]   ;;  %v10393_v53 = vld [vmem:[#allocation7 + $0x5ec] ss:$16 sps:$4 sm:$0xff]  }
 0x11e   :  { %5484 = vmatprep.subr.bf16.mxu0 %v10318_v54  ;;  %6000 = vmatprep.subr.bf16.mxu1 %v10321_v55  ;;  %v10388_v54 = vld [vmem:[#allocation7 + $0x5e0] ss:$16 sps:$4 sm:$0xff]   ;;  %v10391_v55 = vld [vmem:[#allocation7 + $0x5e8] ss:$16 sps:$4 sm:$0xff]  }
 0x121   :  { %5485 = vmatpush1.bf16.msra.mxu0 %v10316_v56  ;;  %6001 = vmatpush1.bf16.msra.mxu1 %v10319_v57  ;;  %v10396_v56 = vld [vmem:[#allocation7 + $0x604] ss:$16 sps:$4 sm:$0xff]   ;;  %v10399_v57 = vld [vmem:[#allocation7 + $0x60c] ss:$16 sps:$4 sm:$0xff]  }
 0x122   :  { %5486 = vmatprep.subr.bf16.mxu0 %v10324_v58  ;;  %6002 = vmatprep.subr.bf16.mxu1 %v10327_v59  ;;  %v10394_v58 = vld [vmem:[#allocation7 + $0x600] ss:$16 sps:$4 sm:$0xff]   ;;  %v12136_v59 = vld [vmem:[#allocation20 + $0x78] sm:$0xff] }
 0x125   :  { %5487 = vmatpush1.bf16.msra.mxu0 %v10322_v61  ;;  %6003 = vmatpush1.bf16.msra.mxu1 %v10325_v63  ;;  %v8775_v61 = vcombine.low %v12116_v62, %v12118_v0  ;;  %v12140_v63 = vld [vmem:[#allocation20 + $0x18] sm:$0xff] }
 0x126   :  { %5488 = vmatprep.subr.bf16.mxu0 %v10330_v4  ;;  %6004 = vmatprep.subr.bf16.mxu1 %v10333_v5  ;;  %v10402_v4 = vld [vmem:[#allocation7 + $0x624] ss:$16 sps:$4 sm:$0xff]   ;;  %v10405_v5 = vld [vmem:[#allocation7 + $0x62c] ss:$16 sps:$4 sm:$0xff]  }
 0x127   :  { %v10408_v62 = vld [vmem:[#allocation7 + $0x644] ss:$16 sps:$4 sm:$0xff]   ;;  %v10411_v0 = vld [vmem:[#allocation7 + $0x64c] ss:$16 sps:$4 sm:$0xff]  }
 0x129   :  { %5489 = vmatpush1.bf16.msra.mxu0 %v10328_v6  ;;  %6005 = vmatpush1.bf16.msra.mxu1 %v10331_v7  ;;  %v8778_v6 = vcombine.high %v12140_v63, %v12136_v59  ;;  %v10400_v7 = vld [vmem:[#allocation7 + $0x620] ss:$16 sps:$4 sm:$0xff]  }
 0x12a   :  { %5490 = vmatprep.subr.bf16.mxu0 %v10336_v8  ;;  %6006 = vmatprep.subr.bf16.mxu1 %v10339_v9  ;;  %v10403_v8 = vld [vmem:[#allocation7 + $0x628] ss:$16 sps:$4 sm:$0xff]   ;;  %v10406_v9 = vld [vmem:[#allocation7 + $0x640] ss:$16 sps:$4 sm:$0xff]  }
 0x12d   :  { %5491 = vmatpush1.bf16.msra.mxu0 %v10334_v10  ;;  %6007 = vmatpush1.bf16.msra.mxu1 %v10337_v11  ;;  %v10409_v10 = vld [vmem:[#allocation7 + $0x648] ss:$16 sps:$4 sm:$0xff]   ;;  %v10414_v11 = vld [vmem:[#allocation7 + $0x664] ss:$16 sps:$4 sm:$0xff]  }
 0x12e   :  { %5492 = vmatprep.subr.bf16.mxu0 %v10342_v12  ;;  %6008 = vmatprep.subr.bf16.mxu1 %v10345_v13  ;;  %v10417_v12 = vld [vmem:[#allocation7 + $0x66c] ss:$16 sps:$4 sm:$0xff]   ;;  %v10412_v13 = vld [vmem:[#allocation7 + $0x660] ss:$16 sps:$4 sm:$0xff]  }
 0x131   :  { %5493 = vmatpush1.bf16.msra.mxu0 %v10340_v14  ;;  %6009 = vmatpush1.bf16.msra.mxu1 %v10343_v15  ;;  %v10415_v14 = vld [vmem:[#allocation7 + $0x668] ss:$16 sps:$4 sm:$0xff]   ;;  %v10420_v15 = vld [vmem:[#allocation7 + $0x684] ss:$16 sps:$4 sm:$0xff]  }
 0x132   :  { %5494 = vmatprep.subr.bf16.mxu0 %v10348_v16  ;;  %6010 = vmatprep.subr.bf16.mxu1 %v10351_v17  ;;  %v10423_v16 = vld [vmem:[#allocation7 + $0x68c] ss:$16 sps:$4 sm:$0xff]   ;;  %v10418_v17 = vld [vmem:[#allocation7 + $0x680] ss:$16 sps:$4 sm:$0xff]  }
 0x135   :  { %5495 = vmatpush1.bf16.msra.mxu0 %v10346_v18  ;;  %6011 = vmatpush1.bf16.msra.mxu1 %v10349_v19  ;;  %v10421_v18 = vld [vmem:[#allocation7 + $0x688] ss:$16 sps:$4 sm:$0xff]   ;;  %v10426_v19 = vld [vmem:[#allocation7 + $0x6a4] ss:$16 sps:$4 sm:$0xff]  }
 0x136   :  { %5496 = vmatprep.subr.bf16.mxu0 %v10354_v20  ;;  %6012 = vmatprep.subr.bf16.mxu1 %v10357_v21  ;;  %v10429_v20 = vld [vmem:[#allocation7 + $0x6ac] ss:$16 sps:$4 sm:$0xff]   ;;  %v10424_v21 = vld [vmem:[#allocation7 + $0x6a0] ss:$16 sps:$4 sm:$0xff]  }
 0x139   :  { %5497 = vmatpush1.bf16.msra.mxu0 %v10352_v22  ;;  %6013 = vmatpush1.bf16.msra.mxu1 %v10355_v23  ;;  %v10427_v22 = vld [vmem:[#allocation7 + $0x6a8] ss:$16 sps:$4 sm:$0xff]   ;;  %v10432_v23 = vld [vmem:[#allocation7 + $0x6c4] ss:$16 sps:$4 sm:$0xff]  }
 0x13a   :  { %5498 = vmatprep.subr.bf16.mxu0 %v10360_v24  ;;  %6014 = vmatprep.subr.bf16.mxu1 %v10363_v25  ;;  %v10435_v24 = vld [vmem:[#allocation7 + $0x6cc] ss:$16 sps:$4 sm:$0xff]   ;;  %v10430_v25 = vld [vmem:[#allocation7 + $0x6c0] ss:$16 sps:$4 sm:$0xff]  }
 0x13d   :  { %5499 = vmatpush1.bf16.msra.mxu0 %v10358_v26  ;;  %6015 = vmatpush1.bf16.msra.mxu1 %v10361_v27  ;;  %v10433_v26 = vld [vmem:[#allocation7 + $0x6c8] ss:$16 sps:$4 sm:$0xff]   ;;  %v10438_v27 = vld [vmem:[#allocation7 + $0x6e4] ss:$16 sps:$4 sm:$0xff]  }
 0x13e   :  { %5500 = vmatprep.subr.bf16.mxu0 %v10366_v28  ;;  %6016 = vmatprep.subr.bf16.mxu1 %v10369_v29  ;;  %v10441_v28 = vld [vmem:[#allocation7 + $0x6ec] ss:$16 sps:$4 sm:$0xff]   ;;  %v8755_v29 = vld [vmem:[%s12365_s8 + $0x8] sm:$0x1] }
 0x141   :  { %5501 = vmatpush1.bf16.msra.mxu0 %v10364_v30  ;;  %6017 = vmatpush1.bf16.msra.mxu1 %v10367_v31  ;;  %v270_v30 = vunpack.c.l.bf16 %v8755_v29  ;;  %v8756_v31 = vld [vmem:[%s12365_s8 + $0x9] sm:$0x1] }
 0x142   :  { %5502 = vmatprep.subr.bf16.mxu0 %v10372_v32  ;;  %6018 = vmatprep.subr.bf16.mxu1 %v10375_v33  ;;  %v10436_v32 = vld [vmem:[#allocation7 + $0x6e0] ss:$16 sps:$4 sm:$0xff]   ;;  %v10439_v33 = vld [vmem:[#allocation7 + $0x6e8] ss:$16 sps:$4 sm:$0xff]   ;;  %v286_v34 = vunpack.c.l.bf16 %v8756_v31 }
 0x143   :  { %v276_v36 = vsel %vm148_vm0, %v270_v30, %v11932_v1  ;;  %v10510_v30 = vld [vmem:[#allocation7 + $0x864] ss:$16 sps:$4 sm:$0xff]  }
 0x144   :  { %v292_v39 = vsel %vm148_vm0, %v286_v34, %v11932_v1 }
 0x145   :  { %5503 = vmatpush1.bf16.msra.mxu0 %v10370_v37  ;;  %6019 = vmatpush1.bf16.msra.mxu1 %v10373_v38  ;;  %v10447_v37 = vld [vmem:[#allocation7 + $0x70c] ss:$16 sps:$4 sm:$0xff]   ;;  %v278_v38 = vpack.c.bf16 %v11873_v60, %v276_v36  ;;  %v10508_v36 = vld [vmem:[#allocation7 + $0x860] ss:$16 sps:$4 sm:$0xff]  }
 0x146   :  { %5504 = vmatprep.subr.bf16.mxu0 %v10378_v40  ;;  %6020 = vmatprep.subr.bf16.mxu1 %v10381_v42  ;;  %v294_v40 = vpack.c.bf16 %v11873_v60, %v292_v39  ;;  %v10445_v42 = vld [vmem:[#allocation7 + $0x708] ss:$16 sps:$4 sm:$0xff]   ;;  %v10519_v39 = vld [vmem:[#allocation7 + $0x88c] ss:$16 sps:$4 sm:$0xff]  }
 0x147   :  { %280 = vst [vmem:[#allocation20 + $0x20] sm:$0xf] %v278_v38  ;;  %v10516_v38 = vld [vmem:[#allocation7 + $0x884] ss:$16 sps:$4 sm:$0xff]  }
 0x148   :  { %296 = vst [vmem:[#allocation20 + $0x24] sm:$0xf] %v294_v40  ;;  %v10514_v40 = vld [vmem:[#allocation7 + $0x880] ss:$16 sps:$4 sm:$0xff]  }
 0x149   :  { %5505 = vmatpush1.bf16.msra.mxu0 %v10376_v45  ;;  %6021 = vmatpush1.bf16.msra.mxu1 %v10379_v47  ;;  %v10451_v45 = vld [vmem:[#allocation7 + $0x728] ss:$16 sps:$4 sm:$0xff]   ;;  %v10456_v47 = vld [vmem:[#allocation7 + $0x744] ss:$16 sps:$4 sm:$0xff]  }
 0x14a   :  { %5506 = vmatprep.subr.bf16.mxu0 %v10384_v48  ;;  %6022 = vmatprep.subr.bf16.mxu1 %v10387_v49  ;;  %v10459_v48 = vld [vmem:[#allocation7 + $0x74c] ss:$16 sps:$4 sm:$0xff]   ;;  %v10454_v49 = vld [vmem:[#allocation7 + $0x740] ss:$16 sps:$4 sm:$0xff]  }
 0x14d   :  { %5507 = vmatpush1.bf16.msra.mxu0 %v10382_v50  ;;  %6023 = vmatpush1.bf16.msra.mxu1 %v10385_v51  ;;  %v10457_v50 = vld [vmem:[#allocation7 + $0x748] ss:$16 sps:$4 sm:$0xff]   ;;  %v10462_v51 = vld [vmem:[#allocation7 + $0x764] ss:$16 sps:$4 sm:$0xff]  }
 0x14e   :  { %5508 = vmatprep.subr.bf16.mxu0 %v10390_v52  ;;  %6024 = vmatprep.subr.bf16.mxu1 %v10393_v53  ;;  %v10465_v52 = vld [vmem:[#allocation7 + $0x76c] ss:$16 sps:$4 sm:$0xff]   ;;  %v10460_v53 = vld [vmem:[#allocation7 + $0x760] ss:$16 sps:$4 sm:$0xff]  }
 0x151   :  { %5509 = vmatpush1.bf16.msra.mxu0 %v10388_v54  ;;  %6025 = vmatpush1.bf16.msra.mxu1 %v10391_v55  ;;  %v10463_v54 = vld [vmem:[#allocation7 + $0x768] ss:$16 sps:$4 sm:$0xff]   ;;  %v10468_v55 = vld [vmem:[#allocation7 + $0x784] ss:$16 sps:$4 sm:$0xff]  }
 0x152   :  { %5521 = vmatprep.subr.bf16.mxu0 %v10396_v56  ;;  %6037 = vmatprep.subr.bf16.mxu1 %v10399_v57  ;;  %v10471_v56 = vld [vmem:[#allocation7 + $0x78c] ss:$16 sps:$4 sm:$0xff]   ;;  %v10466_v57 = vld [vmem:[#allocation7 + $0x780] ss:$16 sps:$4 sm:$0xff]  }
 0x154   :  { %5511 = vmatmul.mubr.bf16.vlgmr.msra.gmra.mrb[0].mxu0 %v8775_v61  ;;  %6027 = vmatmul.mubr.bf16.vlgmr.msra.gmra.mrb[0].mxu1 %v8775_v61  ;;  %v10474_v61 = vld [vmem:[#allocation7 + $0x7a4] ss:$16 sps:$4 sm:$0xff]  }
 0x155   :  { %5522 = vmatpush1.bf16.msra.mxu0 %v10394_v58  ;;  %6038 = vmatpush1.bf16.msra.mxu1 %v10397_v3  ;;  %v10469_v58 = vld [vmem:[#allocation7 + $0x788] ss:$16 sps:$4 sm:$0xff]   ;;  %v10477_v3 = vld [vmem:[#allocation7 + $0x7ac] ss:$16 sps:$4 sm:$0xff]  }
 0x156   :  { %5523 = vmatprep.subr.bf16.mxu0 %v10402_v4  ;;  %6039 = vmatprep.subr.bf16.mxu1 %v10405_v5  ;;  %v10472_v4 = vld [vmem:[#allocation7 + $0x7a0] ss:$16 sps:$4 sm:$0xff]   ;;  %v10475_v5 = vld [vmem:[#allocation7 + $0x7a8] ss:$16 sps:$4 sm:$0xff]  }
 0x157   :  { %5553 = vmatprep.mubr.bf16.mxu0 %v8778_v6  ;;  %6069 = vmatprep.mubr.bf16.mxu1 %v8778_v6  ;;  %v10480_v6 = vld [vmem:[#allocation7 + $0x7c4] ss:$16 sps:$4 sm:$0xff]  }
 0x159   :  { %5524 = vmatpush1.bf16.msra.mxu0 %v10400_v7  ;;  %6040 = vmatpush1.bf16.msra.mxu1 %v10403_v8  ;;  %v10483_v7 = vld [vmem:[#allocation7 + $0x7cc] ss:$16 sps:$4 sm:$0xff]   ;;  %v10478_v8 = vld [vmem:[#allocation7 + $0x7c0] ss:$16 sps:$4 sm:$0xff]  }
 0x15a   :  { %5525 = vmatprep.subr.bf16.mxu0 %v10408_v62  ;;  %6041 = vmatprep.subr.bf16.mxu1 %v10411_v0  ;;  %v10481_v62 = vld [vmem:[#allocation7 + $0x7c8] ss:$16 sps:$4 sm:$0xff]   ;;  %v10486_v0 = vld [vmem:[#allocation7 + $0x7e4] ss:$16 sps:$4 sm:$0xff]  }
 0x15d   :  { %5526 = vmatpush1.bf16.msra.mxu0 %v10406_v9  ;;  %6042 = vmatpush1.bf16.msra.mxu1 %v10409_v10  ;;  %v10489_v9 = vld [vmem:[#allocation7 + $0x7ec] ss:$16 sps:$4 sm:$0xff]   ;;  %v10484_v10 = vld [vmem:[#allocation7 + $0x7e0] ss:$16 sps:$4 sm:$0xff]  }
 0x15e   :  { %5527 = vmatprep.subr.bf16.mxu0 %v10414_v11  ;;  %6043 = vmatprep.subr.bf16.mxu1 %v10417_v12  ;;  %v10487_v11 = vld [vmem:[#allocation7 + $0x7e8] ss:$16 sps:$4 sm:$0xff]   ;;  %v10492_v12 = vld [vmem:[#allocation7 + $0x804] ss:$16 sps:$4 sm:$0xff]  }
 0x161   :  { %5528 = vmatpush1.bf16.msra.mxu0 %v10412_v13  ;;  %6044 = vmatpush1.bf16.msra.mxu1 %v10415_v14  ;;  %v10495_v13 = vld [vmem:[#allocation7 + $0x80c] ss:$16 sps:$4 sm:$0xff]   ;;  %v10490_v14 = vld [vmem:[#allocation7 + $0x800] ss:$16 sps:$4 sm:$0xff]  }
 0x162   :  { %5529 = vmatprep.subr.bf16.mxu0 %v10420_v15  ;;  %6045 = vmatprep.subr.bf16.mxu1 %v10423_v16  ;;  %v12158_v15 = vld [vmem:[#allocation20 + $0x80] sm:$0xff]  ;;  %v8777_v16 = vcombine.low %v12140_v63, %v12136_v59 }
 0x163   :  { %v10504_v59 = vld [vmem:[#allocation7 + $0x844] ss:$16 sps:$4 sm:$0xff]   ;;  %v10507_v63 = vld [vmem:[#allocation7 + $0x84c] ss:$16 sps:$4 sm:$0xff]  }
 0x165   :  { %5530 = vmatpush1.bf16.msra.mxu0 %v10418_v17  ;;  %6046 = vmatpush1.bf16.msra.mxu1 %v10421_v18  ;;  %v12162_v17 = vld [vmem:[#allocation20 + $0x20] sm:$0xff]  ;;  %v10493_v18 = vld [vmem:[#allocation7 + $0x808] ss:$16 sps:$4 sm:$0xff]  }
 0x166   :  { %5531 = vmatprep.subr.bf16.mxu0 %v10426_v19  ;;  %6047 = vmatprep.subr.bf16.mxu1 %v10429_v20  ;;  %v10498_v19 = vld [vmem:[#allocation7 + $0x824] ss:$16 sps:$4 sm:$0xff]   ;;  %v10501_v20 = vld [vmem:[#allocation7 + $0x82c] ss:$16 sps:$4 sm:$0xff]  }
 0x169   :  { %5532 = vmatpush1.bf16.msra.mxu0 %v10424_v21  ;;  %6048 = vmatpush1.bf16.msra.mxu1 %v10427_v22  ;;  %v8780_v21 = vcombine.high %v12162_v17, %v12158_v15  ;;  %v10496_v22 = vld [vmem:[#allocation7 + $0x820] ss:$16 sps:$4 sm:$0xff]  }
 0x16a   :  { %5533 = vmatprep.subr.bf16.mxu0 %v10432_v23  ;;  %6049 = vmatprep.subr.bf16.mxu1 %v10435_v24  ;;  %v10499_v23 = vld [vmem:[#allocation7 + $0x828] ss:$16 sps:$4 sm:$0xff]  }
 0x16b   :  { %v8757_v24 = vld [vmem:[%s12365_s8 + $0xa] sm:$0x1] }
 0x16d   :  { %5534 = vmatpush1.bf16.msra.mxu0 %v10430_v25  ;;  %6050 = vmatpush1.bf16.msra.mxu1 %v10433_v26  ;;  %v302_v25 = vunpack.c.l.bf16 %v8757_v24  ;;  %v8758_v26 = vld [vmem:[%s12365_s8 + $0xb] sm:$0x1]  ;;  %v10579_v24 = vld [vmem:[#allocation7 + $0x9cc] ss:$16 sps:$4 sm:$0xff]  }
 0x16e   :  { %5535 = vmatprep.subr.bf16.mxu0 %v10438_v27  ;;  %6051 = vmatprep.subr.bf16.mxu1 %v10441_v28  ;;  %v10502_v27 = vld [vmem:[#allocation7 + $0x840] ss:$16 sps:$4 sm:$0xff]   ;;  %v10505_v28 = vld [vmem:[#allocation7 + $0x848] ss:$16 sps:$4 sm:$0xff]   ;;  %v318_v29 = vunpack.c.l.bf16 %v8758_v26 }
 0x16f   :  { %v308_v31 = vsel %vm148_vm0, %v302_v25, %v11932_v1 }
 0x170   :  { %v324_v34 = vsel %vm148_vm0, %v318_v29, %v11932_v1  ;;  %v10574_v29 = vld [vmem:[#allocation7 + $0x9c0] ss:$16 sps:$4 sm:$0xff]  }
 0x171   :  { %5536 = vmatpush1.bf16.msra.mxu0 %v10436_v32  ;;  %6052 = vmatpush1.bf16.msra.mxu1 %v10439_v33  ;;  %v10513_v32 = vld [vmem:[#allocation7 + $0x86c] ss:$16 sps:$4 sm:$0xff]   ;;  %v310_v33 = vpack.c.bf16 %v11873_v60, %v308_v31  ;;  %v10582_v31 = vld [vmem:[#allocation7 + $0x9e4] ss:$16 sps:$4 sm:$0xff]  }
 0x172   :  { %5537 = vmatprep.subr.bf16.mxu0 %v10444_v35  ;;  %6053 = vmatprep.subr.bf16.mxu1 %v10447_v37  ;;  %v326_v35 = vpack.c.bf16 %v11873_v60, %v324_v34  ;;  %v10511_v37 = vld [vmem:[#allocation7 + $0x868] ss:$16 sps:$4 sm:$0xff]  }
 0x173   :  { %312 = vst [vmem:[#allocation20 + $0x28] sm:$0xf] %v310_v33  ;;  %v10580_v33 = vld [vmem:[#allocation7 + $0x9e0] ss:$16 sps:$4 sm:$0xff]   ;;  %v10583_v34 = vld [vmem:[#allocation7 + $0x9e8] ss:$16 sps:$4 sm:$0xff]  }
 0x174   :  { %328 = vst [vmem:[#allocation20 + $0x2c] sm:$0xf] %v326_v35  ;;  %v10588_v35 = vld [vmem:[#allocation7 + $0xa04] ss:$16 sps:$4 sm:$0xff]  }
 0x175   :  { %5538 = vmatpush1.bf16.msra.mxu0 %v10442_v41  ;;  %6054 = vmatpush1.bf16.msra.mxu1 %v10445_v42  ;;  %v10517_v41 = vld [vmem:[#allocation7 + $0x888] ss:$16 sps:$4 sm:$0xff]   ;;  %v10522_v42 = vld [vmem:[#allocation7 + $0x8a4] ss:$16 sps:$4 sm:$0xff]  }
 0x176   :  { %5539 = vmatprep.subr.bf16.mxu0 %v10450_v2  ;;  %6055 = vmatprep.subr.bf16.mxu1 %v10453_v43  ;;  %v10525_v2 = vld [vmem:[#allocation7 + $0x8ac] ss:$16 sps:$4 sm:$0xff]   ;;  %v10520_v43 = vld [vmem:[#allocation7 + $0x8a0] ss:$16 sps:$4 sm:$0xff]  }
 0x179   :  { %5540 = vmatpush1.bf16.msra.mxu0 %v10448_v44  ;;  %6056 = vmatpush1.bf16.msra.mxu1 %v10451_v45  ;;  %v10523_v44 = vld [vmem:[#allocation7 + $0x8a8] ss:$16 sps:$4 sm:$0xff]   ;;  %v10528_v45 = vld [vmem:[#allocation7 + $0x8c4] ss:$16 sps:$4 sm:$0xff]  }
 0x17a   :  { %5541 = vmatprep.subr.bf16.mxu0 %v10456_v47  ;;  %6057 = vmatprep.subr.bf16.mxu1 %v10459_v48  ;;  %v10531_v47 = vld [vmem:[#allocation7 + $0x8cc] ss:$16 sps:$4 sm:$0xff]   ;;  %v10526_v48 = vld [vmem:[#allocation7 + $0x8c0] ss:$16 sps:$4 sm:$0xff]  }
 0x17d   :  { %5542 = vmatpush1.bf16.msra.mxu0 %v10454_v49  ;;  %6058 = vmatpush1.bf16.msra.mxu1 %v10457_v50  ;;  %v10529_v49 = vld [vmem:[#allocation7 + $0x8c8] ss:$16 sps:$4 sm:$0xff]   ;;  %v10534_v50 = vld [vmem:[#allocation7 + $0x8e4] ss:$16 sps:$4 sm:$0xff]  }
 0x17e   :  { %5543 = vmatprep.subr.bf16.mxu0 %v10462_v51  ;;  %6059 = vmatprep.subr.bf16.mxu1 %v10465_v52  ;;  %v10537_v51 = vld [vmem:[#allocation7 + $0x8ec] ss:$16 sps:$4 sm:$0xff]   ;;  %v10532_v52 = vld [vmem:[#allocation7 + $0x8e0] ss:$16 sps:$4 sm:$0xff]  }
 0x181   :  { %5544 = vmatpush1.bf16.msra.mxu0 %v10460_v53  ;;  %6060 = vmatpush1.bf16.msra.mxu1 %v10463_v54  ;;  %v10535_v53 = vld [vmem:[#allocation7 + $0x8e8] ss:$16 sps:$4 sm:$0xff]   ;;  %v10540_v54 = vld [vmem:[#allocation7 + $0x904] ss:$16 sps:$4 sm:$0xff]  }
 0x182   :  { %5545 = vmatprep.subr.bf16.mxu0 %v10468_v55  ;;  %6061 = vmatprep.subr.bf16.mxu1 %v10471_v56  ;;  %v10543_v55 = vld [vmem:[#allocation7 + $0x90c] ss:$16 sps:$4 sm:$0xff]   ;;  %v10538_v56 = vld [vmem:[#allocation7 + $0x900] ss:$16 sps:$4 sm:$0xff]  }
 0x185   :  { %5546 = vmatpush1.bf16.msra.mxu0 %v10466_v57  ;;  %6062 = vmatpush1.bf16.msra.mxu1 %v10469_v58  ;;  %v10541_v57 = vld [vmem:[#allocation7 + $0x908] ss:$16 sps:$4 sm:$0xff]   ;;  %v10546_v58 = vld [vmem:[#allocation7 + $0x924] ss:$16 sps:$4 sm:$0xff]  }
 0x186   :  { %5547 = vmatprep.subr.bf16.mxu0 %v10474_v61  ;;  %6063 = vmatprep.subr.bf16.mxu1 %v10477_v3  ;;  %v10549_v61 = vld [vmem:[#allocation7 + $0x92c] ss:$16 sps:$4 sm:$0xff]   ;;  %v10544_v3 = vld [vmem:[#allocation7 + $0x920] ss:$16 sps:$4 sm:$0xff]  }
 0x189   :  { %5548 = vmatpush1.bf16.msra.mxu0 %v10472_v4  ;;  %6064 = vmatpush1.bf16.msra.mxu1 %v10475_v5  ;;  %v10547_v4 = vld [vmem:[#allocation7 + $0x928] ss:$16 sps:$4 sm:$0xff]   ;;  %v10552_v5 = vld [vmem:[#allocation7 + $0x944] ss:$16 sps:$4 sm:$0xff]  }
 0x18a   :  { %5549 = vmatprep.subr.bf16.mxu0 %v10480_v6  ;;  %6065 = vmatprep.subr.bf16.mxu1 %v10483_v7  ;;  %v10555_v6 = vld [vmem:[#allocation7 + $0x94c] ss:$16 sps:$4 sm:$0xff]   ;;  %v10550_v7 = vld [vmem:[#allocation7 + $0x940] ss:$16 sps:$4 sm:$0xff]  }
 0x18d   :  { %5550 = vmatpush1.bf16.msra.mxu0 %v10478_v8  ;;  %6066 = vmatpush1.bf16.msra.mxu1 %v10481_v62  ;;  %v10553_v8 = vld [vmem:[#allocation7 + $0x948] ss:$16 sps:$4 sm:$0xff]   ;;  %v10558_v62 = vld [vmem:[#allocation7 + $0x964] ss:$16 sps:$4 sm:$0xff]  }
 0x18e   :  { %5551 = vmatprep.subr.bf16.mxu0 %v10486_v0  ;;  %6067 = vmatprep.subr.bf16.mxu1 %v10489_v9  ;;  %v10561_v0 = vld [vmem:[#allocation7 + $0x96c] ss:$16 sps:$4 sm:$0xff]   ;;  %v10556_v9 = vld [vmem:[#allocation7 + $0x960] ss:$16 sps:$4 sm:$0xff]  }
 0x191   :  { %5552 = vmatpush1.bf16.msra.mxu0 %v10484_v10  ;;  %6068 = vmatpush1.bf16.msra.mxu1 %v10487_v11  ;;  %v10559_v10 = vld [vmem:[#allocation7 + $0x968] ss:$16 sps:$4 sm:$0xff]   ;;  %v10564_v11 = vld [vmem:[#allocation7 + $0x984] ss:$16 sps:$4 sm:$0xff]  }
 0x192   :  { %5564 = vmatprep.subr.bf16.mxu0 %v10492_v12  ;;  %6080 = vmatprep.subr.bf16.mxu1 %v10495_v13  ;;  %v10567_v12 = vld [vmem:[#allocation7 + $0x98c] ss:$16 sps:$4 sm:$0xff]   ;;  %v10562_v13 = vld [vmem:[#allocation7 + $0x980] ss:$16 sps:$4 sm:$0xff]  }
 0x194   :  { %5554 = vmatmul.mubr.bf16.vlgmr.msra.gmra.mrb[0].mxu0 %v8777_v16  ;;  %6070 = vmatmul.mubr.bf16.vlgmr.msra.gmra.mrb[0].mxu1 %v8777_v16  ;;  %v10570_v16 = vld [vmem:[#allocation7 + $0x9a4] ss:$16 sps:$4 sm:$0xff]  }
 0x195   :  { %5565 = vmatpush1.bf16.msra.mxu0 %v10490_v14  ;;  %6081 = vmatpush1.bf16.msra.mxu1 %v10493_v18  ;;  %v10565_v14 = vld [vmem:[#allocation7 + $0x988] ss:$16 sps:$4 sm:$0xff]   ;;  %v10573_v18 = vld [vmem:[#allocation7 + $0x9ac] ss:$16 sps:$4 sm:$0xff]  }
 0x196   :  { %5566 = vmatprep.subr.bf16.mxu0 %v10498_v19  ;;  %6082 = vmatprep.subr.bf16.mxu1 %v10501_v20  ;;  %v8759_v19 = vld [vmem:[%s12365_s8 + $0xc] sm:$0x1]  ;;  %v8760_v20 = vld [vmem:[%s12365_s8 + $0xd] sm:$0x1] }
 0x197   :  { %5596 = vmatprep.mubr.bf16.mxu0 %v8780_v21  ;;  %6112 = vmatprep.mubr.bf16.mxu1 %v8780_v21  ;;  %v10568_v21 = vld [vmem:[#allocation7 + $0x9a0] ss:$16 sps:$4 sm:$0xff]  }
 0x199   :  { %5567 = vmatpush1.bf16.msra.mxu0 %v10496_v22  ;;  %6083 = vmatpush1.bf16.msra.mxu1 %v10499_v23  ;;  %v10571_v22 = vld [vmem:[#allocation7 + $0x9a8] ss:$16 sps:$4 sm:$0xff]   ;;  %v334_v23 = vunpack.c.l.bf16 %v8759_v19 }
 0x19a   :  { %5568 = vmatprep.subr.bf16.mxu0 %v10504_v59  ;;  %6084 = vmatprep.subr.bf16.mxu1 %v10507_v63  ;;  %v350_v59 = vunpack.c.l.bf16 %v8760_v20  ;;  %v10576_v63 = vld [vmem:[#allocation7 + $0x9c4] ss:$16 sps:$4 sm:$0xff]   ;;  %v10643_v19 = vld [vmem:[#allocation7 + $0xb28] ss:$16 sps:$4 sm:$0xff]  }
 0x19b   :  { %v340_v25 = vsel %vm148_vm0, %v334_v23, %v11932_v1  ;;  %v10648_v20 = vld [vmem:[#allocation7 + $0xb44] ss:$16 sps:$4 sm:$0xff]   ;;  %v10649_v23 = vld [vmem:[#allocation7 + $0xb48] ss:$16 sps:$4 sm:$0xff]  }
 0x19c   :  { %v356_v26 = vsel %vm148_vm0, %v350_v59, %v11932_v1  ;;  %v10654_v59 = vld [vmem:[#allocation7 + $0xb64] ss:$16 sps:$4 sm:$0xff]  }
 0x19d   :  { %5569 = vmatpush1.bf16.msra.mxu0 %v10502_v27  ;;  %6085 = vmatpush1.bf16.msra.mxu1 %v10505_v28  ;;  %v342_v27 = vpack.c.bf16 %v11873_v60, %v340_v25  ;;  %v358_v28 = vpack.c.bf16 %v11873_v60, %v356_v26  ;;  %v10655_v25 = vld [vmem:[#allocation7 + $0xb68] ss:$16 sps:$4 sm:$0xff]   ;;  %v10660_v26 = vld [vmem:[#allocation7 + $0xb84] ss:$16 sps:$4 sm:$0xff]  }
 0x19e   :  { %5570 = vmatprep.subr.bf16.mxu0 %v10510_v30  ;;  %6086 = vmatprep.subr.bf16.mxu1 %v10513_v32  ;;  %v10577_v30 = vld [vmem:[#allocation7 + $0x9c8] ss:$16 sps:$4 sm:$0xff]   ;;  %v10585_v32 = vld [vmem:[#allocation7 + $0x9ec] ss:$16 sps:$4 sm:$0xff]  }
 0x19f   :  { %344 = vst [vmem:[#allocation20 + $0x30] sm:$0xf] %v342_v27  ;;  %360 = vst [vmem:[#allocation20 + $0x34] sm:$0xf] %v358_v28  ;;  %v10663_v27 = vld [vmem:[#allocation7 + $0xb8c] ss:$16 sps:$4 sm:$0xff]  }
 0x1a0   :  { %v10658_v28 = vld [vmem:[#allocation7 + $0xb80] ss:$16 sps:$4 sm:$0xff]  }
 0x1a1   :  { %5571 = vmatpush1.bf16.msra.mxu0 %v10508_v36  ;;  %6087 = vmatpush1.bf16.msra.mxu1 %v10511_v37  ;;  %v10591_v36 = vld [vmem:[#allocation7 + $0xa0c] ss:$16 sps:$4 sm:$0xff]  }
 0x1a2   :  { %5572 = vmatprep.subr.bf16.mxu0 %v10516_v38  ;;  %6088 = vmatprep.subr.bf16.mxu1 %v10519_v39  ;;  %v12194_v37 = vld [vmem:[#allocation20 + $0x28] sm:$0xff]  ;;  %v8779_v39 = vcombine.low %v12162_v17, %v12158_v15 }
 0x1a3   :  { %v12196_v38 = vld [vmem:[#allocation20 + $0x88] sm:$0xff] }
 0x1a4   :  { %v10600_v15 = vld [vmem:[#allocation7 + $0xa44] ss:$16 sps:$4 sm:$0xff]   ;;  %v10603_v17 = vld [vmem:[#allocation7 + $0xa4c] ss:$16 sps:$4 sm:$0xff]  }
 0x1a5   :  { %5573 = vmatpush1.bf16.msra.mxu0 %v10514_v40  ;;  %6089 = vmatpush1.bf16.msra.mxu1 %v10517_v41  ;;  %v10586_v40 = vld [vmem:[#allocation7 + $0xa00] ss:$16 sps:$4 sm:$0xff]   ;;  %v10589_v41 = vld [vmem:[#allocation7 + $0xa08] ss:$16 sps:$4 sm:$0xff]  }
 0x1a6   :  { %5574 = vmatprep.subr.bf16.mxu0 %v10522_v42  ;;  %6090 = vmatprep.subr.bf16.mxu1 %v10525_v2  ;;  %v10594_v42 = vld [vmem:[#allocation7 + $0xa24] ss:$16 sps:$4 sm:$0xff]   ;;  %v10597_v2 = vld [vmem:[#allocation7 + $0xa2c] ss:$16 sps:$4 sm:$0xff]  }
 0x1a9   :  { %5575 = vmatpush1.bf16.msra.mxu0 %v10520_v43  ;;  %6091 = vmatpush1.bf16.msra.mxu1 %v10523_v44  ;;  %v8782_v43 = vcombine.high %v12194_v37, %v12196_v38  ;;  %v10592_v44 = vld [vmem:[#allocation7 + $0xa20] ss:$16 sps:$4 sm:$0xff]  }
 0x1aa   :  { %5576 = vmatprep.subr.bf16.mxu0 %v10528_v45  ;;  %6092 = vmatprep.subr.bf16.mxu1 %v10531_v47  ;;  %v10595_v45 = vld [vmem:[#allocation7 + $0xa28] ss:$16 sps:$4 sm:$0xff]   ;;  %v10598_v47 = vld [vmem:[#allocation7 + $0xa40] ss:$16 sps:$4 sm:$0xff]  }
 0x1ad   :  { %5577 = vmatpush1.bf16.msra.mxu0 %v10526_v48  ;;  %6093 = vmatpush1.bf16.msra.mxu1 %v10529_v49  ;;  %v10601_v48 = vld [vmem:[#allocation7 + $0xa48] ss:$16 sps:$4 sm:$0xff]   ;;  %v10606_v49 = vld [vmem:[#allocation7 + $0xa64] ss:$16 sps:$4 sm:$0xff]  }
 0x1ae   :  { %5578 = vmatprep.subr.bf16.mxu0 %v10534_v50  ;;  %6094 = vmatprep.subr.bf16.mxu1 %v10537_v51  ;;  %v10609_v50 = vld [vmem:[#allocation7 + $0xa6c] ss:$16 sps:$4 sm:$0xff]   ;;  %v10604_v51 = vld [vmem:[#allocation7 + $0xa60] ss:$16 sps:$4 sm:$0xff]  }
 0x1b1   :  { %5579 = vmatpush1.bf16.msra.mxu0 %v10532_v52  ;;  %6095 = vmatpush1.bf16.msra.mxu1 %v10535_v53  ;;  %v10607_v52 = vld [vmem:[#allocation7 + $0xa68] ss:$16 sps:$4 sm:$0xff]   ;;  %v10612_v53 = vld [vmem:[#allocation7 + $0xa84] ss:$16 sps:$4 sm:$0xff]  }
 0x1b2   :  { %5580 = vmatprep.subr.bf16.mxu0 %v10540_v54  ;;  %6096 = vmatprep.subr.bf16.mxu1 %v10543_v55  ;;  %v10615_v54 = vld [vmem:[#allocation7 + $0xa8c] ss:$16 sps:$4 sm:$0xff]   ;;  %v10610_v55 = vld [vmem:[#allocation7 + $0xa80] ss:$16 sps:$4 sm:$0xff]  }
 0x1b5   :  { %5581 = vmatpush1.bf16.msra.mxu0 %v10538_v56  ;;  %6097 = vmatpush1.bf16.msra.mxu1 %v10541_v57  ;;  %v10613_v56 = vld [vmem:[#allocation7 + $0xa88] ss:$16 sps:$4 sm:$0xff]   ;;  %v10618_v57 = vld [vmem:[#allocation7 + $0xaa4] ss:$16 sps:$4 sm:$0xff]  }
 0x1b6   :  { %5582 = vmatprep.subr.bf16.mxu0 %v10546_v58  ;;  %6098 = vmatprep.subr.bf16.mxu1 %v10549_v61  ;;  %v10621_v58 = vld [vmem:[#allocation7 + $0xaac] ss:$16 sps:$4 sm:$0xff]   ;;  %v10616_v61 = vld [vmem:[#allocation7 + $0xaa0] ss:$16 sps:$4 sm:$0xff]  }
 0x1b9   :  { %5583 = vmatpush1.bf16.msra.mxu0 %v10544_v3  ;;  %6099 = vmatpush1.bf16.msra.mxu1 %v10547_v4  ;;  %v10619_v3 = vld [vmem:[#allocation7 + $0xaa8] ss:$16 sps:$4 sm:$0xff]   ;;  %v10624_v4 = vld [vmem:[#allocation7 + $0xac4] ss:$16 sps:$4 sm:$0xff]  }
 0x1ba   :  { %5584 = vmatprep.subr.bf16.mxu0 %v10552_v5  ;;  %6100 = vmatprep.subr.bf16.mxu1 %v10555_v6  ;;  %v10627_v5 = vld [vmem:[#allocation7 + $0xacc] ss:$16 sps:$4 sm:$0xff]   ;;  %v10622_v6 = vld [vmem:[#allocation7 + $0xac0] ss:$16 sps:$4 sm:$0xff]  }
 0x1bd   :  { %5585 = vmatpush1.bf16.msra.mxu0 %v10550_v7  ;;  %6101 = vmatpush1.bf16.msra.mxu1 %v10553_v8  ;;  %v10625_v7 = vld [vmem:[#allocation7 + $0xac8] ss:$16 sps:$4 sm:$0xff]   ;;  %v10630_v8 = vld [vmem:[#allocation7 + $0xae4] ss:$16 sps:$4 sm:$0xff]  }
 0x1be   :  { %5586 = vmatprep.subr.bf16.mxu0 %v10558_v62  ;;  %6102 = vmatprep.subr.bf16.mxu1 %v10561_v0  ;;  %v10633_v62 = vld [vmem:[#allocation7 + $0xaec] ss:$16 sps:$4 sm:$0xff]   ;;  %v10628_v0 = vld [vmem:[#allocation7 + $0xae0] ss:$16 sps:$4 sm:$0xff]  }
 0x1c1   :  { %5587 = vmatpush1.bf16.msra.mxu0 %v10556_v9  ;;  %6103 = vmatpush1.bf16.msra.mxu1 %v10559_v10  ;;  %v10631_v9 = vld [vmem:[#allocation7 + $0xae8] ss:$16 sps:$4 sm:$0xff]   ;;  %v10636_v10 = vld [vmem:[#allocation7 + $0xb04] ss:$16 sps:$4 sm:$0xff]  }
 0x1c2   :  { %5588 = vmatprep.subr.bf16.mxu0 %v10564_v11  ;;  %6104 = vmatprep.subr.bf16.mxu1 %v10567_v12  ;;  %v10639_v11 = vld [vmem:[#allocation7 + $0xb0c] ss:$16 sps:$4 sm:$0xff]   ;;  %v10634_v12 = vld [vmem:[#allocation7 + $0xb00] ss:$16 sps:$4 sm:$0xff]  }
 0x1c5   :  { %5589 = vmatpush1.bf16.msra.mxu0 %v10562_v13  ;;  %6105 = vmatpush1.bf16.msra.mxu1 %v10565_v14  ;;  %v10637_v13 = vld [vmem:[#allocation7 + $0xb08] ss:$16 sps:$4 sm:$0xff]   ;;  %v10642_v14 = vld [vmem:[#allocation7 + $0xb24] ss:$16 sps:$4 sm:$0xff]  }
 0x1c6   :  { %5590 = vmatprep.subr.bf16.mxu0 %v10570_v16  ;;  %6106 = vmatprep.subr.bf16.mxu1 %v10573_v18  ;;  %v10645_v16 = vld [vmem:[#allocation7 + $0xb2c] ss:$16 sps:$4 sm:$0xff]   ;;  %v10640_v18 = vld [vmem:[#allocation7 + $0xb20] ss:$16 sps:$4 sm:$0xff]  }
 0x1c9   :  { %5591 = vmatpush1.bf16.msra.mxu0 %v10568_v21  ;;  %6107 = vmatpush1.bf16.msra.mxu1 %v10571_v22  ;;  %v10651_v21 = vld [vmem:[#allocation7 + $0xb4c] ss:$16 sps:$4 sm:$0xff]   ;;  %v10646_v22 = vld [vmem:[#allocation7 + $0xb40] ss:$16 sps:$4 sm:$0xff]  }
 0x1ca   :  { %5592 = vmatprep.subr.bf16.mxu0 %v10576_v63  ;;  %6108 = vmatprep.subr.bf16.mxu1 %v10579_v24  ;;  %v10657_v63 = vld [vmem:[#allocation7 + $0xb6c] ss:$16 sps:$4 sm:$0xff]   ;;  %v10652_v24 = vld [vmem:[#allocation7 + $0xb60] ss:$16 sps:$4 sm:$0xff]  }
 0x1cd   :  { %5593 = vmatpush1.bf16.msra.mxu0 %v10574_v29  ;;  %6109 = vmatpush1.bf16.msra.mxu1 %v10577_v30  ;;  %v10661_v29 = vld [vmem:[#allocation7 + $0xb88] ss:$16 sps:$4 sm:$0xff]   ;;  %v10666_v30 = vld [vmem:[#allocation7 + $0xba4] ss:$16 sps:$4 sm:$0xff]  }
 0x1ce   :  { %5594 = vmatprep.subr.bf16.mxu0 %v10582_v31  ;;  %6110 = vmatprep.subr.bf16.mxu1 %v10585_v32  ;;  %v10669_v31 = vld [vmem:[#allocation7 + $0xbac] ss:$16 sps:$4 sm:$0xff]  }
 0x1cf   :  { %v8761_v32 = vld [vmem:[%s12365_s8 + $0xe] sm:$0x1] }
 0x1d1   :  { %5595 = vmatpush1.bf16.msra.mxu0 %v10580_v33  ;;  %6111 = vmatpush1.bf16.msra.mxu1 %v10583_v34  ;;  %v8762_v33 = vld [vmem:[%s12365_s8 + $0xf] sm:$0x1]  ;;  %v10664_v34 = vld [vmem:[#allocation7 + $0xba0] ss:$16 sps:$4 sm:$0xff]  }
 0x1d2   :  { %5607 = vmatprep.subr.bf16.mxu0 %v10588_v35  ;;  %6123 = vmatprep.subr.bf16.mxu1 %v10591_v36  ;;  %v10667_v35 = vld [vmem:[#allocation7 + $0xba8] ss:$16 sps:$4 sm:$0xff]   ;;  %v366_v36 = vunpack.c.l.bf16 %v8761_v32 }
 0x1d3   :  { %v10739_v32 = vld [vmem:[#allocation7 + $0xd28] ss:$16 sps:$4 sm:$0xff]  }
 0x1d4   :  { %5597 = vmatmul.mubr.bf16.vlgmr.msra.gmra.mrb[0].mxu0 %v8779_v39  ;;  %6113 = vmatmul.mubr.bf16.vlgmr.msra.gmra.mrb[0].mxu1 %v8779_v39  ;;  %v382_v39 = vunpack.c.l.bf16 %v8762_v33  ;;  %v10744_v33 = vld [vmem:[#allocation7 + $0xd44] ss:$16 sps:$4 sm:$0xff]  }
 0x1d5   :  { %5608 = vmatpush1.bf16.msra.mxu0 %v10586_v40  ;;  %6124 = vmatpush1.bf16.msra.mxu1 %v10589_v41  ;;  %v10672_v40 = vld [vmem:[#allocation7 + $0xbc4] ss:$16 sps:$4 sm:$0xff]   ;;  %v10675_v41 = vld [vmem:[#allocation7 + $0xbcc] ss:$16 sps:$4 sm:$0xff]  }
 0x1d6   :  { %5609 = vmatprep.subr.bf16.mxu0 %v10594_v42  ;;  %6125 = vmatprep.subr.bf16.mxu1 %v10597_v2  ;;  %v372_v42 = vsel %vm148_vm0, %v366_v36, %v11932_v1  ;;  %v388_v2 = vsel %vm148_vm0, %v382_v39, %v11932_v1  ;;  %v10745_v36 = vld [vmem:[#allocation7 + $0xd48] ss:$16 sps:$4 sm:$0xff]   ;;  %v10750_v39 = vld [vmem:[#allocation7 + $0xd64] ss:$16 sps:$4 sm:$0xff]  }
 0x1d7   :  { %5639 = vmatprep.mubr.bf16.mxu0 %v8782_v43  ;;  %6155 = vmatprep.mubr.bf16.mxu1 %v8782_v43  ;;  %v374_v43 = vpack.c.bf16 %v11873_v60, %v372_v42  ;;  %v10751_v42 = vld [vmem:[#allocation7 + $0xd68] ss:$16 sps:$4 sm:$0xff]  }
 0x1d9   :  { %5610 = vmatpush1.bf16.msra.mxu0 %v10592_v44  ;;  %6126 = vmatpush1.bf16.msra.mxu1 %v10595_v45  ;;  %v390_v44 = vpack.c.bf16 %v11873_v60, %v388_v2  ;;  %v10670_v45 = vld [vmem:[#allocation7 + $0xbc0] ss:$16 sps:$4 sm:$0xff]   ;;  %376 = vst [vmem:[#allocation20 + $0x38] sm:$0xf] %v374_v43  ;;  %v10756_v2 = vld [vmem:[#allocation7 + $0xd84] ss:$16 sps:$4 sm:$0xff]  }
 0x1da   :  { %5611 = vmatprep.subr.bf16.mxu0 %v10600_v15  ;;  %6127 = vmatprep.subr.bf16.mxu1 %v10603_v17  ;;  %v10673_v15 = vld [vmem:[#allocation7 + $0xbc8] ss:$16 sps:$4 sm:$0xff]   ;;  %v10678_v17 = vld [vmem:[#allocation7 + $0xbe4] ss:$16 sps:$4 sm:$0xff]   ;;  %v10759_v43 = vld [vmem:[#allocation7 + $0xd8c] ss:$16 sps:$4 sm:$0xff]  }
 0x1db   :  { %392 = vst [vmem:[#allocation20 + $0x3c] sm:$0xf] %v390_v44  ;;  %v10754_v44 = vld [vmem:[#allocation7 + $0xd80] ss:$16 sps:$4 sm:$0xff]  }
 0x1dd   :  { %5612 = vmatpush1.bf16.msra.mxu0 %v10598_v47  ;;  %6128 = vmatpush1.bf16.msra.mxu1 %v10601_v48  ;;  %v10681_v47 = vld [vmem:[#allocation7 + $0xbec] ss:$16 sps:$4 sm:$0xff]   ;;  %v10676_v48 = vld [vmem:[#allocation7 + $0xbe0] ss:$16 sps:$4 sm:$0xff]  }
 0x1de   :  { %5613 = vmatprep.subr.bf16.mxu0 %v10606_v49  ;;  %6129 = vmatprep.subr.bf16.mxu1 %v10609_v50  ;;  %v10679_v49 = vld [vmem:[#allocation7 + $0xbe8] ss:$16 sps:$4 sm:$0xff]   ;;  %v10684_v50 = vld [vmem:[#allocation7 + $0xc04] ss:$16 sps:$4 sm:$0xff]  }
 0x1e1   :  { %5614 = vmatpush1.bf16.msra.mxu0 %v10604_v51  ;;  %6130 = vmatpush1.bf16.msra.mxu1 %v10607_v52  ;;  %v10687_v51 = vld [vmem:[#allocation7 + $0xc0c] ss:$16 sps:$4 sm:$0xff]  }
 0x1e2   :  { %5615 = vmatprep.subr.bf16.mxu0 %v10612_v53  ;;  %6131 = vmatprep.subr.bf16.mxu1 %v10615_v54  ;;  %v12216_v52 = vld [vmem:[#allocation20 + $0x30] sm:$0xff]  ;;  %v8781_v54 = vcombine.low %v12194_v37, %v12196_v38 }
 0x1e3   :  { %v12218_v53 = vld [vmem:[#allocation20 + $0x90] sm:$0xff] }
 0x1e4   :  { %v10696_v37 = vld [vmem:[#allocation7 + $0xc44] ss:$16 sps:$4 sm:$0xff]   ;;  %v10699_v38 = vld [vmem:[#allocation7 + $0xc4c] ss:$16 sps:$4 sm:$0xff]  }
 0x1e5   :  { %5616 = vmatpush1.bf16.msra.mxu0 %v10610_v55  ;;  %6132 = vmatpush1.bf16.msra.mxu1 %v10613_v56  ;;  %v10682_v55 = vld [vmem:[#allocation7 + $0xc00] ss:$16 sps:$4 sm:$0xff]   ;;  %v10685_v56 = vld [vmem:[#allocation7 + $0xc08] ss:$16 sps:$4 sm:$0xff]  }
 0x1e6   :  { %5617 = vmatprep.subr.bf16.mxu0 %v10618_v57  ;;  %6133 = vmatprep.subr.bf16.mxu1 %v10621_v58  ;;  %v10690_v57 = vld [vmem:[#allocation7 + $0xc24] ss:$16 sps:$4 sm:$0xff]   ;;  %v10693_v58 = vld [vmem:[#allocation7 + $0xc2c] ss:$16 sps:$4 sm:$0xff]  }
 0x1e9   :  { %5618 = vmatpush1.bf16.msra.mxu0 %v10616_v61  ;;  %6134 = vmatpush1.bf16.msra.mxu1 %v10619_v3  ;;  %v8784_v61 = vcombine.high %v12216_v52, %v12218_v53  ;;  %v10688_v3 = vld [vmem:[#allocation7 + $0xc20] ss:$16 sps:$4 sm:$0xff]  }
 0x1ea   :  { %5619 = vmatprep.subr.bf16.mxu0 %v10624_v4  ;;  %6135 = vmatprep.subr.bf16.mxu1 %v10627_v5  ;;  %v10691_v4 = vld [vmem:[#allocation7 + $0xc28] ss:$16 sps:$4 sm:$0xff]   ;;  %v10694_v5 = vld [vmem:[#allocation7 + $0xc40] ss:$16 sps:$4 sm:$0xff]  }
 0x1ed   :  { %5620 = vmatpush1.bf16.msra.mxu0 %v10622_v6  ;;  %6136 = vmatpush1.bf16.msra.mxu1 %v10625_v7  ;;  %v10697_v6 = vld [vmem:[#allocation7 + $0xc48] ss:$16 sps:$4 sm:$0xff]   ;;  %v10702_v7 = vld [vmem:[#allocation7 + $0xc64] ss:$16 sps:$4 sm:$0xff]  }
 0x1ee   :  { %5621 = vmatprep.subr.bf16.mxu0 %v10630_v8  ;;  %6137 = vmatprep.subr.bf16.mxu1 %v10633_v62  ;;  %v10705_v8 = vld [vmem:[#allocation7 + $0xc6c] ss:$16 sps:$4 sm:$0xff]   ;;  %v10700_v62 = vld [vmem:[#allocation7 + $0xc60] ss:$16 sps:$4 sm:$0xff]  }
 0x1f1   :  { %5622 = vmatpush1.bf16.msra.mxu0 %v10628_v0  ;;  %6138 = vmatpush1.bf16.msra.mxu1 %v10631_v9  ;;  %v10703_v0 = vld [vmem:[#allocation7 + $0xc68] ss:$16 sps:$4 sm:$0xff]   ;;  %v10708_v9 = vld [vmem:[#allocation7 + $0xc84] ss:$16 sps:$4 sm:$0xff]  }
 0x1f2   :  { %5623 = vmatprep.subr.bf16.mxu0 %v10636_v10  ;;  %6139 = vmatprep.subr.bf16.mxu1 %v10639_v11  ;;  %v10711_v10 = vld [vmem:[#allocation7 + $0xc8c] ss:$16 sps:$4 sm:$0xff]   ;;  %v10706_v11 = vld [vmem:[#allocation7 + $0xc80] ss:$16 sps:$4 sm:$0xff]  }
 0x1f5   :  { %5624 = vmatpush1.bf16.msra.mxu0 %v10634_v12  ;;  %6140 = vmatpush1.bf16.msra.mxu1 %v10637_v13  ;;  %v10709_v12 = vld [vmem:[#allocation7 + $0xc88] ss:$16 sps:$4 sm:$0xff]   ;;  %v10714_v13 = vld [vmem:[#allocation7 + $0xca4] ss:$16 sps:$4 sm:$0xff]  }
 0x1f6   :  { %5625 = vmatprep.subr.bf16.mxu0 %v10642_v14  ;;  %6141 = vmatprep.subr.bf16.mxu1 %v10645_v16  ;;  %v10717_v14 = vld [vmem:[#allocation7 + $0xcac] ss:$16 sps:$4 sm:$0xff]   ;;  %v10712_v16 = vld [vmem:[#allocation7 + $0xca0] ss:$16 sps:$4 sm:$0xff]  }
 0x1f9   :  { %5626 = vmatpush1.bf16.msra.mxu0 %v10640_v18  ;;  %6142 = vmatpush1.bf16.msra.mxu1 %v10643_v19  ;;  %v10715_v18 = vld [vmem:[#allocation7 + $0xca8] ss:$16 sps:$4 sm:$0xff]   ;;  %v10720_v19 = vld [vmem:[#allocation7 + $0xcc4] ss:$16 sps:$4 sm:$0xff]  }
 0x1fa   :  { %5627 = vmatprep.subr.bf16.mxu0 %v10648_v20  ;;  %6143 = vmatprep.subr.bf16.mxu1 %v10651_v21  ;;  %v10723_v20 = vld [vmem:[#allocation7 + $0xccc] ss:$16 sps:$4 sm:$0xff]   ;;  %v10718_v21 = vld [vmem:[#allocation7 + $0xcc0] ss:$16 sps:$4 sm:$0xff]  }
 0x1fd   :  { %5628 = vmatpush1.bf16.msra.mxu0 %v10646_v22  ;;  %6144 = vmatpush1.bf16.msra.mxu1 %v10649_v23  ;;  %v10721_v22 = vld [vmem:[#allocation7 + $0xcc8] ss:$16 sps:$4 sm:$0xff]   ;;  %v10726_v23 = vld [vmem:[#allocation7 + $0xce4] ss:$16 sps:$4 sm:$0xff]  }
 0x1fe   :  { %5629 = vmatprep.subr.bf16.mxu0 %v10654_v59  ;;  %6145 = vmatprep.subr.bf16.mxu1 %v10657_v63  ;;  %v10729_v59 = vld [vmem:[#allocation7 + $0xcec] ss:$16 sps:$4 sm:$0xff]   ;;  %v10724_v63 = vld [vmem:[#allocation7 + $0xce0] ss:$16 sps:$4 sm:$0xff]  }
 0x201   :  { %5630 = vmatpush1.bf16.msra.mxu0 %v10652_v24  ;;  %6146 = vmatpush1.bf16.msra.mxu1 %v10655_v25  ;;  %v10727_v24 = vld [vmem:[#allocation7 + $0xce8] ss:$16 sps:$4 sm:$0xff]   ;;  %v10732_v25 = vld [vmem:[#allocation7 + $0xd04] ss:$16 sps:$4 sm:$0xff]  }
 0x202   :  { %5631 = vmatprep.subr.bf16.mxu0 %v10660_v26  ;;  %6147 = vmatprep.subr.bf16.mxu1 %v10663_v27  ;;  %v10735_v26 = vld [vmem:[#allocation7 + $0xd0c] ss:$16 sps:$4 sm:$0xff]   ;;  %v10730_v27 = vld [vmem:[#allocation7 + $0xd00] ss:$16 sps:$4 sm:$0xff]  }
 0x205   :  { %5632 = vmatpush1.bf16.msra.mxu0 %v10658_v28  ;;  %6148 = vmatpush1.bf16.msra.mxu1 %v10661_v29  ;;  %v10733_v28 = vld [vmem:[#allocation7 + $0xd08] ss:$16 sps:$4 sm:$0xff]   ;;  %v10738_v29 = vld [vmem:[#allocation7 + $0xd24] ss:$16 sps:$4 sm:$0xff]  }
 0x206   :  { %5633 = vmatprep.subr.bf16.mxu0 %v10666_v30  ;;  %6149 = vmatprep.subr.bf16.mxu1 %v10669_v31  ;;  %v10741_v30 = vld [vmem:[#allocation7 + $0xd2c] ss:$16 sps:$4 sm:$0xff]   ;;  %v10736_v31 = vld [vmem:[#allocation7 + $0xd20] ss:$16 sps:$4 sm:$0xff]  }
 0x209   :  { %5634 = vmatpush1.bf16.msra.mxu0 %v10664_v34  ;;  %6150 = vmatpush1.bf16.msra.mxu1 %v10667_v35  ;;  %v10747_v34 = vld [vmem:[#allocation7 + $0xd4c] ss:$16 sps:$4 sm:$0xff]   ;;  %v10742_v35 = vld [vmem:[#allocation7 + $0xd40] ss:$16 sps:$4 sm:$0xff]  }
 0x20a   :  { %5635 = vmatprep.subr.bf16.mxu0 %v10672_v40  ;;  %6151 = vmatprep.subr.bf16.mxu1 %v10675_v41  ;;  %v10753_v40 = vld [vmem:[#allocation7 + $0xd6c] ss:$16 sps:$4 sm:$0xff]   ;;  %v10748_v41 = vld [vmem:[#allocation7 + $0xd60] ss:$16 sps:$4 sm:$0xff]  }
 0x20d   :  { %5636 = vmatpush1.bf16.msra.mxu0 %v10670_v45  ;;  %6152 = vmatpush1.bf16.msra.mxu1 %v10673_v15  ;;  %v10757_v45 = vld [vmem:[#allocation7 + $0xd88] ss:$16 sps:$4 sm:$0xff]   ;;  %v10762_v15 = vld [vmem:[#allocation7 + $0xda4] ss:$16 sps:$4 sm:$0xff]  }
 0x20e   :  { %5637 = vmatprep.subr.bf16.mxu0 %v10678_v17  ;;  %6153 = vmatprep.subr.bf16.mxu1 %v10681_v47  ;;  %v10765_v17 = vld [vmem:[#allocation7 + $0xdac] ss:$16 sps:$4 sm:$0xff]   ;;  %v8763_v47 = vld [vmem:[%s12365_s8 + $0x10] sm:$0x1] }
 0x211   :  { %5638 = vmatpush1.bf16.msra.mxu0 %v10676_v48  ;;  %6154 = vmatpush1.bf16.msra.mxu1 %v10679_v49  ;;  %v8764_v48 = vld [vmem:[%s12365_s8 + $0x11] sm:$0x1] }
 0x212   :  { %5650 = vmatprep.subr.bf16.mxu0 %v10684_v50  ;;  %6166 = vmatprep.subr.bf16.mxu1 %v10687_v51  ;;  %v10760_v49 = vld [vmem:[#allocation7 + $0xda0] ss:$16 sps:$4 sm:$0xff]   ;;  %v10763_v50 = vld [vmem:[#allocation7 + $0xda8] ss:$16 sps:$4 sm:$0xff]   ;;  %v398_v51 = vunpack.c.l.bf16 %v8763_v47 }
 0x213   :  { %v10835_v47 = vld [vmem:[#allocation7 + $0xf28] ss:$16 sps:$4 sm:$0xff]  }
 0x214   :  { %5640 = vmatmul.mubr.bf16.vlgmr.msra.gmra.mrb[0].mxu0 %v8781_v54  ;;  %6156 = vmatmul.mubr.bf16.vlgmr.msra.gmra.mrb[0].mxu1 %v8781_v54  ;;  %v414_v54 = vunpack.c.l.bf16 %v8764_v48  ;;  %v10840_v48 = vld [vmem:[#allocation7 + $0xf44] ss:$16 sps:$4 sm:$0xff]  }
 0x215   :  { %5651 = vmatpush1.bf16.msra.mxu0 %v10682_v55  ;;  %6167 = vmatpush1.bf16.msra.mxu1 %v10685_v56  ;;  %v10768_v55 = vld [vmem:[#allocation7 + $0xdc4] ss:$16 sps:$4 sm:$0xff]   ;;  %v10771_v56 = vld [vmem:[#allocation7 + $0xdcc] ss:$16 sps:$4 sm:$0xff]  }
 0x216   :  { %5652 = vmatprep.subr.bf16.mxu0 %v10690_v57  ;;  %6168 = vmatprep.subr.bf16.mxu1 %v10693_v58  ;;  %v404_v57 = vsel %vm148_vm0, %v398_v51, %v11932_v1  ;;  %v420_v58 = vsel %vm148_vm0, %v414_v54, %v11932_v1  ;;  %v10841_v51 = vld [vmem:[#allocation7 + $0xf48] ss:$16 sps:$4 sm:$0xff]   ;;  %v10846_v54 = vld [vmem:[#allocation7 + $0xf64] ss:$16 sps:$4 sm:$0xff]  }
 0x217   :  { %5682 = vmatprep.mubr.bf16.mxu0 %v8784_v61  ;;  %6198 = vmatprep.mubr.bf16.mxu1 %v8784_v61  ;;  %v406_v61 = vpack.c.bf16 %v11873_v60, %v404_v57  ;;  %v10847_v57 = vld [vmem:[#allocation7 + $0xf68] ss:$16 sps:$4 sm:$0xff]  }
 0x219   :  { %5653 = vmatpush1.bf16.msra.mxu0 %v10688_v3  ;;  %6169 = vmatpush1.bf16.msra.mxu1 %v10691_v4  ;;  %v422_v3 = vpack.c.bf16 %v11873_v60, %v420_v58  ;;  %v10766_v4 = vld [vmem:[#allocation7 + $0xdc0] ss:$16 sps:$4 sm:$0xff]   ;;  %408 = vst [vmem:[#allocation20 + $0x40] sm:$0xf] %v406_v61  ;;  %v10852_v58 = vld [vmem:[#allocation7 + $0xf84] ss:$16 sps:$4 sm:$0xff]  }
 0x21a   :  { %5654 = vmatprep.subr.bf16.mxu0 %v10696_v37  ;;  %6170 = vmatprep.subr.bf16.mxu1 %v10699_v38  ;;  %v10769_v37 = vld [vmem:[#allocation7 + $0xdc8] ss:$16 sps:$4 sm:$0xff]   ;;  %v10774_v38 = vld [vmem:[#allocation7 + $0xde4] ss:$16 sps:$4 sm:$0xff]   ;;  %v10855_v61 = vld [vmem:[#allocation7 + $0xf8c] ss:$16 sps:$4 sm:$0xff]  }
 0x21b   :  { %424 = vst [vmem:[#allocation20 + $0x44] sm:$0xf] %v422_v3  ;;  %v10850_v3 = vld [vmem:[#allocation7 + $0xf80] ss:$16 sps:$4 sm:$0xff]  }
 0x21d   :  { %5655 = vmatpush1.bf16.msra.mxu0 %v10694_v5  ;;  %6171 = vmatpush1.bf16.msra.mxu1 %v10697_v6  ;;  %v10777_v5 = vld [vmem:[#allocation7 + $0xdec] ss:$16 sps:$4 sm:$0xff]   ;;  %v10772_v6 = vld [vmem:[#allocation7 + $0xde0] ss:$16 sps:$4 sm:$0xff]  }
 0x21e   :  { %5656 = vmatprep.subr.bf16.mxu0 %v10702_v7  ;;  %6172 = vmatprep.subr.bf16.mxu1 %v10705_v8  ;;  %v10775_v7 = vld [vmem:[#allocation7 + $0xde8] ss:$16 sps:$4 sm:$0xff]   ;;  %v10780_v8 = vld [vmem:[#allocation7 + $0xe04] ss:$16 sps:$4 sm:$0xff]  }
 0x221   :  { %5657 = vmatpush1.bf16.msra.mxu0 %v10700_v62  ;;  %6173 = vmatpush1.bf16.msra.mxu1 %v10703_v0  ;;  %v10783_v62 = vld [vmem:[#allocation7 + $0xe0c] ss:$16 sps:$4 sm:$0xff]  }
 0x222   :  { %5658 = vmatprep.subr.bf16.mxu0 %v10708_v9  ;;  %6174 = vmatprep.subr.bf16.mxu1 %v10711_v10  ;;  %v12238_v0 = vld [vmem:[#allocation20 + $0x38] sm:$0xff]  ;;  %v8783_v10 = vcombine.low %v12216_v52, %v12218_v53 }
 0x223   :  { %v12240_v9 = vld [vmem:[#allocation20 + $0x98] sm:$0xff] }
 0x224   :  { %v10792_v52 = vld [vmem:[#allocation7 + $0xe44] ss:$16 sps:$4 sm:$0xff]   ;;  %v10795_v53 = vld [vmem:[#allocation7 + $0xe4c] ss:$16 sps:$4 sm:$0xff]  }
 0x225   :  { %5659 = vmatpush1.bf16.msra.mxu0 %v10706_v11  ;;  %6175 = vmatpush1.bf16.msra.mxu1 %v10709_v12  ;;  %v10778_v11 = vld [vmem:[#allocation7 + $0xe00] ss:$16 sps:$4 sm:$0xff]   ;;  %v10781_v12 = vld [vmem:[#allocation7 + $0xe08] ss:$16 sps:$4 sm:$0xff]  }
 0x226   :  { %5660 = vmatprep.subr.bf16.mxu0 %v10714_v13  ;;  %6176 = vmatprep.subr.bf16.mxu1 %v10717_v14  ;;  %v10786_v13 = vld [vmem:[#allocation7 + $0xe24] ss:$16 sps:$4 sm:$0xff]   ;;  %v10789_v14 = vld [vmem:[#allocation7 + $0xe2c] ss:$16 sps:$4 sm:$0xff]  }
 0x229   :  { %5661 = vmatpush1.bf16.msra.mxu0 %v10712_v16  ;;  %6177 = vmatpush1.bf16.msra.mxu1 %v10715_v18  ;;  %v8786_v16 = vcombine.high %v12238_v0, %v12240_v9  ;;  %v10784_v18 = vld [vmem:[#allocation7 + $0xe20] ss:$16 sps:$4 sm:$0xff]  }
 0x22a   :  { %5662 = vmatprep.subr.bf16.mxu0 %v10720_v19  ;;  %6178 = vmatprep.subr.bf16.mxu1 %v10723_v20  ;;  %v10787_v19 = vld [vmem:[#allocation7 + $0xe28] ss:$16 sps:$4 sm:$0xff]   ;;  %v10790_v20 = vld [vmem:[#allocation7 + $0xe40] ss:$16 sps:$4 sm:$0xff]  }
 0x22d   :  { %5663 = vmatpush1.bf16.msra.mxu0 %v10718_v21  ;;  %6179 = vmatpush1.bf16.msra.mxu1 %v10721_v22  ;;  %v10793_v21 = vld [vmem:[#allocation7 + $0xe48] ss:$16 sps:$4 sm:$0xff]   ;;  %v10798_v22 = vld [vmem:[#allocation7 + $0xe64] ss:$16 sps:$4 sm:$0xff]  }
 0x22e   :  { %5664 = vmatprep.subr.bf16.mxu0 %v10726_v23  ;;  %6180 = vmatprep.subr.bf16.mxu1 %v10729_v59  ;;  %v10801_v23 = vld [vmem:[#allocation7 + $0xe6c] ss:$16 sps:$4 sm:$0xff]   ;;  %v10796_v59 = vld [vmem:[#allocation7 + $0xe60] ss:$16 sps:$4 sm:$0xff]  }
 0x231   :  { %5665 = vmatpush1.bf16.msra.mxu0 %v10724_v63  ;;  %6181 = vmatpush1.bf16.msra.mxu1 %v10727_v24  ;;  %v10799_v63 = vld [vmem:[#allocation7 + $0xe68] ss:$16 sps:$4 sm:$0xff]   ;;  %v10804_v24 = vld [vmem:[#allocation7 + $0xe84] ss:$16 sps:$4 sm:$0xff]  }
 0x232   :  { %5666 = vmatprep.subr.bf16.mxu0 %v10732_v25  ;;  %6182 = vmatprep.subr.bf16.mxu1 %v10735_v26  ;;  %v10807_v25 = vld [vmem:[#allocation7 + $0xe8c] ss:$16 sps:$4 sm:$0xff]   ;;  %v10802_v26 = vld [vmem:[#allocation7 + $0xe80] ss:$16 sps:$4 sm:$0xff]  }
 0x235   :  { %5667 = vmatpush1.bf16.msra.mxu0 %v10730_v27  ;;  %6183 = vmatpush1.bf16.msra.mxu1 %v10733_v28  ;;  %v10805_v27 = vld [vmem:[#allocation7 + $0xe88] ss:$16 sps:$4 sm:$0xff]   ;;  %v10810_v28 = vld [vmem:[#allocation7 + $0xea4] ss:$16 sps:$4 sm:$0xff]  }
 0x236   :  { %5668 = vmatprep.subr.bf16.mxu0 %v10738_v29  ;;  %6184 = vmatprep.subr.bf16.mxu1 %v10741_v30  ;;  %v10813_v29 = vld [vmem:[#allocation7 + $0xeac] ss:$16 sps:$4 sm:$0xff]   ;;  %v10808_v30 = vld [vmem:[#allocation7 + $0xea0] ss:$16 sps:$4 sm:$0xff]  }
 0x239   :  { %5669 = vmatpush1.bf16.msra.mxu0 %v10736_v31  ;;  %6185 = vmatpush1.bf16.msra.mxu1 %v10739_v32  ;;  %v10811_v31 = vld [vmem:[#allocation7 + $0xea8] ss:$16 sps:$4 sm:$0xff]   ;;  %v10816_v32 = vld [vmem:[#allocation7 + $0xec4] ss:$16 sps:$4 sm:$0xff]  }
 0x23a   :  { %5670 = vmatprep.subr.bf16.mxu0 %v10744_v33  ;;  %6186 = vmatprep.subr.bf16.mxu1 %v10747_v34  ;;  %v10819_v33 = vld [vmem:[#allocation7 + $0xecc] ss:$16 sps:$4 sm:$0xff]   ;;  %v10814_v34 = vld [vmem:[#allocation7 + $0xec0] ss:$16 sps:$4 sm:$0xff]  }
 0x23d   :  { %5671 = vmatpush1.bf16.msra.mxu0 %v10742_v35  ;;  %6187 = vmatpush1.bf16.msra.mxu1 %v10745_v36  ;;  %v10817_v35 = vld [vmem:[#allocation7 + $0xec8] ss:$16 sps:$4 sm:$0xff]   ;;  %v10822_v36 = vld [vmem:[#allocation7 + $0xee4] ss:$16 sps:$4 sm:$0xff]  }
 0x23e   :  { %5672 = vmatprep.subr.bf16.mxu0 %v10750_v39  ;;  %6188 = vmatprep.subr.bf16.mxu1 %v10753_v40  ;;  %v10825_v39 = vld [vmem:[#allocation7 + $0xeec] ss:$16 sps:$4 sm:$0xff]   ;;  %v10820_v40 = vld [vmem:[#allocation7 + $0xee0] ss:$16 sps:$4 sm:$0xff]  }
 0x241   :  { %5673 = vmatpush1.bf16.msra.mxu0 %v10748_v41  ;;  %6189 = vmatpush1.bf16.msra.mxu1 %v10751_v42  ;;  %v10823_v41 = vld [vmem:[#allocation7 + $0xee8] ss:$16 sps:$4 sm:$0xff]   ;;  %v10828_v42 = vld [vmem:[#allocation7 + $0xf04] ss:$16 sps:$4 sm:$0xff]  }
 0x242   :  { %5674 = vmatprep.subr.bf16.mxu0 %v10756_v2  ;;  %6190 = vmatprep.subr.bf16.mxu1 %v10759_v43  ;;  %v10831_v2 = vld [vmem:[#allocation7 + $0xf0c] ss:$16 sps:$4 sm:$0xff]   ;;  %v10826_v43 = vld [vmem:[#allocation7 + $0xf00] ss:$16 sps:$4 sm:$0xff]  }
 0x245   :  { %5675 = vmatpush1.bf16.msra.mxu0 %v10754_v44  ;;  %6191 = vmatpush1.bf16.msra.mxu1 %v10757_v45  ;;  %v10829_v44 = vld [vmem:[#allocation7 + $0xf08] ss:$16 sps:$4 sm:$0xff]   ;;  %v10834_v45 = vld [vmem:[#allocation7 + $0xf24] ss:$16 sps:$4 sm:$0xff]  }
 0x246   :  { %5676 = vmatprep.subr.bf16.mxu0 %v10762_v15  ;;  %6192 = vmatprep.subr.bf16.mxu1 %v10765_v17  ;;  %v10837_v15 = vld [vmem:[#allocation7 + $0xf2c] ss:$16 sps:$4 sm:$0xff]   ;;  %v10832_v17 = vld [vmem:[#allocation7 + $0xf20] ss:$16 sps:$4 sm:$0xff]  }
 0x249   :  { %5677 = vmatpush1.bf16.msra.mxu0 %v10760_v49  ;;  %6193 = vmatpush1.bf16.msra.mxu1 %v10763_v50  ;;  %v10843_v49 = vld [vmem:[#allocation7 + $0xf4c] ss:$16 sps:$4 sm:$0xff]   ;;  %v10838_v50 = vld [vmem:[#allocation7 + $0xf40] ss:$16 sps:$4 sm:$0xff]  }
 0x24a   :  { %5678 = vmatprep.subr.bf16.mxu0 %v10768_v55  ;;  %6194 = vmatprep.subr.bf16.mxu1 %v10771_v56  ;;  %v10849_v55 = vld [vmem:[#allocation7 + $0xf6c] ss:$16 sps:$4 sm:$0xff]   ;;  %v10844_v56 = vld [vmem:[#allocation7 + $0xf60] ss:$16 sps:$4 sm:$0xff]  }
 0x24d   :  { %5679 = vmatpush1.bf16.msra.mxu0 %v10766_v4  ;;  %6195 = vmatpush1.bf16.msra.mxu1 %v10769_v37  ;;  %v10853_v4 = vld [vmem:[#allocation7 + $0xf88] ss:$16 sps:$4 sm:$0xff]   ;;  %v10858_v37 = vld [vmem:[#allocation7 + $0xfa4] ss:$16 sps:$4 sm:$0xff]  }
 0x24e   :  { %5680 = vmatprep.subr.bf16.mxu0 %v10774_v38  ;;  %6196 = vmatprep.subr.bf16.mxu1 %v10777_v5  ;;  %v10861_v38 = vld [vmem:[#allocation7 + $0xfac] ss:$16 sps:$4 sm:$0xff]   ;;  %v8765_v5 = vld [vmem:[%s12365_s8 + $0x12] sm:$0x1] }
 0x251   :  { %5681 = vmatpush1.bf16.msra.mxu0 %v10772_v6  ;;  %6197 = vmatpush1.bf16.msra.mxu1 %v10775_v7  ;;  %v8766_v6 = vld [vmem:[%s12365_s8 + $0x13] sm:$0x1] }
 0x252   :  { %5693 = vmatprep.subr.bf16.mxu0 %v10780_v8  ;;  %6209 = vmatprep.subr.bf16.mxu1 %v10783_v62  ;;  %v10856_v7 = vld [vmem:[#allocation7 + $0xfa0] ss:$16 sps:$4 sm:$0xff]   ;;  %v10859_v8 = vld [vmem:[#allocation7 + $0xfa8] ss:$16 sps:$4 sm:$0xff]   ;;  %v430_v62 = vunpack.c.l.bf16 %v8765_v5 }
 0x253   :  { %v10931_v5 = vld [vmem:[#allocation7 + $0x1128] ss:$16 sps:$4 sm:$0xff]  }
 0x254   :  { %5683 = vmatmul.mubr.bf16.vlgmr.msra.gmra.mrb[0].mxu0 %v8783_v10  ;;  %6199 = vmatmul.mubr.bf16.vlgmr.msra.gmra.mrb[0].mxu1 %v8783_v10  ;;  %v446_v10 = vunpack.c.l.bf16 %v8766_v6  ;;  %v10936_v6 = vld [vmem:[#allocation7 + $0x1144] ss:$16 sps:$4 sm:$0xff]  }
 0x255   :  { %5694 = vmatpush1.bf16.msra.mxu0 %v10778_v11  ;;  %6210 = vmatpush1.bf16.msra.mxu1 %v10781_v12  ;;  %v10864_v11 = vld [vmem:[#allocation7 + $0xfc4] ss:$16 sps:$4 sm:$0xff]   ;;  %v10867_v12 = vld [vmem:[#allocation7 + $0xfcc] ss:$16 sps:$4 sm:$0xff]  }
 0x256   :  { %5695 = vmatprep.subr.bf16.mxu0 %v10786_v13  ;;  %6211 = vmatprep.subr.bf16.mxu1 %v10789_v14  ;;  %v436_v13 = vsel %vm148_vm0, %v430_v62, %v11932_v1  ;;  %v452_v14 = vsel %vm148_vm0, %v446_v10, %v11932_v1  ;;  %v10937_v62 = vld [vmem:[#allocation7 + $0x1148] ss:$16 sps:$4 sm:$0xff]   ;;  %v10942_v10 = vld [vmem:[#allocation7 + $0x1164] ss:$16 sps:$4 sm:$0xff]  }
 0x257   :  { %5725 = vmatprep.mubr.bf16.mxu0 %v8786_v16  ;;  %6241 = vmatprep.mubr.bf16.mxu1 %v8786_v16  ;;  %v438_v16 = vpack.c.bf16 %v11873_v60, %v436_v13  ;;  %v10943_v13 = vld [vmem:[#allocation7 + $0x1168] ss:$16 sps:$4 sm:$0xff]  }
 0x259   :  { %5696 = vmatpush1.bf16.msra.mxu0 %v10784_v18  ;;  %6212 = vmatpush1.bf16.msra.mxu1 %v10787_v19  ;;  %v454_v18 = vpack.c.bf16 %v11873_v60, %v452_v14  ;;  %v10862_v19 = vld [vmem:[#allocation7 + $0xfc0] ss:$16 sps:$4 sm:$0xff]   ;;  %440 = vst [vmem:[#allocation20 + $0x48] sm:$0xf] %v438_v16  ;;  %v10948_v14 = vld [vmem:[#allocation7 + $0x1184] ss:$16 sps:$4 sm:$0xff]  }
 0x25a   :  { %5697 = vmatprep.subr.bf16.mxu0 %v10792_v52  ;;  %6213 = vmatprep.subr.bf16.mxu1 %v10795_v53  ;;  %v10865_v52 = vld [vmem:[#allocation7 + $0xfc8] ss:$16 sps:$4 sm:$0xff]   ;;  %v10870_v53 = vld [vmem:[#allocation7 + $0xfe4] ss:$16 sps:$4 sm:$0xff]   ;;  %v10951_v16 = vld [vmem:[#allocation7 + $0x118c] ss:$16 sps:$4 sm:$0xff]  }
 0x25b   :  { %456 = vst [vmem:[#allocation20 + $0x4c] sm:$0xf] %v454_v18  ;;  %v10946_v18 = vld [vmem:[#allocation7 + $0x1180] ss:$16 sps:$4 sm:$0xff]  }
 0x25d   :  { %5698 = vmatpush1.bf16.msra.mxu0 %v10790_v20  ;;  %6214 = vmatpush1.bf16.msra.mxu1 %v10793_v21  ;;  %v10873_v20 = vld [vmem:[#allocation7 + $0xfec] ss:$16 sps:$4 sm:$0xff]   ;;  %v10868_v21 = vld [vmem:[#allocation7 + $0xfe0] ss:$16 sps:$4 sm:$0xff]  }
 0x25e   :  { %5699 = vmatprep.subr.bf16.mxu0 %v10798_v22  ;;  %6215 = vmatprep.subr.bf16.mxu1 %v10801_v23  ;;  %v10871_v22 = vld [vmem:[#allocation7 + $0xfe8] ss:$16 sps:$4 sm:$0xff]   ;;  %v10876_v23 = vld [vmem:[#allocation7 + $0x1004] ss:$16 sps:$4 sm:$0xff]  }
 0x261   :  { %5700 = vmatpush1.bf16.msra.mxu0 %v10796_v59  ;;  %6216 = vmatpush1.bf16.msra.mxu1 %v10799_v63  ;;  %v10879_v59 = vld [vmem:[#allocation7 + $0x100c] ss:$16 sps:$4 sm:$0xff]  }
 0x262   :  { %5701 = vmatprep.subr.bf16.mxu0 %v10804_v24  ;;  %6217 = vmatprep.subr.bf16.mxu1 %v10807_v25  ;;  %v12260_v63 = vld [vmem:[#allocation20 + $0x40] sm:$0xff]  ;;  %v8785_v25 = vcombine.low %v12238_v0, %v12240_v9 }
 0x263   :  { %v12262_v24 = vld [vmem:[#allocation20 + $0xa0] sm:$0xff] }
 0x264   :  { %v10888_v0 = vld [vmem:[#allocation7 + $0x1044] ss:$16 sps:$4 sm:$0xff]   ;;  %v10891_v9 = vld [vmem:[#allocation7 + $0x104c] ss:$16 sps:$4 sm:$0xff]  }
 0x265   :  { %5702 = vmatpush1.bf16.msra.mxu0 %v10802_v26  ;;  %6218 = vmatpush1.bf16.msra.mxu1 %v10805_v27  ;;  %v10874_v26 = vld [vmem:[#allocation7 + $0x1000] ss:$16 sps:$4 sm:$0xff]   ;;  %v10877_v27 = vld [vmem:[#allocation7 + $0x1008] ss:$16 sps:$4 sm:$0xff]  }
 0x266   :  { %5703 = vmatprep.subr.bf16.mxu0 %v10810_v28  ;;  %6219 = vmatprep.subr.bf16.mxu1 %v10813_v29  ;;  %v10882_v28 = vld [vmem:[#allocation7 + $0x1024] ss:$16 sps:$4 sm:$0xff]   ;;  %v10885_v29 = vld [vmem:[#allocation7 + $0x102c] ss:$16 sps:$4 sm:$0xff]  }
 0x269   :  { %5704 = vmatpush1.bf16.msra.mxu0 %v10808_v30  ;;  %6220 = vmatpush1.bf16.msra.mxu1 %v10811_v31  ;;  %v8788_v30 = vcombine.high %v12260_v63, %v12262_v24  ;;  %v10880_v31 = vld [vmem:[#allocation7 + $0x1020] ss:$16 sps:$4 sm:$0xff]  }
 0x26a   :  { %5705 = vmatprep.subr.bf16.mxu0 %v10816_v32  ;;  %6221 = vmatprep.subr.bf16.mxu1 %v10819_v33  ;;  %v10883_v32 = vld [vmem:[#allocation7 + $0x1028] ss:$16 sps:$4 sm:$0xff]   ;;  %v10886_v33 = vld [vmem:[#allocation7 + $0x1040] ss:$16 sps:$4 sm:$0xff]  }
 0x26d   :  { %5706 = vmatpush1.bf16.msra.mxu0 %v10814_v34  ;;  %6222 = vmatpush1.bf16.msra.mxu1 %v10817_v35  ;;  %v10889_v34 = vld [vmem:[#allocation7 + $0x1048] ss:$16 sps:$4 sm:$0xff]   ;;  %v10894_v35 = vld [vmem:[#allocation7 + $0x1064] ss:$16 sps:$4 sm:$0xff]  }
 0x26e   :  { %5707 = vmatprep.subr.bf16.mxu0 %v10822_v36  ;;  %6223 = vmatprep.subr.bf16.mxu1 %v10825_v39  ;;  %v10897_v36 = vld [vmem:[#allocation7 + $0x106c] ss:$16 sps:$4 sm:$0xff]   ;;  %v10892_v39 = vld [vmem:[#allocation7 + $0x1060] ss:$16 sps:$4 sm:$0xff]  }
 0x271   :  { %5708 = vmatpush1.bf16.msra.mxu0 %v10820_v40  ;;  %6224 = vmatpush1.bf16.msra.mxu1 %v10823_v41  ;;  %v10895_v40 = vld [vmem:[#allocation7 + $0x1068] ss:$16 sps:$4 sm:$0xff]   ;;  %v10900_v41 = vld [vmem:[#allocation7 + $0x1084] ss:$16 sps:$4 sm:$0xff]  }
 0x272   :  { %5709 = vmatprep.subr.bf16.mxu0 %v10828_v42  ;;  %6225 = vmatprep.subr.bf16.mxu1 %v10831_v2  ;;  %v10903_v42 = vld [vmem:[#allocation7 + $0x108c] ss:$16 sps:$4 sm:$0xff]   ;;  %v10898_v2 = vld [vmem:[#allocation7 + $0x1080] ss:$16 sps:$4 sm:$0xff]  }
 0x275   :  { %5710 = vmatpush1.bf16.msra.mxu0 %v10826_v43  ;;  %6226 = vmatpush1.bf16.msra.mxu1 %v10829_v44  ;;  %v10901_v43 = vld [vmem:[#allocation7 + $0x1088] ss:$16 sps:$4 sm:$0xff]   ;;  %v10906_v44 = vld [vmem:[#allocation7 + $0x10a4] ss:$16 sps:$4 sm:$0xff]  }
 0x276   :  { %5711 = vmatprep.subr.bf16.mxu0 %v10834_v45  ;;  %6227 = vmatprep.subr.bf16.mxu1 %v10837_v15  ;;  %v10909_v45 = vld [vmem:[#allocation7 + $0x10ac] ss:$16 sps:$4 sm:$0xff]   ;;  %v10904_v15 = vld [vmem:[#allocation7 + $0x10a0] ss:$16 sps:$4 sm:$0xff]  }
 0x279   :  { %5712 = vmatpush1.bf16.msra.mxu0 %v10832_v17  ;;  %6228 = vmatpush1.bf16.msra.mxu1 %v10835_v47  ;;  %v10907_v17 = vld [vmem:[#allocation7 + $0x10a8] ss:$16 sps:$4 sm:$0xff]   ;;  %v10912_v47 = vld [vmem:[#allocation7 + $0x10c4] ss:$16 sps:$4 sm:$0xff]  }
 0x27a   :  { %5713 = vmatprep.subr.bf16.mxu0 %v10840_v48  ;;  %6229 = vmatprep.subr.bf16.mxu1 %v10843_v49  ;;  %v10915_v48 = vld [vmem:[#allocation7 + $0x10cc] ss:$16 sps:$4 sm:$0xff]   ;;  %v10910_v49 = vld [vmem:[#allocation7 + $0x10c0] ss:$16 sps:$4 sm:$0xff]  }
 0x27d   :  { %5714 = vmatpush1.bf16.msra.mxu0 %v10838_v50  ;;  %6230 = vmatpush1.bf16.msra.mxu1 %v10841_v51  ;;  %v10913_v50 = vld [vmem:[#allocation7 + $0x10c8] ss:$16 sps:$4 sm:$0xff]   ;;  %v10918_v51 = vld [vmem:[#allocation7 + $0x10e4] ss:$16 sps:$4 sm:$0xff]  }
 0x27e   :  { %5715 = vmatprep.subr.bf16.mxu0 %v10846_v54  ;;  %6231 = vmatprep.subr.bf16.mxu1 %v10849_v55  ;;  %v10921_v54 = vld [vmem:[#allocation7 + $0x10ec] ss:$16 sps:$4 sm:$0xff]   ;;  %v10916_v55 = vld [vmem:[#allocation7 + $0x10e0] ss:$16 sps:$4 sm:$0xff]  }
 0x281   :  { %5716 = vmatpush1.bf16.msra.mxu0 %v10844_v56  ;;  %6232 = vmatpush1.bf16.msra.mxu1 %v10847_v57  ;;  %v10919_v56 = vld [vmem:[#allocation7 + $0x10e8] ss:$16 sps:$4 sm:$0xff]   ;;  %v10924_v57 = vld [vmem:[#allocation7 + $0x1104] ss:$16 sps:$4 sm:$0xff]  }
 0x282   :  { %5717 = vmatprep.subr.bf16.mxu0 %v10852_v58  ;;  %6233 = vmatprep.subr.bf16.mxu1 %v10855_v61  ;;  %v10927_v58 = vld [vmem:[#allocation7 + $0x110c] ss:$16 sps:$4 sm:$0xff]   ;;  %v10922_v61 = vld [vmem:[#allocation7 + $0x1100] ss:$16 sps:$4 sm:$0xff]  }
 0x285   :  { %5718 = vmatpush1.bf16.msra.mxu0 %v10850_v3  ;;  %6234 = vmatpush1.bf16.msra.mxu1 %v10853_v4  ;;  %v10925_v3 = vld [vmem:[#allocation7 + $0x1108] ss:$16 sps:$4 sm:$0xff]   ;;  %v10930_v4 = vld [vmem:[#allocation7 + $0x1124] ss:$16 sps:$4 sm:$0xff]  }
 0x286   :  { %5719 = vmatprep.subr.bf16.mxu0 %v10858_v37  ;;  %6235 = vmatprep.subr.bf16.mxu1 %v10861_v38  ;;  %v10933_v37 = vld [vmem:[#allocation7 + $0x112c] ss:$16 sps:$4 sm:$0xff]   ;;  %v10928_v38 = vld [vmem:[#allocation7 + $0x1120] ss:$16 sps:$4 sm:$0xff]  }
 0x289   :  { %5720 = vmatpush1.bf16.msra.mxu0 %v10856_v7  ;;  %6236 = vmatpush1.bf16.msra.mxu1 %v10859_v8  ;;  %v10939_v7 = vld [vmem:[#allocation7 + $0x114c] ss:$16 sps:$4 sm:$0xff]   ;;  %v10934_v8 = vld [vmem:[#allocation7 + $0x1140] ss:$16 sps:$4 sm:$0xff]  }
 0x28a   :  { %5721 = vmatprep.subr.bf16.mxu0 %v10864_v11  ;;  %6237 = vmatprep.subr.bf16.mxu1 %v10867_v12  ;;  %v10945_v11 = vld [vmem:[#allocation7 + $0x116c] ss:$16 sps:$4 sm:$0xff]   ;;  %v10940_v12 = vld [vmem:[#allocation7 + $0x1160] ss:$16 sps:$4 sm:$0xff]  }
 0x28d   :  { %5722 = vmatpush1.bf16.msra.mxu0 %v10862_v19  ;;  %6238 = vmatpush1.bf16.msra.mxu1 %v10865_v52  ;;  %v10949_v19 = vld [vmem:[#allocation7 + $0x1188] ss:$16 sps:$4 sm:$0xff]   ;;  %v10954_v52 = vld [vmem:[#allocation7 + $0x11a4] ss:$16 sps:$4 sm:$0xff]  }
 0x28e   :  { %5723 = vmatprep.subr.bf16.mxu0 %v10870_v53  ;;  %6239 = vmatprep.subr.bf16.mxu1 %v10873_v20  ;;  %v10957_v53 = vld [vmem:[#allocation7 + $0x11ac] ss:$16 sps:$4 sm:$0xff]   ;;  %v8767_v20 = vld [vmem:[%s12365_s8 + $0x14] sm:$0x1] }
 0x291   :  { %5724 = vmatpush1.bf16.msra.mxu0 %v10868_v21  ;;  %6240 = vmatpush1.bf16.msra.mxu1 %v10871_v22  ;;  %v8768_v21 = vld [vmem:[%s12365_s8 + $0x15] sm:$0x1]  ;;  %v10952_v22 = vld [vmem:[#allocation7 + $0x11a0] ss:$16 sps:$4 sm:$0xff]  }
 0x292   :  { %5736 = vmatprep.subr.bf16.mxu0 %v10876_v23  ;;  %6252 = vmatprep.subr.bf16.mxu1 %v10879_v59  ;;  %v10955_v23 = vld [vmem:[#allocation7 + $0x11a8] ss:$16 sps:$4 sm:$0xff]   ;;  %v462_v59 = vunpack.c.l.bf16 %v8767_v20 }
 0x293   :  { %v11027_v20 = vld [vmem:[#allocation7 + $0x1328] ss:$16 sps:$4 sm:$0xff]  }
 0x294   :  { %5726 = vmatmul.mubr.bf16.vlgmr.msra.gmra.mrb[0].mxu0 %v8785_v25  ;;  %6242 = vmatmul.mubr.bf16.vlgmr.msra.gmra.mrb[0].mxu1 %v8785_v25  ;;  %v478_v25 = vunpack.c.l.bf16 %v8768_v21  ;;  %v11032_v21 = vld [vmem:[#allocation7 + $0x1344] ss:$16 sps:$4 sm:$0xff]  }
 0x295   :  { %5737 = vmatpush1.bf16.msra.mxu0 %v10874_v26  ;;  %6253 = vmatpush1.bf16.msra.mxu1 %v10877_v27  ;;  %v10960_v26 = vld [vmem:[#allocation7 + $0x11c4] ss:$16 sps:$4 sm:$0xff]   ;;  %v10963_v27 = vld [vmem:[#allocation7 + $0x11cc] ss:$16 sps:$4 sm:$0xff]  }
 0x296   :  { %5738 = vmatprep.subr.bf16.mxu0 %v10882_v28  ;;  %6254 = vmatprep.subr.bf16.mxu1 %v10885_v29  ;;  %v468_v28 = vsel %vm148_vm0, %v462_v59, %v11932_v1  ;;  %v484_v29 = vsel %vm148_vm0, %v478_v25, %v11932_v1  ;;  %v11033_v59 = vld [vmem:[#allocation7 + $0x1348] ss:$16 sps:$4 sm:$0xff]   ;;  %v11038_v25 = vld [vmem:[#allocation7 + $0x1364] ss:$16 sps:$4 sm:$0xff]  }
 0x297   :  { %5768 = vmatprep.mubr.bf16.mxu0 %v8788_v30  ;;  %6284 = vmatprep.mubr.bf16.mxu1 %v8788_v30  ;;  %v470_v30 = vpack.c.bf16 %v11873_v60, %v468_v28  ;;  %v11039_v28 = vld [vmem:[#allocation7 + $0x1368] ss:$16 sps:$4 sm:$0xff]  }
 0x299   :  { %5739 = vmatpush1.bf16.msra.mxu0 %v10880_v31  ;;  %6255 = vmatpush1.bf16.msra.mxu1 %v10883_v32  ;;  %v486_v31 = vpack.c.bf16 %v11873_v60, %v484_v29  ;;  %v10958_v32 = vld [vmem:[#allocation7 + $0x11c0] ss:$16 sps:$4 sm:$0xff]   ;;  %472 = vst [vmem:[#allocation20 + $0x50] sm:$0xf] %v470_v30  ;;  %v11044_v29 = vld [vmem:[#allocation7 + $0x1384] ss:$16 sps:$4 sm:$0xff]  }
 0x29a   :  { %5740 = vmatprep.subr.bf16.mxu0 %v10888_v0  ;;  %6256 = vmatprep.subr.bf16.mxu1 %v10891_v9  ;;  %v10961_v0 = vld [vmem:[#allocation7 + $0x11c8] ss:$16 sps:$4 sm:$0xff]   ;;  %v10966_v9 = vld [vmem:[#allocation7 + $0x11e4] ss:$16 sps:$4 sm:$0xff]   ;;  %v11047_v30 = vld [vmem:[#allocation7 + $0x138c] ss:$16 sps:$4 sm:$0xff]  }
 0x29b   :  { %488 = vst [vmem:[#allocation20 + $0x54] sm:$0xf] %v486_v31  ;;  %v11042_v31 = vld [vmem:[#allocation7 + $0x1380] ss:$16 sps:$4 sm:$0xff]  }
 0x29d   :  { %5741 = vmatpush1.bf16.msra.mxu0 %v10886_v33  ;;  %6257 = vmatpush1.bf16.msra.mxu1 %v10889_v34  ;;  %v10969_v33 = vld [vmem:[#allocation7 + $0x11ec] ss:$16 sps:$4 sm:$0xff]   ;;  %v10964_v34 = vld [vmem:[#allocation7 + $0x11e0] ss:$16 sps:$4 sm:$0xff]  }
 0x29e   :  { %5742 = vmatprep.subr.bf16.mxu0 %v10894_v35  ;;  %6258 = vmatprep.subr.bf16.mxu1 %v10897_v36  ;;  %v10967_v35 = vld [vmem:[#allocation7 + $0x11e8] ss:$16 sps:$4 sm:$0xff]   ;;  %v10972_v36 = vld [vmem:[#allocation7 + $0x1204] ss:$16 sps:$4 sm:$0xff]  }
 0x2a1   :  { %5743 = vmatpush1.bf16.msra.mxu0 %v10892_v39  ;;  %6259 = vmatpush1.bf16.msra.mxu1 %v10895_v40  ;;  %v10975_v39 = vld [vmem:[#allocation7 + $0x120c] ss:$16 sps:$4 sm:$0xff]  }
 0x2a2   :  { %5744 = vmatprep.subr.bf16.mxu0 %v10900_v41  ;;  %6260 = vmatprep.subr.bf16.mxu1 %v10903_v42  ;;  %v12282_v40 = vld [vmem:[#allocation20 + $0x48] sm:$0xff]  ;;  %v8787_v42 = vcombine.low %v12260_v63, %v12262_v24 }
 0x2a3   :  { %v12284_v41 = vld [vmem:[#allocation20 + $0xa8] sm:$0xff] }
 0x2a4   :  { %v10984_v63 = vld [vmem:[#allocation7 + $0x1244] ss:$16 sps:$4 sm:$0xff]   ;;  %v10987_v24 = vld [vmem:[#allocation7 + $0x124c] ss:$16 sps:$4 sm:$0xff]  }
 0x2a5   :  { %5745 = vmatpush1.bf16.msra.mxu0 %v10898_v2  ;;  %6261 = vmatpush1.bf16.msra.mxu1 %v10901_v43  ;;  %v10970_v2 = vld [vmem:[#allocation7 + $0x1200] ss:$16 sps:$4 sm:$0xff]   ;;  %v10973_v43 = vld [vmem:[#allocation7 + $0x1208] ss:$16 sps:$4 sm:$0xff]  }
 0x2a6   :  { %5746 = vmatprep.subr.bf16.mxu0 %v10906_v44  ;;  %6262 = vmatprep.subr.bf16.mxu1 %v10909_v45  ;;  %v10978_v44 = vld [vmem:[#allocation7 + $0x1224] ss:$16 sps:$4 sm:$0xff]   ;;  %v10981_v45 = vld [vmem:[#allocation7 + $0x122c] ss:$16 sps:$4 sm:$0xff]  }
 0x2a9   :  { %5747 = vmatpush1.bf16.msra.mxu0 %v10904_v15  ;;  %6263 = vmatpush1.bf16.msra.mxu1 %v10907_v17  ;;  %v8790_v15 = vcombine.high %v12282_v40, %v12284_v41  ;;  %v10976_v17 = vld [vmem:[#allocation7 + $0x1220] ss:$16 sps:$4 sm:$0xff]  }
 0x2aa   :  { %5748 = vmatprep.subr.bf16.mxu0 %v10912_v47  ;;  %6264 = vmatprep.subr.bf16.mxu1 %v10915_v48  ;;  %v10979_v47 = vld [vmem:[#allocation7 + $0x1228] ss:$16 sps:$4 sm:$0xff]   ;;  %v10982_v48 = vld [vmem:[#allocation7 + $0x1240] ss:$16 sps:$4 sm:$0xff]  }
 0x2ad   :  { %5749 = vmatpush1.bf16.msra.mxu0 %v10910_v49  ;;  %6265 = vmatpush1.bf16.msra.mxu1 %v10913_v50  ;;  %v10985_v49 = vld [vmem:[#allocation7 + $0x1248] ss:$16 sps:$4 sm:$0xff]   ;;  %v10990_v50 = vld [vmem:[#allocation7 + $0x1264] ss:$16 sps:$4 sm:$0xff]  }
 0x2ae   :  { %5750 = vmatprep.subr.bf16.mxu0 %v10918_v51  ;;  %6266 = vmatprep.subr.bf16.mxu1 %v10921_v54  ;;  %v10993_v51 = vld [vmem:[#allocation7 + $0x126c] ss:$16 sps:$4 sm:$0xff]   ;;  %v10988_v54 = vld [vmem:[#allocation7 + $0x1260] ss:$16 sps:$4 sm:$0xff]  }
 0x2b1   :  { %5751 = vmatpush1.bf16.msra.mxu0 %v10916_v55  ;;  %6267 = vmatpush1.bf16.msra.mxu1 %v10919_v56  ;;  %v10991_v55 = vld [vmem:[#allocation7 + $0x1268] ss:$16 sps:$4 sm:$0xff]   ;;  %v10996_v56 = vld [vmem:[#allocation7 + $0x1284] ss:$16 sps:$4 sm:$0xff]  }
 0x2b2   :  { %5752 = vmatprep.subr.bf16.mxu0 %v10924_v57  ;;  %6268 = vmatprep.subr.bf16.mxu1 %v10927_v58  ;;  %v10999_v57 = vld [vmem:[#allocation7 + $0x128c] ss:$16 sps:$4 sm:$0xff]   ;;  %v10994_v58 = vld [vmem:[#allocation7 + $0x1280] ss:$16 sps:$4 sm:$0xff]  }
 0x2b5   :  { %5753 = vmatpush1.bf16.msra.mxu0 %v10922_v61  ;;  %6269 = vmatpush1.bf16.msra.mxu1 %v10925_v3  ;;  %v10997_v61 = vld [vmem:[#allocation7 + $0x1288] ss:$16 sps:$4 sm:$0xff]   ;;  %v11002_v3 = vld [vmem:[#allocation7 + $0x12a4] ss:$16 sps:$4 sm:$0xff]  }
 0x2b6   :  { %5754 = vmatprep.subr.bf16.mxu0 %v10930_v4  ;;  %6270 = vmatprep.subr.bf16.mxu1 %v10933_v37  ;;  %v11005_v4 = vld [vmem:[#allocation7 + $0x12ac] ss:$16 sps:$4 sm:$0xff]   ;;  %v11000_v37 = vld [vmem:[#allocation7 + $0x12a0] ss:$16 sps:$4 sm:$0xff]  }
 0x2b9   :  { %5755 = vmatpush1.bf16.msra.mxu0 %v10928_v38  ;;  %6271 = vmatpush1.bf16.msra.mxu1 %v10931_v5  ;;  %v11003_v38 = vld [vmem:[#allocation7 + $0x12a8] ss:$16 sps:$4 sm:$0xff]   ;;  %v11008_v5 = vld [vmem:[#allocation7 + $0x12c4] ss:$16 sps:$4 sm:$0xff]  }
 0x2ba   :  { %5756 = vmatprep.subr.bf16.mxu0 %v10936_v6  ;;  %6272 = vmatprep.subr.bf16.mxu1 %v10939_v7  ;;  %v11011_v6 = vld [vmem:[#allocation7 + $0x12cc] ss:$16 sps:$4 sm:$0xff]   ;;  %v11006_v7 = vld [vmem:[#allocation7 + $0x12c0] ss:$16 sps:$4 sm:$0xff]  }
 0x2bd   :  { %5757 = vmatpush1.bf16.msra.mxu0 %v10934_v8  ;;  %6273 = vmatpush1.bf16.msra.mxu1 %v10937_v62  ;;  %v11009_v8 = vld [vmem:[#allocation7 + $0x12c8] ss:$16 sps:$4 sm:$0xff]   ;;  %v11014_v62 = vld [vmem:[#allocation7 + $0x12e4] ss:$16 sps:$4 sm:$0xff]  }
 0x2be   :  { %5758 = vmatprep.subr.bf16.mxu0 %v10942_v10  ;;  %6274 = vmatprep.subr.bf16.mxu1 %v10945_v11  ;;  %v11017_v10 = vld [vmem:[#allocation7 + $0x12ec] ss:$16 sps:$4 sm:$0xff]   ;;  %v11012_v11 = vld [vmem:[#allocation7 + $0x12e0] ss:$16 sps:$4 sm:$0xff]  }
 0x2c1   :  { %5759 = vmatpush1.bf16.msra.mxu0 %v10940_v12  ;;  %6275 = vmatpush1.bf16.msra.mxu1 %v10943_v13  ;;  %v11015_v12 = vld [vmem:[#allocation7 + $0x12e8] ss:$16 sps:$4 sm:$0xff]   ;;  %v11020_v13 = vld [vmem:[#allocation7 + $0x1304] ss:$16 sps:$4 sm:$0xff]  }
 0x2c2   :  { %5760 = vmatprep.subr.bf16.mxu0 %v10948_v14  ;;  %6276 = vmatprep.subr.bf16.mxu1 %v10951_v16  ;;  %v11023_v14 = vld [vmem:[#allocation7 + $0x130c] ss:$16 sps:$4 sm:$0xff]   ;;  %v11018_v16 = vld [vmem:[#allocation7 + $0x1300] ss:$16 sps:$4 sm:$0xff]  }
 0x2c5   :  { %5761 = vmatpush1.bf16.msra.mxu0 %v10946_v18  ;;  %6277 = vmatpush1.bf16.msra.mxu1 %v10949_v19  ;;  %v11021_v18 = vld [vmem:[#allocation7 + $0x1308] ss:$16 sps:$4 sm:$0xff]   ;;  %v11026_v19 = vld [vmem:[#allocation7 + $0x1324] ss:$16 sps:$4 sm:$0xff]  }
 0x2c6   :  { %5762 = vmatprep.subr.bf16.mxu0 %v10954_v52  ;;  %6278 = vmatprep.subr.bf16.mxu1 %v10957_v53  ;;  %v11029_v52 = vld [vmem:[#allocation7 + $0x132c] ss:$16 sps:$4 sm:$0xff]   ;;  %v11024_v53 = vld [vmem:[#allocation7 + $0x1320] ss:$16 sps:$4 sm:$0xff]  }
 0x2c9   :  { %5763 = vmatpush1.bf16.msra.mxu0 %v10952_v22  ;;  %6279 = vmatpush1.bf16.msra.mxu1 %v10955_v23  ;;  %v11035_v22 = vld [vmem:[#allocation7 + $0x134c] ss:$16 sps:$4 sm:$0xff]   ;;  %v11030_v23 = vld [vmem:[#allocation7 + $0x1340] ss:$16 sps:$4 sm:$0xff]  }
 0x2ca   :  { %5764 = vmatprep.subr.bf16.mxu0 %v10960_v26  ;;  %6280 = vmatprep.subr.bf16.mxu1 %v10963_v27  ;;  %v11041_v26 = vld [vmem:[#allocation7 + $0x136c] ss:$16 sps:$4 sm:$0xff]   ;;  %v11036_v27 = vld [vmem:[#allocation7 + $0x1360] ss:$16 sps:$4 sm:$0xff]  }
 0x2cd   :  { %5765 = vmatpush1.bf16.msra.mxu0 %v10958_v32  ;;  %6281 = vmatpush1.bf16.msra.mxu1 %v10961_v0  ;;  %v11045_v32 = vld [vmem:[#allocation7 + $0x1388] ss:$16 sps:$4 sm:$0xff]   ;;  %v11050_v0 = vld [vmem:[#allocation7 + $0x13a4] ss:$16 sps:$4 sm:$0xff]  }
 0x2ce   :  { %5766 = vmatprep.subr.bf16.mxu0 %v10966_v9  ;;  %6282 = vmatprep.subr.bf16.mxu1 %v10969_v33  ;;  %v11053_v9 = vld [vmem:[#allocation7 + $0x13ac] ss:$16 sps:$4 sm:$0xff]   ;;  %v8769_v33 = vld [vmem:[%s12365_s8 + $0x16] sm:$0x1] }
 0x2d1   :  { %5767 = vmatpush1.bf16.msra.mxu0 %v10964_v34  ;;  %6283 = vmatpush1.bf16.msra.mxu1 %v10967_v35  ;;  %v8770_v34 = vld [vmem:[%s12365_s8 + $0x17] sm:$0x1]  ;;  %v494_v35 = vunpack.c.l.bf16 %v8769_v33  ;;  %v11131_v33 = vld [vmem:[#allocation7 + $0x154c] ss:$16 sps:$4 sm:$0xff]  }
 0x2d2   :  { %5779 = vmatprep.subr.bf16.mxu0 %v10972_v36  ;;  %6295 = vmatprep.subr.bf16.mxu1 %v10975_v39  ;;  %v510_v36 = vunpack.c.l.bf16 %v8770_v34  ;;  %v11048_v39 = vld [vmem:[#allocation7 + $0x13a0] ss:$16 sps:$4 sm:$0xff]  }
 0x2d3   :  { %v11126_v34 = vld [vmem:[#allocation7 + $0x1540] ss:$16 sps:$4 sm:$0xff]  }
 0x2d4   :  { %5769 = vmatmul.mubr.bf16.vlgmr.msra.gmra.mrb[0].mxu0 %v8787_v42  ;;  %6285 = vmatmul.mubr.bf16.vlgmr.msra.gmra.mrb[0].mxu1 %v8787_v42  ;;  %v11051_v42 = vld [vmem:[#allocation7 + $0x13a8] ss:$16 sps:$4 sm:$0xff]  }
 0x2d5   :  { %5780 = vmatpush1.bf16.msra.mxu0 %v10970_v2  ;;  %6296 = vmatpush1.bf16.msra.mxu1 %v10973_v43  ;;  %v11056_v2 = vld [vmem:[#allocation7 + $0x13c4] ss:$16 sps:$4 sm:$0xff]   ;;  %v11059_v43 = vld [vmem:[#allocation7 + $0x13cc] ss:$16 sps:$4 sm:$0xff]  }
 0x2d6   :  { %5781 = vmatprep.subr.bf16.mxu0 %v10978_v44  ;;  %6297 = vmatprep.subr.bf16.mxu1 %v10981_v45  ;;  %v500_v44 = vsel %vm148_vm0, %v494_v35, %v11932_v1  ;;  %v516_v45 = vsel %vm148_vm0, %v510_v36, %v11932_v1  ;;  %v11068_v1 = vld [vmem:[#allocation7 + $0x1404] ss:$16 sps:$4 sm:$0xff]   ;;  %v11129_v35 = vld [vmem:[#allocation7 + $0x1548] ss:$16 sps:$4 sm:$0xff]  }
 0x2d7   :  { %5811 = vmatprep.mubr.bf16.mxu0 %v8790_v15  ;;  %6327 = vmatprep.mubr.bf16.mxu1 %v8790_v15  ;;  %v502_v15 = vpack.c.bf16 %v11873_v60, %v500_v44  ;;  %v11134_v36 = vld [vmem:[#allocation7 + $0x1564] ss:$16 sps:$4 sm:$0xff]   ;;  %v11143_v44 = vld [vmem:[#allocation7 + $0x158c] ss:$16 sps:$4 sm:$0xff]  }
 0x2d9   :  { %5782 = vmatpush1.bf16.msra.mxu0 %v10976_v17  ;;  %6298 = vmatpush1.bf16.msra.mxu1 %v10979_v47  ;;  %v518_v17 = vpack.c.bf16 %v11873_v60, %v516_v45  ;;  %v11054_v47 = vld [vmem:[#allocation7 + $0x13c0] ss:$16 sps:$4 sm:$0xff]   ;;  %504 = vst [vmem:[#allocation20 + $0x58] sm:$0xf] %v502_v15  ;;  %v8789_v60 = vcombine.low %v12282_v40, %v12284_v41  ;;  %v11075_v41 = vld [vmem:[#allocation7 + $0x1428] ss:$16 sps:$4 sm:$0xff]  }
 0x2da   :  { %5783 = vmatprep.subr.bf16.mxu0 %v10984_v63  ;;  %6299 = vmatprep.subr.bf16.mxu1 %v10987_v24  ;;  %v11057_v63 = vld [vmem:[#allocation7 + $0x13c8] ss:$16 sps:$4 sm:$0xff]   ;;  %v11062_v24 = vld [vmem:[#allocation7 + $0x13e4] ss:$16 sps:$4 sm:$0xff]   ;;  %v11072_v40 = vld [vmem:[#allocation7 + $0x1420] ss:$16 sps:$4 sm:$0xff]  }
 0x2db   :  { %520 = vst [vmem:[#allocation20 + $0x5c] sm:$0xf] %v518_v17  ;;  %v11138_v45 = vld [vmem:[#allocation7 + $0x1580] ss:$16 sps:$4 sm:$0xff]   ;;  %v11141_v15 = vld [vmem:[#allocation7 + $0x1588] ss:$16 sps:$4 sm:$0xff]  }
 0x2dc   :  { %v11146_v17 = vld [vmem:[#allocation7 + $0x15a4] ss:$16 sps:$4 sm:$0xff]  }
 0x2dd   :  { %5784 = vmatpush1.bf16.msra.mxu0 %v10982_v48  ;;  %6300 = vmatpush1.bf16.msra.mxu1 %v10985_v49  ;;  %v11065_v48 = vld [vmem:[#allocation7 + $0x13ec] ss:$16 sps:$4 sm:$0xff]   ;;  %v11060_v49 = vld [vmem:[#allocation7 + $0x13e0] ss:$16 sps:$4 sm:$0xff]  }
 0x2de   :  { %5785 = vmatprep.subr.bf16.mxu0 %v10990_v50  ;;  %6301 = vmatprep.subr.bf16.mxu1 %v10993_v51  ;;  %v11063_v50 = vld [vmem:[#allocation7 + $0x13e8] ss:$16 sps:$4 sm:$0xff]   ;;  %v11071_v51 = vld [vmem:[#allocation7 + $0x140c] ss:$16 sps:$4 sm:$0xff]  }
 0x2e1   :  { %5786 = vmatpush1.bf16.msra.mxu0 %v10988_v54  ;;  %6302 = vmatpush1.bf16.msra.mxu1 %v10991_v55  ;;  %v12306_v54 = vld [vmem:[#allocation20 + $0x50] sm:$0xff] }
 0x2e2   :  { %5787 = vmatprep.subr.bf16.mxu0 %v10996_v56  ;;  %6303 = vmatprep.subr.bf16.mxu1 %v10999_v57  ;;  %v12308_v55 = vld [vmem:[#allocation20 + $0xb0] sm:$0xff]  ;;  %v11069_v57 = vld [vmem:[#allocation7 + $0x1408] ss:$16 sps:$4 sm:$0xff]  }
 0x2e3   :  { %v11066_v56 = vld [vmem:[#allocation7 + $0x1400] ss:$16 sps:$4 sm:$0xff]  }
 0x2e5   :  { %5788 = vmatpush1.bf16.msra.mxu0 %v10994_v58  ;;  %6304 = vmatpush1.bf16.msra.mxu1 %v10997_v61  ;;  %v11074_v58 = vld [vmem:[#allocation7 + $0x1424] ss:$16 sps:$4 sm:$0xff]   ;;  %v11077_v61 = vld [vmem:[#allocation7 + $0x142c] ss:$16 sps:$4 sm:$0xff]  }
 0x2e6   :  { %5789 = vmatprep.subr.bf16.mxu0 %v11002_v3  ;;  %6305 = vmatprep.subr.bf16.mxu1 %v11005_v4  ;;  %v8792_v3 = vcombine.high %v12306_v54, %v12308_v55  ;;  %v11080_v4 = vld [vmem:[#allocation7 + $0x1444] ss:$16 sps:$4 sm:$0xff]  }
 0x2e9   :  { %5790 = vmatpush1.bf16.msra.mxu0 %v11000_v37  ;;  %6306 = vmatpush1.bf16.msra.mxu1 %v11003_v38  ;;  %v11083_v37 = vld [vmem:[#allocation7 + $0x144c] ss:$16 sps:$4 sm:$0xff]   ;;  %v11078_v38 = vld [vmem:[#allocation7 + $0x1440] ss:$16 sps:$4 sm:$0xff]  }
 0x2ea   :  { %5791 = vmatprep.subr.bf16.mxu0 %v11008_v5  ;;  %6307 = vmatprep.subr.bf16.mxu1 %v11011_v6  ;;  %v11081_v5 = vld [vmem:[#allocation7 + $0x1448] ss:$16 sps:$4 sm:$0xff]   ;;  %v11086_v6 = vld [vmem:[#allocation7 + $0x1464] ss:$16 sps:$4 sm:$0xff]  }
 0x2ed   :  { %5792 = vmatpush1.bf16.msra.mxu0 %v11006_v7  ;;  %6308 = vmatpush1.bf16.msra.mxu1 %v11009_v8  ;;  %v11089_v7 = vld [vmem:[#allocation7 + $0x146c] ss:$16 sps:$4 sm:$0xff]   ;;  %v11084_v8 = vld [vmem:[#allocation7 + $0x1460] ss:$16 sps:$4 sm:$0xff]  }
 0x2ee   :  { %5793 = vmatprep.subr.bf16.mxu0 %v11014_v62  ;;  %6309 = vmatprep.subr.bf16.mxu1 %v11017_v10  ;;  %v11087_v62 = vld [vmem:[#allocation7 + $0x1468] ss:$16 sps:$4 sm:$0xff]   ;;  %v11092_v10 = vld [vmem:[#allocation7 + $0x1484] ss:$16 sps:$4 sm:$0xff]  }
 0x2f1   :  { %5794 = vmatpush1.bf16.msra.mxu0 %v11012_v11  ;;  %6310 = vmatpush1.bf16.msra.mxu1 %v11015_v12  ;;  %v11095_v11 = vld [vmem:[#allocation7 + $0x148c] ss:$16 sps:$4 sm:$0xff]   ;;  %v11090_v12 = vld [vmem:[#allocation7 + $0x1480] ss:$16 sps:$4 sm:$0xff]  }
 0x2f2   :  { %5795 = vmatprep.subr.bf16.mxu0 %v11020_v13  ;;  %6311 = vmatprep.subr.bf16.mxu1 %v11023_v14  ;;  %v11093_v13 = vld [vmem:[#allocation7 + $0x1488] ss:$16 sps:$4 sm:$0xff]   ;;  %v11098_v14 = vld [vmem:[#allocation7 + $0x14a4] ss:$16 sps:$4 sm:$0xff]  }
 0x2f5   :  { %5796 = vmatpush1.bf16.msra.mxu0 %v11018_v16  ;;  %6312 = vmatpush1.bf16.msra.mxu1 %v11021_v18  ;;  %v11101_v16 = vld [vmem:[#allocation7 + $0x14ac] ss:$16 sps:$4 sm:$0xff]   ;;  %v11096_v18 = vld [vmem:[#allocation7 + $0x14a0] ss:$16 sps:$4 sm:$0xff]  }
 0x2f6   :  { %5797 = vmatprep.subr.bf16.mxu0 %v11026_v19  ;;  %6313 = vmatprep.subr.bf16.mxu1 %v11029_v52  ;;  %v11099_v19 = vld [vmem:[#allocation7 + $0x14a8] ss:$16 sps:$4 sm:$0xff]   ;;  %v11104_v52 = vld [vmem:[#allocation7 + $0x14c4] ss:$16 sps:$4 sm:$0xff]  }
 0x2f9   :  { %5798 = vmatpush1.bf16.msra.mxu0 %v11024_v53  ;;  %6314 = vmatpush1.bf16.msra.mxu1 %v11027_v20  ;;  %v11107_v53 = vld [vmem:[#allocation7 + $0x14cc] ss:$16 sps:$4 sm:$0xff]   ;;  %v11102_v20 = vld [vmem:[#allocation7 + $0x14c0] ss:$16 sps:$4 sm:$0xff]  }
 0x2fa   :  { %5799 = vmatprep.subr.bf16.mxu0 %v11032_v21  ;;  %6315 = vmatprep.subr.bf16.mxu1 %v11035_v22  ;;  %v11105_v21 = vld [vmem:[#allocation7 + $0x14c8] ss:$16 sps:$4 sm:$0xff]   ;;  %v11110_v22 = vld [vmem:[#allocation7 + $0x14e4] ss:$16 sps:$4 sm:$0xff]  }
 0x2fd   :  { %5800 = vmatpush1.bf16.msra.mxu0 %v11030_v23  ;;  %6316 = vmatpush1.bf16.msra.mxu1 %v11033_v59  ;;  %v11113_v23 = vld [vmem:[#allocation7 + $0x14ec] ss:$16 sps:$4 sm:$0xff]   ;;  %v11108_v59 = vld [vmem:[#allocation7 + $0x14e0] ss:$16 sps:$4 sm:$0xff]  }
 0x2fe   :  { %5801 = vmatprep.subr.bf16.mxu0 %v11038_v25  ;;  %6317 = vmatprep.subr.bf16.mxu1 %v11041_v26  ;;  %v11111_v25 = vld [vmem:[#allocation7 + $0x14e8] ss:$16 sps:$4 sm:$0xff]   ;;  %v11116_v26 = vld [vmem:[#allocation7 + $0x1504] ss:$16 sps:$4 sm:$0xff]  }
 0x301   :  { %5802 = vmatpush1.bf16.msra.mxu0 %v11036_v27  ;;  %6318 = vmatpush1.bf16.msra.mxu1 %v11039_v28  ;;  %v11119_v27 = vld [vmem:[#allocation7 + $0x150c] ss:$16 sps:$4 sm:$0xff]   ;;  %v11114_v28 = vld [vmem:[#allocation7 + $0x1500] ss:$16 sps:$4 sm:$0xff]  }
 0x302   :  { %5803 = vmatprep.subr.bf16.mxu0 %v11044_v29  ;;  %6319 = vmatprep.subr.bf16.mxu1 %v11047_v30  ;;  %v11117_v29 = vld [vmem:[#allocation7 + $0x1508] ss:$16 sps:$4 sm:$0xff]   ;;  %v11122_v30 = vld [vmem:[#allocation7 + $0x1524] ss:$16 sps:$4 sm:$0xff]  }
 0x305   :  { %5804 = vmatpush1.bf16.msra.mxu0 %v11042_v31  ;;  %6320 = vmatpush1.bf16.msra.mxu1 %v11045_v32  ;;  %v11125_v31 = vld [vmem:[#allocation7 + $0x152c] ss:$16 sps:$4 sm:$0xff]   ;;  %v11120_v32 = vld [vmem:[#allocation7 + $0x1520] ss:$16 sps:$4 sm:$0xff]  }
 0x306   :  { %5805 = vmatprep.subr.bf16.mxu0 %v11050_v0  ;;  %6321 = vmatprep.subr.bf16.mxu1 %v11053_v9  ;;  %v11123_v0 = vld [vmem:[#allocation7 + $0x1528] ss:$16 sps:$4 sm:$0xff]   ;;  %v11128_v9 = vld [vmem:[#allocation7 + $0x1544] ss:$16 sps:$4 sm:$0xff]  }
 0x309   :  { %5806 = vmatpush1.bf16.msra.mxu0 %v11048_v39  ;;  %6322 = vmatpush1.bf16.msra.mxu1 %v11051_v42  ;;  %v11137_v39 = vld [vmem:[#allocation7 + $0x156c] ss:$16 sps:$4 sm:$0xff]   ;;  %v11132_v42 = vld [vmem:[#allocation7 + $0x1560] ss:$16 sps:$4 sm:$0xff]  }
 0x30a   :  { %5807 = vmatprep.subr.bf16.mxu0 %v11056_v2  ;;  %6323 = vmatprep.subr.bf16.mxu1 %v11059_v43  ;;  %v11135_v2 = vld [vmem:[#allocation7 + $0x1568] ss:$16 sps:$4 sm:$0xff]   ;;  %v11140_v43 = vld [vmem:[#allocation7 + $0x1584] ss:$16 sps:$4 sm:$0xff]  }
 0x30d   :  { %5808 = vmatpush1.bf16.msra.mxu0 %v11054_v47  ;;  %6324 = vmatpush1.bf16.msra.mxu1 %v11057_v63  ;;  %v11149_v47 = vld [vmem:[#allocation7 + $0x15ac] ss:$16 sps:$4 sm:$0xff]   ;;  %v11144_v63 = vld [vmem:[#allocation7 + $0x15a0] ss:$16 sps:$4 sm:$0xff]  }
 0x30e   :  { %5809 = vmatprep.subr.bf16.mxu0 %v11062_v24  ;;  %6325 = vmatprep.subr.bf16.mxu1 %v11065_v48  ;;  %v11147_v24 = vld [vmem:[#allocation7 + $0x15a8] ss:$16 sps:$4 sm:$0xff]   ;;  %v11152_v48 = vld [vmem:[#allocation7 + $0x15c4] ss:$16 sps:$4 sm:$0xff]  }
 0x311   :  { %5810 = vmatpush1.bf16.msra.mxu0 %v11060_v49  ;;  %6326 = vmatpush1.bf16.msra.mxu1 %v11063_v50  ;;  %v11155_v49 = vld [vmem:[#allocation7 + $0x15cc] ss:$16 sps:$4 sm:$0xff]   ;;  %v11150_v50 = vld [vmem:[#allocation7 + $0x15c0] ss:$16 sps:$4 sm:$0xff]  }
 0x312   :  { %5822 = vmatprep.subr.bf16.mxu0 %v11068_v1  ;;  %6338 = vmatprep.subr.bf16.mxu1 %v11071_v51  ;;  %v11153_v1 = vld [vmem:[#allocation7 + $0x15c8] ss:$16 sps:$4 sm:$0xff]   ;;  %v11158_v51 = vld [vmem:[#allocation7 + $0x15e4] ss:$16 sps:$4 sm:$0xff]  }
 0x314   :  { %5812 = vmatmul.mubr.bf16.vlgmr.msra.gmra.mrb[0].mxu0 %v8789_v60  ;;  %6328 = vmatmul.mubr.bf16.vlgmr.msra.gmra.mrb[0].mxu1 %v8789_v60  ;;  %v11161_v60 = vld [vmem:[#allocation7 + $0x15ec] ss:$16 sps:$4 sm:$0xff]  }
 0x315   :  { %5823 = vmatpush1.bf16.msra.mxu0 %v11066_v56  ;;  %6339 = vmatpush1.bf16.msra.mxu1 %v11069_v57  ;;  %v11156_v56 = vld [vmem:[#allocation7 + $0x15e0] ss:$16 sps:$4 sm:$0xff]   ;;  %v11159_v57 = vld [vmem:[#allocation7 + $0x15e8] ss:$16 sps:$4 sm:$0xff]  }
 0x316   :  { %5824 = vmatprep.subr.bf16.mxu0 %v11074_v58  ;;  %6340 = vmatprep.subr.bf16.mxu1 %v11077_v61  ;;  %v11164_v58 = vld [vmem:[#allocation7 + $0x1604] ss:$16 sps:$4 sm:$0xff]   ;;  %v11167_v61 = vld [vmem:[#allocation7 + $0x160c] ss:$16 sps:$4 sm:$0xff]  }
 0x317   :  { %5854 = vmatprep.mubr.bf16.mxu0 %v8792_v3  ;;  %6370 = vmatprep.mubr.bf16.mxu1 %v8792_v3  ;;  %v8791_v3 = vcombine.low %v12306_v54, %v12308_v55  ;;  %v11168_v54 = vld [vmem:[#allocation7 + $0x1620] ss:$16 sps:$4 sm:$0xff]   ;;  %v11171_v55 = vld [vmem:[#allocation7 + $0x1628] ss:$16 sps:$4 sm:$0xff]  }
 0x319   :  { %5825 = vmatpush1.bf16.msra.mxu0 %v11072_v40  ;;  %6341 = vmatpush1.bf16.msra.mxu1 %v11075_v41  ;;  %v12314_v40 = vld [vmem:[#allocation20 + $0x58] sm:$0xff] }
 0x31a   :  { %5826 = vmatprep.subr.bf16.mxu0 %v11080_v4  ;;  %6342 = vmatprep.subr.bf16.mxu1 %v11083_v37  ;;  %v12316_v41 = vld [vmem:[#allocation20 + $0xb8] sm:$0xff]  ;;  %v11162_v4 = vld [vmem:[#allocation7 + $0x1600] ss:$16 sps:$4 sm:$0xff]  }
 0x31b   :  { %v11165_v37 = vld [vmem:[#allocation7 + $0x1608] ss:$16 sps:$4 sm:$0xff]  }
 0x31d   :  { %5827 = vmatpush1.bf16.msra.mxu0 %v11078_v38  ;;  %6343 = vmatpush1.bf16.msra.mxu1 %v11081_v5  ;;  %v11170_v38 = vld [vmem:[#allocation7 + $0x1624] ss:$16 sps:$4 sm:$0xff]   ;;  %v11173_v5 = vld [vmem:[#allocation7 + $0x162c] ss:$16 sps:$4 sm:$0xff]  }
 0x31e   :  { %5828 = vmatprep.subr.bf16.mxu0 %v11086_v6  ;;  %6344 = vmatprep.subr.bf16.mxu1 %v11089_v7  ;;  %v8794_v6 = vcombine.high %v12314_v40, %v12316_v41  ;;  %v11176_v7 = vld [vmem:[#allocation7 + $0x1644] ss:$16 sps:$4 sm:$0xff]  }
 0x321   :  { %5829 = vmatpush1.bf16.msra.mxu0 %v11084_v8  ;;  %6345 = vmatpush1.bf16.msra.mxu1 %v11087_v62  ;;  %v11179_v8 = vld [vmem:[#allocation7 + $0x164c] ss:$16 sps:$4 sm:$0xff]   ;;  %v11174_v62 = vld [vmem:[#allocation7 + $0x1640] ss:$16 sps:$4 sm:$0xff]  }
 0x322   :  { %5830 = vmatprep.subr.bf16.mxu0 %v11092_v10  ;;  %6346 = vmatprep.subr.bf16.mxu1 %v11095_v11  ;;  %v11177_v10 = vld [vmem:[#allocation7 + $0x1648] ss:$16 sps:$4 sm:$0xff]   ;;  %v11182_v11 = vld [vmem:[#allocation7 + $0x1664] ss:$16 sps:$4 sm:$0xff]  }
 0x325   :  { %5831 = vmatpush1.bf16.msra.mxu0 %v11090_v12  ;;  %6347 = vmatpush1.bf16.msra.mxu1 %v11093_v13  ;;  %v11185_v12 = vld [vmem:[#allocation7 + $0x166c] ss:$16 sps:$4 sm:$0xff]   ;;  %v11180_v13 = vld [vmem:[#allocation7 + $0x1660] ss:$16 sps:$4 sm:$0xff]  }
 0x326   :  { %5832 = vmatprep.subr.bf16.mxu0 %v11098_v14  ;;  %6348 = vmatprep.subr.bf16.mxu1 %v11101_v16  ;;  %v11183_v14 = vld [vmem:[#allocation7 + $0x1668] ss:$16 sps:$4 sm:$0xff]   ;;  %v11188_v16 = vld [vmem:[#allocation7 + $0x1684] ss:$16 sps:$4 sm:$0xff]  }
 0x329   :  { %5833 = vmatpush1.bf16.msra.mxu0 %v11096_v18  ;;  %6349 = vmatpush1.bf16.msra.mxu1 %v11099_v19  ;;  %v11191_v18 = vld [vmem:[#allocation7 + $0x168c] ss:$16 sps:$4 sm:$0xff]   ;;  %v11186_v19 = vld [vmem:[#allocation7 + $0x1680] ss:$16 sps:$4 sm:$0xff]  }
 0x32a   :  { %5834 = vmatprep.subr.bf16.mxu0 %v11104_v52  ;;  %6350 = vmatprep.subr.bf16.mxu1 %v11107_v53  ;;  %v11189_v52 = vld [vmem:[#allocation7 + $0x1688] ss:$16 sps:$4 sm:$0xff]   ;;  %v11194_v53 = vld [vmem:[#allocation7 + $0x16a4] ss:$16 sps:$4 sm:$0xff]  }
 0x32d   :  { %5835 = vmatpush1.bf16.msra.mxu0 %v11102_v20  ;;  %6351 = vmatpush1.bf16.msra.mxu1 %v11105_v21  ;;  %v11197_v20 = vld [vmem:[#allocation7 + $0x16ac] ss:$16 sps:$4 sm:$0xff]   ;;  %v11192_v21 = vld [vmem:[#allocation7 + $0x16a0] ss:$16 sps:$4 sm:$0xff]  }
 0x32e   :  { %5836 = vmatprep.subr.bf16.mxu0 %v11110_v22  ;;  %6352 = vmatprep.subr.bf16.mxu1 %v11113_v23  ;;  %v11195_v22 = vld [vmem:[#allocation7 + $0x16a8] ss:$16 sps:$4 sm:$0xff]   ;;  %v11200_v23 = vld [vmem:[#allocation7 + $0x16c4] ss:$16 sps:$4 sm:$0xff]  }
 0x331   :  { %5837 = vmatpush1.bf16.msra.mxu0 %v11108_v59  ;;  %6353 = vmatpush1.bf16.msra.mxu1 %v11111_v25  ;;  %v11203_v59 = vld [vmem:[#allocation7 + $0x16cc] ss:$16 sps:$4 sm:$0xff]   ;;  %v11198_v25 = vld [vmem:[#allocation7 + $0x16c0] ss:$16 sps:$4 sm:$0xff]  }
 0x332   :  { %5838 = vmatprep.subr.bf16.mxu0 %v11116_v26  ;;  %6354 = vmatprep.subr.bf16.mxu1 %v11119_v27  ;;  %v11201_v26 = vld [vmem:[#allocation7 + $0x16c8] ss:$16 sps:$4 sm:$0xff]   ;;  %v11206_v27 = vld [vmem:[#allocation7 + $0x16e4] ss:$16 sps:$4 sm:$0xff]  }
 0x335   :  { %5839 = vmatpush1.bf16.msra.mxu0 %v11114_v28  ;;  %6355 = vmatpush1.bf16.msra.mxu1 %v11117_v29  ;;  %v11209_v28 = vld [vmem:[#allocation7 + $0x16ec] ss:$16 sps:$4 sm:$0xff]   ;;  %v11204_v29 = vld [vmem:[#allocation7 + $0x16e0] ss:$16 sps:$4 sm:$0xff]  }
 0x336   :  { %5840 = vmatprep.subr.bf16.mxu0 %v11122_v30  ;;  %6356 = vmatprep.subr.bf16.mxu1 %v11125_v31  ;;  %v11207_v30 = vld [vmem:[#allocation7 + $0x16e8] ss:$16 sps:$4 sm:$0xff]   ;;  %v11212_v31 = vld [vmem:[#allocation7 + $0x1704] ss:$16 sps:$4 sm:$0xff]  }
 0x339   :  { %5841 = vmatpush1.bf16.msra.mxu0 %v11120_v32  ;;  %6357 = vmatpush1.bf16.msra.mxu1 %v11123_v0  ;;  %v11215_v32 = vld [vmem:[#allocation7 + $0x170c] ss:$16 sps:$4 sm:$0xff]   ;;  %v11210_v0 = vld [vmem:[#allocation7 + $0x1700] ss:$16 sps:$4 sm:$0xff]  }
 0x33a   :  { %5842 = vmatprep.subr.bf16.mxu0 %v11128_v9  ;;  %6358 = vmatprep.subr.bf16.mxu1 %v11131_v33  ;;  %v11213_v9 = vld [vmem:[#allocation7 + $0x1708] ss:$16 sps:$4 sm:$0xff]   ;;  %v11218_v33 = vld [vmem:[#allocation7 + $0x1724] ss:$16 sps:$4 sm:$0xff]  }
 0x33d   :  { %5843 = vmatpush1.bf16.msra.mxu0 %v11126_v34  ;;  %6359 = vmatpush1.bf16.msra.mxu1 %v11129_v35  ;;  %v11221_v34 = vld [vmem:[#allocation7 + $0x172c] ss:$16 sps:$4 sm:$0xff]   ;;  %v11216_v35 = vld [vmem:[#allocation7 + $0x1720] ss:$16 sps:$4 sm:$0xff]  }
 0x33e   :  { %5844 = vmatprep.subr.bf16.mxu0 %v11134_v36  ;;  %6360 = vmatprep.subr.bf16.mxu1 %v11137_v39  ;;  %v11219_v36 = vld [vmem:[#allocation7 + $0x1728] ss:$16 sps:$4 sm:$0xff]   ;;  %v11224_v39 = vld [vmem:[#allocation7 + $0x1744] ss:$16 sps:$4 sm:$0xff]  }
 0x341   :  { %5845 = vmatpush1.bf16.msra.mxu0 %v11132_v42  ;;  %6361 = vmatpush1.bf16.msra.mxu1 %v11135_v2  ;;  %v11227_v42 = vld [vmem:[#allocation7 + $0x174c] ss:$16 sps:$4 sm:$0xff]   ;;  %v11222_v2 = vld [vmem:[#allocation7 + $0x1740] ss:$16 sps:$4 sm:$0xff]  }
 0x342   :  { %5846 = vmatprep.subr.bf16.mxu0 %v11140_v43  ;;  %6362 = vmatprep.subr.bf16.mxu1 %v11143_v44  ;;  %v11225_v43 = vld [vmem:[#allocation7 + $0x1748] ss:$16 sps:$4 sm:$0xff]   ;;  %v11230_v44 = vld [vmem:[#allocation7 + $0x1764] ss:$16 sps:$4 sm:$0xff]  }
 0x345   :  { %5847 = vmatpush1.bf16.msra.mxu0 %v11138_v45  ;;  %6363 = vmatpush1.bf16.msra.mxu1 %v11141_v15  ;;  %v11233_v45 = vld [vmem:[#allocation7 + $0x176c] ss:$16 sps:$4 sm:$0xff]   ;;  %v11228_v15 = vld [vmem:[#allocation7 + $0x1760] ss:$16 sps:$4 sm:$0xff]  }
 0x346   :  { %5848 = vmatprep.subr.bf16.mxu0 %v11146_v17  ;;  %6364 = vmatprep.subr.bf16.mxu1 %v11149_v47  ;;  %v11231_v17 = vld [vmem:[#allocation7 + $0x1768] ss:$16 sps:$4 sm:$0xff]   ;;  %v11236_v47 = vld [vmem:[#allocation7 + $0x1784] ss:$16 sps:$4 sm:$0xff]  }
 0x349   :  { %5849 = vmatpush1.bf16.msra.mxu0 %v11144_v63  ;;  %6365 = vmatpush1.bf16.msra.mxu1 %v11147_v24  ;;  %v11239_v63 = vld [vmem:[#allocation7 + $0x178c] ss:$16 sps:$4 sm:$0xff]   ;;  %v11234_v24 = vld [vmem:[#allocation7 + $0x1780] ss:$16 sps:$4 sm:$0xff]  }
 0x34a   :  { %5850 = vmatprep.subr.bf16.mxu0 %v11152_v48  ;;  %6366 = vmatprep.subr.bf16.mxu1 %v11155_v49  ;;  %v11237_v48 = vld [vmem:[#allocation7 + $0x1788] ss:$16 sps:$4 sm:$0xff]   ;;  %v11242_v49 = vld [vmem:[#allocation7 + $0x17a4] ss:$16 sps:$4 sm:$0xff]  }
 0x34d   :  { %5851 = vmatpush1.bf16.msra.mxu0 %v11150_v50  ;;  %6367 = vmatpush1.bf16.msra.mxu1 %v11153_v1  ;;  %v11245_v50 = vld [vmem:[#allocation7 + $0x17ac] ss:$16 sps:$4 sm:$0xff]   ;;  %v11240_v1 = vld [vmem:[#allocation7 + $0x17a0] ss:$16 sps:$4 sm:$0xff]  }
 0x34e   :  { %5852 = vmatprep.subr.bf16.mxu0 %v11158_v51  ;;  %6368 = vmatprep.subr.bf16.mxu1 %v11161_v60  ;;  %v11243_v51 = vld [vmem:[#allocation7 + $0x17a8] ss:$16 sps:$4 sm:$0xff]   ;;  %v11248_v60 = vld [vmem:[#allocation7 + $0x17c4] ss:$16 sps:$4 sm:$0xff]  }
 0x351   :  { %5853 = vmatpush1.bf16.msra.mxu0 %v11156_v56  ;;  %6369 = vmatpush1.bf16.msra.mxu1 %v11159_v57  ;;  %v11251_v56 = vld [vmem:[#allocation7 + $0x17cc] ss:$16 sps:$4 sm:$0xff]   ;;  %v11246_v57 = vld [vmem:[#allocation7 + $0x17c0] ss:$16 sps:$4 sm:$0xff]  }
 0x352   :  { %5865 = vmatprep.subr.bf16.mxu0 %v11164_v58  ;;  %6381 = vmatprep.subr.bf16.mxu1 %v11167_v61  ;;  %v11249_v58 = vld [vmem:[#allocation7 + $0x17c8] ss:$16 sps:$4 sm:$0xff]   ;;  %v11254_v61 = vld [vmem:[#allocation7 + $0x17e4] ss:$16 sps:$4 sm:$0xff]  }
 0x354   :  { %5855 = vmatmul.mubr.bf16.vlgmr.msra.gmra.mrb[0].mxu0 %v8791_v3  ;;  %6371 = vmatmul.mubr.bf16.vlgmr.msra.gmra.mrb[0].mxu1 %v8791_v3  ;;  %v11257_v3 = vld [vmem:[#allocation7 + $0x17ec] ss:$16 sps:$4 sm:$0xff]  }
 0x355   :  { %5866 = vmatpush1.bf16.msra.mxu0 %v11162_v4  ;;  %6382 = vmatpush1.bf16.msra.mxu1 %v11165_v37  ;;  %v11252_v4 = vld [vmem:[#allocation7 + $0x17e0] ss:$16 sps:$4 sm:$0xff]   ;;  %v11255_v37 = vld [vmem:[#allocation7 + $0x17e8] ss:$16 sps:$4 sm:$0xff]  }
 0x356   :  { %5867 = vmatprep.subr.bf16.mxu0 %v11170_v38  ;;  %6383 = vmatprep.subr.bf16.mxu1 %v11173_v5  ;;  %v11260_v38 = vld [vmem:[#allocation11 + $0x4] ss:$16 sps:$4 sm:$0xff]   ;;  %v11263_v5 = vld [vmem:[#allocation11 + $0xc] ss:$16 sps:$4 sm:$0xff]  }
 0x357   :  { %5897 = vmatprep.mubr.bf16.mxu0 %v8794_v6  ;;  %6413 = vmatprep.mubr.bf16.mxu1 %v8794_v6  ;;  %v8793_v6 = vcombine.low %v12314_v40, %v12316_v41  ;;  %v11270_v40 = vld [vmem:[#allocation11 + $0x40] ss:$16 sps:$4 sm:$0xff]   ;;  %v11273_v41 = vld [vmem:[#allocation11 + $0x48] ss:$16 sps:$4 sm:$0xff]  }
 0x359   :  { %5868 = vmatpush1.bf16.msra.mxu0 %v11168_v54  ;;  %6384 = vmatpush1.bf16.msra.mxu1 %v11171_v55  ;;  %v11258_v54 = vld [vmem:[#allocation11] ss:$16 sps:$4 sm:$0xff]   ;;  %v11261_v55 = vld [vmem:[#allocation11 + $0x8] ss:$16 sps:$4 sm:$0xff]  }
 0x35a   :  { %5869 = vmatprep.subr.bf16.mxu0 %v11176_v7  ;;  %6385 = vmatprep.subr.bf16.mxu1 %v11179_v8  ;;  %v11266_v7 = vld [vmem:[#allocation11 + $0x24] ss:$16 sps:$4 sm:$0xff]   ;;  %v11269_v8 = vld [vmem:[#allocation11 + $0x2c] ss:$16 sps:$4 sm:$0xff]  }
 0x35d   :  { %5870 = vmatpush1.bf16.msra.mxu0 %v11174_v62  ;;  %6386 = vmatpush1.bf16.msra.mxu1 %v11177_v10  ;;  %v11264_v62 = vld [vmem:[#allocation11 + $0x20] ss:$16 sps:$4 sm:$0xff]   ;;  %v11267_v10 = vld [vmem:[#allocation11 + $0x28] ss:$16 sps:$4 sm:$0xff]  }
 0x35e   :  { %5871 = vmatprep.subr.bf16.mxu0 %v11182_v11  ;;  %6387 = vmatprep.subr.bf16.mxu1 %v11185_v12  ;;  %v11272_v11 = vld [vmem:[#allocation11 + $0x44] ss:$16 sps:$4 sm:$0xff]   ;;  %v11275_v12 = vld [vmem:[#allocation11 + $0x4c] ss:$16 sps:$4 sm:$0xff]  }
 0x361   :  { %5872 = vmatpush1.bf16.msra.mxu0 %v11180_v13  ;;  %6388 = vmatpush1.bf16.msra.mxu1 %v11183_v14  ;;  %v11278_v13 = vld [vmem:[#allocation11 + $0x64] ss:$16 sps:$4 sm:$0xff]   ;;  %v11281_v14 = vld [vmem:[#allocation11 + $0x6c] ss:$16 sps:$4 sm:$0xff]  }
 0x362   :  { %5873 = vmatprep.subr.bf16.mxu0 %v11188_v16  ;;  %6389 = vmatprep.subr.bf16.mxu1 %v11191_v18  ;;  %v11276_v16 = vld [vmem:[#allocation11 + $0x60] ss:$16 sps:$4 sm:$0xff]   ;;  %v11279_v18 = vld [vmem:[#allocation11 + $0x68] ss:$16 sps:$4 sm:$0xff]  }
 0x365   :  { %5874 = vmatpush1.bf16.msra.mxu0 %v11186_v19  ;;  %6390 = vmatpush1.bf16.msra.mxu1 %v11189_v52  ;;  %v11284_v19 = vld [vmem:[#allocation11 + $0x84] ss:$16 sps:$4 sm:$0xff]   ;;  %v11287_v52 = vld [vmem:[#allocation11 + $0x8c] ss:$16 sps:$4 sm:$0xff]  }
 0x366   :  { %5875 = vmatprep.subr.bf16.mxu0 %v11194_v53  ;;  %6391 = vmatprep.subr.bf16.mxu1 %v11197_v20  ;;  %v11282_v53 = vld [vmem:[#allocation11 + $0x80] ss:$16 sps:$4 sm:$0xff]   ;;  %v11285_v20 = vld [vmem:[#allocation11 + $0x88] ss:$16 sps:$4 sm:$0xff]  }
 0x369   :  { %5876 = vmatpush1.bf16.msra.mxu0 %v11192_v21  ;;  %6392 = vmatpush1.bf16.msra.mxu1 %v11195_v22  ;;  %v11290_v21 = vld [vmem:[#allocation11 + $0xa4] ss:$16 sps:$4 sm:$0xff]   ;;  %v11293_v22 = vld [vmem:[#allocation11 + $0xac] ss:$16 sps:$4 sm:$0xff]  }
 0x36a   :  { %5877 = vmatprep.subr.bf16.mxu0 %v11200_v23  ;;  %6393 = vmatprep.subr.bf16.mxu1 %v11203_v59  ;;  %v11288_v23 = vld [vmem:[#allocation11 + $0xa0] ss:$16 sps:$4 sm:$0xff]   ;;  %v11291_v59 = vld [vmem:[#allocation11 + $0xa8] ss:$16 sps:$4 sm:$0xff]  }
 0x36d   :  { %5878 = vmatpush1.bf16.msra.mxu0 %v11198_v25  ;;  %6394 = vmatpush1.bf16.msra.mxu1 %v11201_v26  ;;  %v11296_v25 = vld [vmem:[#allocation11 + $0xc4] ss:$16 sps:$4 sm:$0xff]   ;;  %v11299_v26 = vld [vmem:[#allocation11 + $0xcc] ss:$16 sps:$4 sm:$0xff]  }
 0x36e   :  { %5879 = vmatprep.subr.bf16.mxu0 %v11206_v27  ;;  %6395 = vmatprep.subr.bf16.mxu1 %v11209_v28  ;;  %v11294_v27 = vld [vmem:[#allocation11 + $0xc0] ss:$16 sps:$4 sm:$0xff]   ;;  %v11297_v28 = vld [vmem:[#allocation11 + $0xc8] ss:$16 sps:$4 sm:$0xff]  }
 0x371   :  { %5880 = vmatpush1.bf16.msra.mxu0 %v11204_v29  ;;  %6396 = vmatpush1.bf16.msra.mxu1 %v11207_v30  ;;  %v11302_v29 = vld [vmem:[#allocation11 + $0xe4] ss:$16 sps:$4 sm:$0xff]   ;;  %v11305_v30 = vld [vmem:[#allocation11 + $0xec] ss:$16 sps:$4 sm:$0xff]  }
 0x372   :  { %5881 = vmatprep.subr.bf16.mxu0 %v11212_v31  ;;  %6397 = vmatprep.subr.bf16.mxu1 %v11215_v32  ;;  %v11300_v31 = vld [vmem:[#allocation11 + $0xe0] ss:$16 sps:$4 sm:$0xff]   ;;  %v11303_v32 = vld [vmem:[#allocation11 + $0xe8] ss:$16 sps:$4 sm:$0xff]  }
 0x375   :  { %5882 = vmatpush1.bf16.msra.mxu0 %v11210_v0  ;;  %6398 = vmatpush1.bf16.msra.mxu1 %v11213_v9  ;;  %v11308_v0 = vld [vmem:[#allocation11 + $0x104] ss:$16 sps:$4 sm:$0xff]   ;;  %v11311_v9 = vld [vmem:[#allocation11 + $0x10c] ss:$16 sps:$4 sm:$0xff]  }
 0x376   :  { %5883 = vmatprep.subr.bf16.mxu0 %v11218_v33  ;;  %6399 = vmatprep.subr.bf16.mxu1 %v11221_v34  ;;  %v11306_v33 = vld [vmem:[#allocation11 + $0x100] ss:$16 sps:$4 sm:$0xff]   ;;  %v11309_v34 = vld [vmem:[#allocation11 + $0x108] ss:$16 sps:$4 sm:$0xff]  }
 0x379   :  { %5884 = vmatpush1.bf16.msra.mxu0 %v11216_v35  ;;  %6400 = vmatpush1.bf16.msra.mxu1 %v11219_v36  ;;  %v11314_v35 = vld [vmem:[#allocation11 + $0x124] ss:$16 sps:$4 sm:$0xff]   ;;  %v11317_v36 = vld [vmem:[#allocation11 + $0x12c] ss:$16 sps:$4 sm:$0xff]  }
 0x37a   :  { %5885 = vmatprep.subr.bf16.mxu0 %v11224_v39  ;;  %6401 = vmatprep.subr.bf16.mxu1 %v11227_v42  ;;  %v11312_v39 = vld [vmem:[#allocation11 + $0x120] ss:$16 sps:$4 sm:$0xff]   ;;  %v11315_v42 = vld [vmem:[#allocation11 + $0x128] ss:$16 sps:$4 sm:$0xff]  }
 0x37d   :  { %5886 = vmatpush1.bf16.msra.mxu0 %v11222_v2  ;;  %6402 = vmatpush1.bf16.msra.mxu1 %v11225_v43  ;;  %v11320_v2 = vld [vmem:[#allocation11 + $0x144] ss:$16 sps:$4 sm:$0xff]   ;;  %v11323_v43 = vld [vmem:[#allocation11 + $0x14c] ss:$16 sps:$4 sm:$0xff]  }
 0x37e   :  { %5887 = vmatprep.subr.bf16.mxu0 %v11230_v44  ;;  %6403 = vmatprep.subr.bf16.mxu1 %v11233_v45  ;;  %v11318_v44 = vld [vmem:[#allocation11 + $0x140] ss:$16 sps:$4 sm:$0xff]   ;;  %v11321_v45 = vld [vmem:[#allocation11 + $0x148] ss:$16 sps:$4 sm:$0xff]  }
 0x381   :  { %5888 = vmatpush1.bf16.msra.mxu0 %v11228_v15  ;;  %6404 = vmatpush1.bf16.msra.mxu1 %v11231_v17  ;;  %v11326_v15 = vld [vmem:[#allocation11 + $0x164] ss:$16 sps:$4 sm:$0xff]   ;;  %v11329_v17 = vld [vmem:[#allocation11 + $0x16c] ss:$16 sps:$4 sm:$0xff]  }
 0x382   :  { %5889 = vmatprep.subr.bf16.mxu0 %v11236_v47  ;;  %6405 = vmatprep.subr.bf16.mxu1 %v11239_v63  ;;  %v11324_v47 = vld [vmem:[#allocation11 + $0x160] ss:$16 sps:$4 sm:$0xff]   ;;  %v11327_v63 = vld [vmem:[#allocation11 + $0x168] ss:$16 sps:$4 sm:$0xff]  }
 0x385   :  { %5890 = vmatpush1.bf16.msra.mxu0 %v11234_v24  ;;  %6406 = vmatpush1.bf16.msra.mxu1 %v11237_v48  ;;  %v11332_v24 = vld [vmem:[#allocation11 + $0x184] ss:$16 sps:$4 sm:$0xff]   ;;  %v11335_v48 = vld [vmem:[#allocation11 + $0x18c] ss:$16 sps:$4 sm:$0xff]  }
 0x386   :  { %5891 = vmatprep.subr.bf16.mxu0 %v11242_v49  ;;  %6407 = vmatprep.subr.bf16.mxu1 %v11245_v50  ;;  %v11330_v49 = vld [vmem:[#allocation11 + $0x180] ss:$16 sps:$4 sm:$0xff]   ;;  %v11333_v50 = vld [vmem:[#allocation11 + $0x188] ss:$16 sps:$4 sm:$0xff]  }
 0x389   :  { %5892 = vmatpush1.bf16.msra.mxu0 %v11240_v1  ;;  %6408 = vmatpush1.bf16.msra.mxu1 %v11243_v51  ;;  %v11338_v1 = vld [vmem:[#allocation11 + $0x1a4] ss:$16 sps:$4 sm:$0xff]   ;;  %v11341_v51 = vld [vmem:[#allocation11 + $0x1ac] ss:$16 sps:$4 sm:$0xff]  }
 0x38a   :  { %5893 = vmatprep.subr.bf16.mxu0 %v11248_v60  ;;  %6409 = vmatprep.subr.bf16.mxu1 %v11251_v56  ;;  %v11336_v60 = vld [vmem:[#allocation11 + $0x1a0] ss:$16 sps:$4 sm:$0xff]   ;;  %v11339_v56 = vld [vmem:[#allocation11 + $0x1a8] ss:$16 sps:$4 sm:$0xff]  }
 0x38d   :  { %5894 = vmatpush1.bf16.msra.mxu0 %v11246_v57  ;;  %6410 = vmatpush1.bf16.msra.mxu1 %v11249_v58  ;;  %v11344_v57 = vld [vmem:[#allocation11 + $0x1c4] ss:$16 sps:$4 sm:$0xff]   ;;  %v11347_v58 = vld [vmem:[#allocation11 + $0x1cc] ss:$16 sps:$4 sm:$0xff]  }
 0x38e   :  { %5895 = vmatprep.subr.bf16.mxu0 %v11254_v61  ;;  %6411 = vmatprep.subr.bf16.mxu1 %v11257_v3  ;;  %v11342_v61 = vld [vmem:[#allocation11 + $0x1c0] ss:$16 sps:$4 sm:$0xff]   ;;  %v11345_v3 = vld [vmem:[#allocation11 + $0x1c8] ss:$16 sps:$4 sm:$0xff]  }
 0x391   :  { %5896 = vmatpush1.bf16.msra.mxu0 %v11252_v4  ;;  %6412 = vmatpush1.bf16.msra.mxu1 %v11255_v37  ;;  %v11350_v4 = vld [vmem:[#allocation11 + $0x1e4] ss:$16 sps:$4 sm:$0xff]   ;;  %v11353_v37 = vld [vmem:[#allocation11 + $0x1ec] ss:$16 sps:$4 sm:$0xff]  }
 0x392   :  { %7226 = vmatprep.subr.bf16.mxu0 %v11260_v38  ;;  %7312 = vmatprep.subr.bf16.mxu1 %v11263_v5  ;;  %v11348_v38 = vld [vmem:[#allocation11 + $0x1e0] ss:$16 sps:$4 sm:$0xff]   ;;  %v11351_v5 = vld [vmem:[#allocation11 + $0x1e8] ss:$16 sps:$4 sm:$0xff]  }
 0x394   :  { %5898 = vmatmul.mubr.bf16.vlgmr.msra.gmra.mrb[0].mxu0 %v8793_v6  ;;  %6414 = vmatmul.mubr.bf16.vlgmr.msra.gmra.mrb[0].mxu1 %v8793_v6  ;;  %v11356_v6 = vld [vmem:[#allocation11 + $0x204] ss:$16 sps:$4 sm:$0xff]  }
 0x395   :  { %7227 = vmatpush1.bf16.msra.mxu0 %v11258_v54  ;;  %7313 = vmatpush1.bf16.msra.mxu1 %v11261_v55  ;;  %v11359_v54 = vld [vmem:[#allocation11 + $0x20c] ss:$16 sps:$4 sm:$0xff]   ;;  %v12323_v55 = vsub.s32 0, %v12067_v46 }
 0x396   :  { %7228 = vmatprep.subr.bf16.mxu0 %v11266_v7  ;;  %7314 = vmatprep.subr.bf16.mxu1 %v11269_v8  ;;  %v12326_v7 = vsub.s32 2, %v12067_v46  ;;  %v1410_v8 = vld [vmem:[#allocation9] sm:$0xf] }
 0x399   :  { %7229 = vmatpush1.bf16.msra.mxu0 %v11264_v62  ;;  %7315 = vmatpush1.bf16.msra.mxu1 %v11267_v10  ;;  %v12329_v62 = vsub.s32 1, %v12067_v46  ;;  %v12332_v10 = vsub.s32 3, %v12067_v46 }
 0x39a   :  { %7230 = vmatprep.subr.bf16.mxu0 %v11272_v11  ;;  %7316 = vmatprep.subr.bf16.mxu1 %v11275_v12  ;;  %v1415_v11 = vrot.slane %v1410_v8, %v12323_v55  ;;  %v1423_v12 = vrot.slane %v1410_v8, %v12326_v7 }
 0x39d   :  { %7231 = vmatpush1.bf16.msra.mxu0 %v11270_v40  ;;  %7317 = vmatpush1.bf16.msra.mxu1 %v11273_v41  ;;  %v1419_v40 = vrot.slane %v1410_v8, %v12329_v62  ;;  %v1427_v41 = vrot.slane %v1410_v8, %v12332_v10  ;;  %v11401_v8 = vld [vmem:[#allocation11 + $0x2ec] ss:$16 sps:$4 sm:$0xff]  }
 0x39e   :  { %7232 = vmatprep.subr.bf16.mxu0 %v11278_v13  ;;  %7318 = vmatprep.subr.bf16.mxu1 %v11281_v14 }
 0x3a1   :  { %7233 = vmatpush1.bf16.msra.mxu0 %v11276_v16  ;;  %7319 = vmatpush1.bf16.msra.mxu1 %v11279_v18 }
 0x3a2   :  { %7234 = vmatprep.subr.bf16.mxu0 %v11284_v19  ;;  %7320 = vmatprep.subr.bf16.mxu1 %v11287_v52 }
 0x3a5   :  { %7235 = vmatpush1.bf16.msra.mxu0 %v11282_v53  ;;  %7321 = vmatpush1.bf16.msra.mxu1 %v11285_v20 }
 0x3a6   :  { %7236 = vmatprep.subr.bf16.mxu0 %v11290_v21  ;;  %7322 = vmatprep.subr.bf16.mxu1 %v11293_v22 }
 0x3a9   :  { %7237 = vmatpush1.bf16.msra.mxu0 %v11288_v23  ;;  %7323 = vmatpush1.bf16.msra.mxu1 %v11291_v59 }
 0x3aa   :  { %7238 = vmatprep.subr.bf16.mxu0 %v11296_v25  ;;  %7324 = vmatprep.subr.bf16.mxu1 %v11299_v26 }
 0x3ad   :  { %7239 = vmatpush1.bf16.msra.mxu0 %v11294_v27  ;;  %7325 = vmatpush1.bf16.msra.mxu1 %v11297_v28 }
 0x3ae   :  { %7240 = vmatprep.subr.bf16.mxu0 %v11302_v29  ;;  %7326 = vmatprep.subr.bf16.mxu1 %v11305_v30 }
 0x3b1   :  { %7241 = vmatpush1.bf16.msra.mxu0 %v11300_v31  ;;  %7327 = vmatpush1.bf16.msra.mxu1 %v11303_v32 }
 0x3b2   :  { %7242 = vmatprep.subr.bf16.mxu0 %v11308_v0  ;;  %7328 = vmatprep.subr.bf16.mxu1 %v11311_v9 }
 0x3b5   :  { %7243 = vmatpush1.bf16.msra.mxu0 %v11306_v33  ;;  %7329 = vmatpush1.bf16.msra.mxu1 %v11309_v34 }
 0x3b6   :  { %7244 = vmatprep.subr.bf16.mxu0 %v11314_v35  ;;  %7330 = vmatprep.subr.bf16.mxu1 %v11317_v36 }
 0x3b9   :  { %7245 = vmatpush1.bf16.msra.mxu0 %v11312_v39  ;;  %7331 = vmatpush1.bf16.msra.mxu1 %v11315_v42  ;;  %v11354_v42 = vld [vmem:[#allocation11 + $0x200] ss:$16 sps:$4 sm:$0xff]  }
 0x3ba   :  { %7246 = vmatprep.subr.bf16.mxu0 %v11320_v2  ;;  %7332 = vmatprep.subr.bf16.mxu1 %v11323_v43  ;;  %v11357_v2 = vld [vmem:[#allocation11 + $0x208] ss:$16 sps:$4 sm:$0xff]   ;;  %v11362_v43 = vld [vmem:[#allocation11 + $0x224] ss:$16 sps:$4 sm:$0xff]  }
 0x3bd   :  { %7247 = vmatpush1.bf16.msra.mxu0 %v11318_v44  ;;  %7333 = vmatpush1.bf16.msra.mxu1 %v11321_v45  ;;  %v11365_v44 = vld [vmem:[#allocation11 + $0x22c] ss:$16 sps:$4 sm:$0xff]   ;;  %v11360_v45 = vld [vmem:[#allocation11 + $0x220] ss:$16 sps:$4 sm:$0xff]  }
 0x3be   :  { %7248 = vmatprep.subr.bf16.mxu0 %v11326_v15  ;;  %7334 = vmatprep.subr.bf16.mxu1 %v11329_v17  ;;  %v11363_v15 = vld [vmem:[#allocation11 + $0x228] ss:$16 sps:$4 sm:$0xff]   ;;  %v11368_v17 = vld [vmem:[#allocation11 + $0x244] ss:$16 sps:$4 sm:$0xff]  }
 0x3c1   :  { %7249 = vmatpush1.bf16.msra.mxu0 %v11324_v47  ;;  %7335 = vmatpush1.bf16.msra.mxu1 %v11327_v63  ;;  %v11371_v47 = vld [vmem:[#allocation11 + $0x24c] ss:$16 sps:$4 sm:$0xff]   ;;  %v11366_v63 = vld [vmem:[#allocation11 + $0x240] ss:$16 sps:$4 sm:$0xff]  }
 0x3c2   :  { %7250 = vmatprep.subr.bf16.mxu0 %v11332_v24  ;;  %7336 = vmatprep.subr.bf16.mxu1 %v11335_v48  ;;  %v11369_v24 = vld [vmem:[#allocation11 + $0x248] ss:$16 sps:$4 sm:$0xff]   ;;  %v11374_v48 = vld [vmem:[#allocation11 + $0x264] ss:$16 sps:$4 sm:$0xff]  }
 0x3c5   :  { %7251 = vmatpush1.bf16.msra.mxu0 %v11330_v49  ;;  %7337 = vmatpush1.bf16.msra.mxu1 %v11333_v50  ;;  %v11377_v49 = vld [vmem:[#allocation11 + $0x26c] ss:$16 sps:$4 sm:$0xff]   ;;  %v11372_v50 = vld [vmem:[#allocation11 + $0x260] ss:$16 sps:$4 sm:$0xff]  }
 0x3c6   :  { %7252 = vmatprep.subr.bf16.mxu0 %v11338_v1  ;;  %7338 = vmatprep.subr.bf16.mxu1 %v11341_v51  ;;  %v11375_v1 = vld [vmem:[#allocation11 + $0x268] ss:$16 sps:$4 sm:$0xff]   ;;  %v11380_v51 = vld [vmem:[#allocation11 + $0x284] ss:$16 sps:$4 sm:$0xff]  }
 0x3c9   :  { %7253 = vmatpush1.bf16.msra.mxu0 %v11336_v60  ;;  %7339 = vmatpush1.bf16.msra.mxu1 %v11339_v56  ;;  %v11383_v60 = vld [vmem:[#allocation11 + $0x28c] ss:$16 sps:$4 sm:$0xff]   ;;  %v11378_v56 = vld [vmem:[#allocation11 + $0x280] ss:$16 sps:$4 sm:$0xff]  }
 0x3ca   :  { %7254 = vmatprep.subr.bf16.mxu0 %v11344_v57  ;;  %7340 = vmatprep.subr.bf16.mxu1 %v11347_v58  ;;  %v11381_v57 = vld [vmem:[#allocation11 + $0x288] ss:$16 sps:$4 sm:$0xff]   ;;  %v11386_v58 = vld [vmem:[#allocation11 + $0x2a4] ss:$16 sps:$4 sm:$0xff]  }
 0x3cd   :  { %7255 = vmatpush1.bf16.msra.mxu0 %v11342_v61  ;;  %7341 = vmatpush1.bf16.msra.mxu1 %v11345_v3  ;;  %v11389_v61 = vld [vmem:[#allocation11 + $0x2ac] ss:$16 sps:$4 sm:$0xff]   ;;  %v11384_v3 = vld [vmem:[#allocation11 + $0x2a0] ss:$16 sps:$4 sm:$0xff]  }
 0x3ce   :  { %7256 = vmatprep.subr.bf16.mxu0 %v11350_v4  ;;  %7342 = vmatprep.subr.bf16.mxu1 %v11353_v37  ;;  %v11387_v4 = vld [vmem:[#allocation11 + $0x2a8] ss:$16 sps:$4 sm:$0xff]   ;;  %v11392_v37 = vld [vmem:[#allocation11 + $0x2c4] ss:$16 sps:$4 sm:$0xff]  }
 0x3d1   :  { %7257 = vmatpush1.bf16.msra.mxu0 %v11348_v38  ;;  %7343 = vmatpush1.bf16.msra.mxu1 %v11351_v5  ;;  %v11395_v38 = vld [vmem:[#allocation11 + $0x2cc] ss:$16 sps:$4 sm:$0xff]   ;;  %v11390_v5 = vld [vmem:[#allocation11 + $0x2c0] ss:$16 sps:$4 sm:$0xff]  }
 0x3d2   :  { %7269 = vmatprep.subr.bf16.mxu0 %v11356_v6  ;;  %7355 = vmatprep.subr.bf16.mxu1 %v11359_v54  ;;  %v11393_v6 = vld [vmem:[#allocation11 + $0x2c8] ss:$16 sps:$4 sm:$0xff]   ;;  %v11398_v54 = vld [vmem:[#allocation11 + $0x2e4] ss:$16 sps:$4 sm:$0xff]  }
 0x467   :  { %v5899_v13 = vpop.f32.mrb[0].mxu0  ;;  %v6415_v14 = vpop.f32.mrb[0].mxu1 }
 0x468   :  { %v9965_v16 = vadd.f32 %v5899_v13, %v1415_v11  ;;  %v9969_v18 = vadd.f32 %v6415_v14, %v1423_v12  ;;  %v5901_v19 = vpop.f32.mrb[1].mxu0  ;;  %v6417_v52 = vpop.f32.mrb[1].mxu1  ;;  %v11402_v13 = vld [vmem:[#allocation11 + $0x300] ss:$16 sps:$4 sm:$0xff]   ;;  %v11405_v14 = vld [vmem:[#allocation11 + $0x308] ss:$16 sps:$4 sm:$0xff]  }
 0x469   :  { %v9966_v53 = vadd.f32 %v5901_v19, %v1419_v40  ;;  %v9970_v20 = vadd.f32 %v6417_v52, %v1427_v41  ;;  %v5903_v21 = vpop.f32.mrb[2].mxu0  ;;  %v6419_v22 = vpop.f32.mrb[2].mxu1  ;;  %v11408_v19 = vld [vmem:[#allocation11 + $0x320] ss:$16 sps:$4 sm:$0xff]   ;;  %v11411_v52 = vld [vmem:[#allocation11 + $0x328] ss:$16 sps:$4 sm:$0xff]  }
 0x46a   :  { %v9967_v46 = vadd.f32 %v5903_v21, %v1415_v11  ;;  %v9971_v23 = vadd.f32 %v6419_v22, %v1423_v12  ;;  %v5905_v59 = vpop.f32.mrb[3].mxu0  ;;  %v6421_v25 = vpop.f32.mrb[3].mxu1  ;;  %v6424_v28 = vmax.f32 %v9965_v16, 0.0  ;;  %v6426_v29 = vmax.f32 %v9969_v18, 0.0  ;;  %v11396_v11 = vld [vmem:[#allocation11 + $0x2e0] ss:$16 sps:$4 sm:$0xff]  }
 0x46b   :  { %v9968_v26 = vadd.f32 %v5905_v59, %v1419_v40  ;;  %v9972_v27 = vadd.f32 %v6421_v25, %v1427_v41  ;;  %v6425_v32 = vmax.f32 %v9966_v53, 0.0  ;;  %v6427_v0 = vmax.f32 %v9970_v20, 0.0  ;;  %v11399_v12 = vld [vmem:[#allocation11 + $0x2e8] ss:$16 sps:$4 sm:$0xff]   ;;  %v11404_v40 = vld [vmem:[#allocation11 + $0x304] ss:$16 sps:$4 sm:$0xff]  }
 0x46c   :  { %v6428_v30 = vmax.f32 %v9967_v46, 0.0  ;;  %v6430_v31 = vmax.f32 %v9971_v23, 0.0  ;;  %v11407_v41 = vld [vmem:[#allocation11 + $0x30c] ss:$16 sps:$4 sm:$0xff]   ;;  %v11410_v16 = vld [vmem:[#allocation11 + $0x324] ss:$16 sps:$4 sm:$0xff]  }
 0x46d   :  { %v6429_v9 = vmax.f32 %v9968_v26, 0.0  ;;  %v6431_v33 = vmax.f32 %v9972_v27, 0.0  ;;  %v11413_v18 = vld [vmem:[#allocation11 + $0x32c] ss:$16 sps:$4 sm:$0xff]   ;;  %v11416_v53 = vld [vmem:[#allocation11 + $0x344] ss:$16 sps:$4 sm:$0xff]  }
 0x46e   :  { %v6432_v34 = vpack.c.bf16 %v6428_v30, %v6424_v28  ;;  %v12338_v35 = vpack.c.bf16 %v6430_v31, %v6426_v29  ;;  %v11419_v20 = vld [vmem:[#allocation11 + $0x34c] ss:$16 sps:$4 sm:$0xff]   ;;  %v11414_v21 = vld [vmem:[#allocation11 + $0x340] ss:$16 sps:$4 sm:$0xff]   ;;  %v11417_v22 = vld [vmem:[#allocation11 + $0x348] ss:$16 sps:$4 sm:$0xff]  }
 0x46f   :  { %v6433_v36 = vpack.c.bf16 %v6429_v9, %v6425_v32  ;;  %v6435_v39 = vpack.c.bf16 %v6431_v33, %v6427_v0  ;;  %v11422_v46 = vld [vmem:[#allocation11 + $0x364] ss:$16 sps:$4 sm:$0xff]   ;;  %v11425_v23 = vld [vmem:[#allocation11 + $0x36c] ss:$16 sps:$4 sm:$0xff]   ;;  %v11420_v59 = vld [vmem:[#allocation11 + $0x360] ss:$16 sps:$4 sm:$0xff]  }
 0x470   :  { %v11423_v25 = vld [vmem:[#allocation11 + $0x368] ss:$16 sps:$4 sm:$0xff]   ;;  %v11428_v26 = vld [vmem:[#allocation11 + $0x384] ss:$16 sps:$4 sm:$0xff]   ;;  %v11431_v27 = vld [vmem:[#allocation11 + $0x38c] ss:$16 sps:$4 sm:$0xff]  }
 0x471   :  { %7258 = vmatprep.mubr.bf16.mxu0 %v6433_v36  ;;  %7344 = vmatprep.mubr.bf16.mxu1 %v6433_v36  ;;  %v11426_v28 = vld [vmem:[#allocation11 + $0x380] ss:$16 sps:$4 sm:$0xff]   ;;  %v11429_v29 = vld [vmem:[#allocation11 + $0x388] ss:$16 sps:$4 sm:$0xff]   ;;  %v11434_v30 = vld [vmem:[#allocation11 + $0x3a4] ss:$16 sps:$4 sm:$0xff]  }
 0x472   :  { %7259 = vmatmul.mubr.bf16.vlgmr.msra.gmra.mrb[4].mxu0 %v6432_v34  ;;  %7345 = vmatmul.mubr.bf16.vlgmr.msra.gmra.mrb[4].mxu1 %v6432_v34  ;;  %v11437_v31 = vld [vmem:[#allocation11 + $0x3ac] ss:$16 sps:$4 sm:$0xff]   ;;  %v11432_v32 = vld [vmem:[#allocation11 + $0x3a0] ss:$16 sps:$4 sm:$0xff]   ;;  %v11435_v0 = vld [vmem:[#allocation11 + $0x3a8] ss:$16 sps:$4 sm:$0xff]  }
 0x473   :  { %7270 = vmatpush1.bf16.msra.mxu0 %v11354_v42  ;;  %7356 = vmatpush1.bf16.msra.mxu1 %v11357_v2  ;;  %v11440_v9 = vld [vmem:[#allocation11 + $0x3c4] ss:$16 sps:$4 sm:$0xff]   ;;  %v11443_v33 = vld [vmem:[#allocation11 + $0x3cc] ss:$16 sps:$4 sm:$0xff]   ;;  %v11438_v34 = vld [vmem:[#allocation11 + $0x3c0] ss:$16 sps:$4 sm:$0xff]  }
 0x474   :  { %7301 = vmatprep.mubr.bf16.mxu0 %v6435_v39  ;;  %7387 = vmatprep.mubr.bf16.mxu1 %v6435_v39  ;;  %v11441_v36 = vld [vmem:[#allocation11 + $0x3c8] ss:$16 sps:$4 sm:$0xff]   ;;  %v11446_v39 = vld [vmem:[#allocation11 + $0x3e4] ss:$16 sps:$4 sm:$0xff]   ;;  %v11449_v42 = vld [vmem:[#allocation11 + $0x3ec] ss:$16 sps:$4 sm:$0xff]  }
 0x475   :  { %7271 = vmatprep.subr.bf16.mxu0 %v11362_v43  ;;  %7357 = vmatprep.subr.bf16.mxu1 %v11365_v44  ;;  %v11444_v2 = vld [vmem:[#allocation11 + $0x3e0] ss:$16 sps:$4 sm:$0xff]   ;;  %v11447_v43 = vld [vmem:[#allocation11 + $0x3e8] ss:$16 sps:$4 sm:$0xff]  }
 0x476   :  { %v11452_v44 = vld [vmem:[#allocation14 + $0x4] ss:$16 sps:$4 sm:$0xff]  }
 0x477   :  { %7272 = vmatpush1.bf16.msra.mxu0 %v11360_v45  ;;  %7358 = vmatpush1.bf16.msra.mxu1 %v11363_v15  ;;  %v11455_v45 = vld [vmem:[#allocation14 + $0xc] ss:$16 sps:$4 sm:$0xff]   ;;  %v11450_v15 = vld [vmem:[#allocation14] ss:$16 sps:$4 sm:$0xff]  }
 0x478   :  { %7273 = vmatprep.subr.bf16.mxu0 %v11368_v17  ;;  %7359 = vmatprep.subr.bf16.mxu1 %v11371_v47  ;;  %v11453_v17 = vld [vmem:[#allocation14 + $0x8] ss:$16 sps:$4 sm:$0xff]   ;;  %v11458_v47 = vld [vmem:[#allocation14 + $0x24] ss:$16 sps:$4 sm:$0xff]  }
 0x47b   :  { %7274 = vmatpush1.bf16.msra.mxu0 %v11366_v63  ;;  %7360 = vmatpush1.bf16.msra.mxu1 %v11369_v24  ;;  %v11461_v63 = vld [vmem:[#allocation14 + $0x2c] ss:$16 sps:$4 sm:$0xff]   ;;  %v11456_v24 = vld [vmem:[#allocation14 + $0x20] ss:$16 sps:$4 sm:$0xff]  }
 0x47c   :  { %7275 = vmatprep.subr.bf16.mxu0 %v11374_v48  ;;  %7361 = vmatprep.subr.bf16.mxu1 %v11377_v49  ;;  %v11459_v48 = vld [vmem:[#allocation14 + $0x28] ss:$16 sps:$4 sm:$0xff]   ;;  %v11464_v49 = vld [vmem:[#allocation14 + $0x44] ss:$16 sps:$4 sm:$0xff]  }
 0x47f   :  { %7276 = vmatpush1.bf16.msra.mxu0 %v11372_v50  ;;  %7362 = vmatpush1.bf16.msra.mxu1 %v11375_v1  ;;  %v11467_v50 = vld [vmem:[#allocation14 + $0x4c] ss:$16 sps:$4 sm:$0xff]   ;;  %v11462_v1 = vld [vmem:[#allocation14 + $0x40] ss:$16 sps:$4 sm:$0xff]  }
 0x480   :  { %7277 = vmatprep.subr.bf16.mxu0 %v11380_v51  ;;  %7363 = vmatprep.subr.bf16.mxu1 %v11383_v60  ;;  %v11465_v51 = vld [vmem:[#allocation14 + $0x48] ss:$16 sps:$4 sm:$0xff]   ;;  %v11470_v60 = vld [vmem:[#allocation14 + $0x64] ss:$16 sps:$4 sm:$0xff]  }
 0x483   :  { %7278 = vmatpush1.bf16.msra.mxu0 %v11378_v56  ;;  %7364 = vmatpush1.bf16.msra.mxu1 %v11381_v57  ;;  %v11473_v56 = vld [vmem:[#allocation14 + $0x6c] ss:$16 sps:$4 sm:$0xff]   ;;  %v11468_v57 = vld [vmem:[#allocation14 + $0x60] ss:$16 sps:$4 sm:$0xff]  }
 0x484   :  { %7279 = vmatprep.subr.bf16.mxu0 %v11386_v58  ;;  %7365 = vmatprep.subr.bf16.mxu1 %v11389_v61  ;;  %v11476_v58 = vld [vmem:[#allocation14 + $0x84] ss:$16 sps:$4 sm:$0xff]   ;;  %v11479_v61 = vld [vmem:[#allocation14 + $0x8c] ss:$16 sps:$4 sm:$0xff]  }
 0x487   :  { %7280 = vmatpush1.bf16.msra.mxu0 %v11384_v3  ;;  %7366 = vmatpush1.bf16.msra.mxu1 %v11387_v4  ;;  %v11474_v3 = vld [vmem:[#allocation14 + $0x80] ss:$16 sps:$4 sm:$0xff]   ;;  %v11477_v4 = vld [vmem:[#allocation14 + $0x88] ss:$16 sps:$4 sm:$0xff]  }
 0x488   :  { %7281 = vmatprep.subr.bf16.mxu0 %v11392_v37  ;;  %7367 = vmatprep.subr.bf16.mxu1 %v11395_v38  ;;  %v11482_v37 = vld [vmem:[#allocation14 + $0xa4] ss:$16 sps:$4 sm:$0xff]   ;;  %v11485_v38 = vld [vmem:[#allocation14 + $0xac] ss:$16 sps:$4 sm:$0xff]  }
 0x48b   :  { %7282 = vmatpush1.bf16.msra.mxu0 %v11390_v5  ;;  %7368 = vmatpush1.bf16.msra.mxu1 %v11393_v6  ;;  %v11480_v5 = vld [vmem:[#allocation14 + $0xa0] ss:$16 sps:$4 sm:$0xff]   ;;  %v11483_v6 = vld [vmem:[#allocation14 + $0xa8] ss:$16 sps:$4 sm:$0xff]  }
 0x48c   :  { %7283 = vmatprep.subr.bf16.mxu0 %v11398_v54  ;;  %7369 = vmatprep.subr.bf16.mxu1 %v11401_v8  ;;  %v11488_v54 = vld [vmem:[#allocation14 + $0xc4] ss:$16 sps:$4 sm:$0xff]   ;;  %v11491_v8 = vld [vmem:[#allocation14 + $0xcc] ss:$16 sps:$4 sm:$0xff]  }
 0x48f   :  { %7284 = vmatpush1.bf16.msra.mxu0 %v11396_v11  ;;  %7370 = vmatpush1.bf16.msra.mxu1 %v11399_v12  ;;  %v11486_v11 = vld [vmem:[#allocation14 + $0xc0] ss:$16 sps:$4 sm:$0xff]   ;;  %v11489_v12 = vld [vmem:[#allocation14 + $0xc8] ss:$16 sps:$4 sm:$0xff]  }
 0x490   :  { %7285 = vmatprep.subr.bf16.mxu0 %v11404_v40  ;;  %7371 = vmatprep.subr.bf16.mxu1 %v11407_v41  ;;  %v11494_v40 = vld [vmem:[#allocation14 + $0xe4] ss:$16 sps:$4 sm:$0xff]   ;;  %v11497_v41 = vld [vmem:[#allocation14 + $0xec] ss:$16 sps:$4 sm:$0xff]  }
 0x493   :  { %7286 = vmatpush1.bf16.msra.mxu0 %v11402_v13  ;;  %7372 = vmatpush1.bf16.msra.mxu1 %v11405_v14  ;;  %v11492_v13 = vld [vmem:[#allocation14 + $0xe0] ss:$16 sps:$4 sm:$0xff]   ;;  %v11495_v14 = vld [vmem:[#allocation14 + $0xe8] ss:$16 sps:$4 sm:$0xff]  }
 0x494   :  { %7287 = vmatprep.subr.bf16.mxu0 %v11410_v16  ;;  %7373 = vmatprep.subr.bf16.mxu1 %v11413_v18  ;;  %v11500_v16 = vld [vmem:[#allocation14 + $0x104] ss:$16 sps:$4 sm:$0xff]   ;;  %v11503_v18 = vld [vmem:[#allocation14 + $0x10c] ss:$16 sps:$4 sm:$0xff]  }
 0x497   :  { %7288 = vmatpush1.bf16.msra.mxu0 %v11408_v19  ;;  %7374 = vmatpush1.bf16.msra.mxu1 %v11411_v52  ;;  %v11498_v19 = vld [vmem:[#allocation14 + $0x100] ss:$16 sps:$4 sm:$0xff]   ;;  %v11501_v52 = vld [vmem:[#allocation14 + $0x108] ss:$16 sps:$4 sm:$0xff]  }
 0x498   :  { %7289 = vmatprep.subr.bf16.mxu0 %v11416_v53  ;;  %7375 = vmatprep.subr.bf16.mxu1 %v11419_v20  ;;  %v11506_v53 = vld [vmem:[#allocation14 + $0x124] ss:$16 sps:$4 sm:$0xff]   ;;  %v11509_v20 = vld [vmem:[#allocation14 + $0x12c] ss:$16 sps:$4 sm:$0xff]  }
 0x49b   :  { %7290 = vmatpush1.bf16.msra.mxu0 %v11414_v21  ;;  %7376 = vmatpush1.bf16.msra.mxu1 %v11417_v22  ;;  %v11504_v21 = vld [vmem:[#allocation14 + $0x120] ss:$16 sps:$4 sm:$0xff]   ;;  %v11507_v22 = vld [vmem:[#allocation14 + $0x128] ss:$16 sps:$4 sm:$0xff]  }
 0x49c   :  { %7291 = vmatprep.subr.bf16.mxu0 %v11422_v46  ;;  %7377 = vmatprep.subr.bf16.mxu1 %v11425_v23  ;;  %v11512_v46 = vld [vmem:[#allocation14 + $0x144] ss:$16 sps:$4 sm:$0xff]   ;;  %v11515_v23 = vld [vmem:[#allocation14 + $0x14c] ss:$16 sps:$4 sm:$0xff]  }
 0x49f   :  { %7292 = vmatpush1.bf16.msra.mxu0 %v11420_v59  ;;  %7378 = vmatpush1.bf16.msra.mxu1 %v11423_v25  ;;  %v11510_v59 = vld [vmem:[#allocation14 + $0x140] ss:$16 sps:$4 sm:$0xff]   ;;  %v11513_v25 = vld [vmem:[#allocation14 + $0x148] ss:$16 sps:$4 sm:$0xff]  }
 0x4a0   :  { %7293 = vmatprep.subr.bf16.mxu0 %v11428_v26  ;;  %7379 = vmatprep.subr.bf16.mxu1 %v11431_v27  ;;  %v11518_v26 = vld [vmem:[#allocation14 + $0x164] ss:$16 sps:$4 sm:$0xff]   ;;  %v11521_v27 = vld [vmem:[#allocation14 + $0x16c] ss:$16 sps:$4 sm:$0xff]  }
 0x4a3   :  { %7294 = vmatpush1.bf16.msra.mxu0 %v11426_v28  ;;  %7380 = vmatpush1.bf16.msra.mxu1 %v11429_v29  ;;  %v11516_v28 = vld [vmem:[#allocation14 + $0x160] ss:$16 sps:$4 sm:$0xff]   ;;  %v11519_v29 = vld [vmem:[#allocation14 + $0x168] ss:$16 sps:$4 sm:$0xff]  }
 0x4a4   :  { %7295 = vmatprep.subr.bf16.mxu0 %v11434_v30  ;;  %7381 = vmatprep.subr.bf16.mxu1 %v11437_v31  ;;  %v11524_v30 = vld [vmem:[#allocation14 + $0x184] ss:$16 sps:$4 sm:$0xff]   ;;  %v11527_v31 = vld [vmem:[#allocation14 + $0x18c] ss:$16 sps:$4 sm:$0xff]  }
 0x4a7   :  { %7296 = vmatpush1.bf16.msra.mxu0 %v11432_v32  ;;  %7382 = vmatpush1.bf16.msra.mxu1 %v11435_v0  ;;  %v11522_v32 = vld [vmem:[#allocation14 + $0x180] ss:$16 sps:$4 sm:$0xff]   ;;  %v11525_v0 = vld [vmem:[#allocation14 + $0x188] ss:$16 sps:$4 sm:$0xff]  }
 0x4a8   :  { %7297 = vmatprep.subr.bf16.mxu0 %v11440_v9  ;;  %7383 = vmatprep.subr.bf16.mxu1 %v11443_v33  ;;  %v11530_v9 = vld [vmem:[#allocation14 + $0x1a4] ss:$16 sps:$4 sm:$0xff]   ;;  %v11533_v33 = vld [vmem:[#allocation14 + $0x1ac] ss:$16 sps:$4 sm:$0xff]  }
 0x4ab   :  { %7298 = vmatpush1.bf16.msra.mxu0 %v11438_v34  ;;  %7384 = vmatpush1.bf16.msra.mxu1 %v11441_v36  ;;  %v11528_v34 = vld [vmem:[#allocation14 + $0x1a0] ss:$16 sps:$4 sm:$0xff]   ;;  %v11531_v36 = vld [vmem:[#allocation14 + $0x1a8] ss:$16 sps:$4 sm:$0xff]  }
 0x4ac   :  { %7299 = vmatprep.subr.bf16.mxu0 %v11446_v39  ;;  %7385 = vmatprep.subr.bf16.mxu1 %v11449_v42  ;;  %v11536_v39 = vld [vmem:[#allocation14 + $0x1c4] ss:$16 sps:$4 sm:$0xff]   ;;  %v11539_v42 = vld [vmem:[#allocation14 + $0x1cc] ss:$16 sps:$4 sm:$0xff]  }
 0x4af   :  { %7300 = vmatpush1.bf16.msra.mxu0 %v11444_v2  ;;  %7386 = vmatpush1.bf16.msra.mxu1 %v11447_v43  ;;  %v11534_v2 = vld [vmem:[#allocation14 + $0x1c0] ss:$16 sps:$4 sm:$0xff]   ;;  %v11537_v43 = vld [vmem:[#allocation14 + $0x1c8] ss:$16 sps:$4 sm:$0xff]  }
 0x4b0   :  { %8200 = vmatprep.subr.bf16.mxu0 %v11452_v44  ;;  %8286 = vmatprep.subr.bf16.mxu1 %v11455_v45  ;;  %v11542_v44 = vld [vmem:[#allocation14 + $0x1e4] ss:$16 sps:$4 sm:$0xff]   ;;  %v11545_v45 = vld [vmem:[#allocation14 + $0x1ec] ss:$16 sps:$4 sm:$0xff]  }
 0x4b2   :  { %7302 = vmatmul.mubr.bf16.vlgmr.msra.gmra.mrb[4].mxu0 %v12338_v35  ;;  %7388 = vmatmul.mubr.bf16.vlgmr.msra.gmra.mrb[4].mxu1 %v12338_v35  ;;  %v11471_v35 = vld [vmem:[#allocation14 + $0x68] ss:$16 sps:$4 sm:$0xff]  }
 0x4b3   :  { %8201 = vmatpush1.bf16.msra.mxu0 %v11450_v15  ;;  %8287 = vmatpush1.bf16.msra.mxu1 %v11453_v17  ;;  %v11540_v15 = vld [vmem:[#allocation14 + $0x1e0] ss:$16 sps:$4 sm:$0xff]   ;;  %v11543_v17 = vld [vmem:[#allocation14 + $0x1e8] ss:$16 sps:$4 sm:$0xff]  }
 0x4b4   :  { %8202 = vmatprep.subr.bf16.mxu0 %v11458_v47  ;;  %8288 = vmatprep.subr.bf16.mxu1 %v11461_v63  ;;  %v11548_v47 = vld [vmem:[#allocation14 + $0x204] ss:$16 sps:$4 sm:$0xff]   ;;  %v11551_v63 = vld [vmem:[#allocation14 + $0x20c] ss:$16 sps:$4 sm:$0xff]  }
 0x4b7   :  { %8203 = vmatpush1.bf16.msra.mxu0 %v11456_v24  ;;  %8289 = vmatpush1.bf16.msra.mxu1 %v11459_v48  ;;  %v6564_v24 = vld [vmem:[#allocation12] sm:$0xf] }
 0x4b8   :  { %8204 = vmatprep.subr.bf16.mxu0 %v11464_v49  ;;  %8290 = vmatprep.subr.bf16.mxu1 %v11467_v50  ;;  %v6569_v48 = vrot.slane %v6564_v24, %v12323_v55  ;;  %v6577_v49 = vrot.slane %v6564_v24, %v12326_v7  ;;  %v6573_v50 = vrot.slane %v6564_v24, %v12329_v62 }
 0x4bb   :  { %8205 = vmatpush1.bf16.msra.mxu0 %v11462_v1  ;;  %8291 = vmatpush1.bf16.msra.mxu1 %v11465_v51  ;;  %v6581_v1 = vrot.slane %v6564_v24, %v12332_v10  ;;  %v11593_v24 = vld [vmem:[#allocation14 + $0x2ec] ss:$16 sps:$4 sm:$0xff]  }
 0x4bc   :  { %8206 = vmatprep.subr.bf16.mxu0 %v11470_v60  ;;  %8292 = vmatprep.subr.bf16.mxu1 %v11473_v56 }
 0x4bf   :  { %8207 = vmatpush1.bf16.msra.mxu0 %v11468_v57  ;;  %8293 = vmatpush1.bf16.msra.mxu1 %v11471_v35 }
 0x4c0   :  { %8208 = vmatprep.subr.bf16.mxu0 %v11476_v58  ;;  %8294 = vmatprep.subr.bf16.mxu1 %v11479_v61 }
 0x4c3   :  { %8209 = vmatpush1.bf16.msra.mxu0 %v11474_v3  ;;  %8295 = vmatpush1.bf16.msra.mxu1 %v11477_v4 }
 0x4c4   :  { %8210 = vmatprep.subr.bf16.mxu0 %v11482_v37  ;;  %8296 = vmatprep.subr.bf16.mxu1 %v11485_v38 }
 0x4c7   :  { %8211 = vmatpush1.bf16.msra.mxu0 %v11480_v5  ;;  %8297 = vmatpush1.bf16.msra.mxu1 %v11483_v6 }
 0x4c8   :  { %8212 = vmatprep.subr.bf16.mxu0 %v11488_v54  ;;  %8298 = vmatprep.subr.bf16.mxu1 %v11491_v8 }
 0x4cb   :  { %8213 = vmatpush1.bf16.msra.mxu0 %v11486_v11  ;;  %8299 = vmatpush1.bf16.msra.mxu1 %v11489_v12 }
 0x4cc   :  { %8214 = vmatprep.subr.bf16.mxu0 %v11494_v40  ;;  %8300 = vmatprep.subr.bf16.mxu1 %v11497_v41 }
 0x4cf   :  { %8215 = vmatpush1.bf16.msra.mxu0 %v11492_v13  ;;  %8301 = vmatpush1.bf16.msra.mxu1 %v11495_v14 }
 0x4d0   :  { %8216 = vmatprep.subr.bf16.mxu0 %v11500_v16  ;;  %8302 = vmatprep.subr.bf16.mxu1 %v11503_v18 }
 0x4d3   :  { %8217 = vmatpush1.bf16.msra.mxu0 %v11498_v19  ;;  %8303 = vmatpush1.bf16.msra.mxu1 %v11501_v52 }
 0x4d4   :  { %8218 = vmatprep.subr.bf16.mxu0 %v11506_v53  ;;  %8304 = vmatprep.subr.bf16.mxu1 %v11509_v20 }
 0x4d7   :  { %8219 = vmatpush1.bf16.msra.mxu0 %v11504_v21  ;;  %8305 = vmatpush1.bf16.msra.mxu1 %v11507_v22  ;;  %v11546_v22 = vld [vmem:[#allocation14 + $0x200] ss:$16 sps:$4 sm:$0xff]  }
 0x4d8   :  { %8220 = vmatprep.subr.bf16.mxu0 %v11512_v46  ;;  %8306 = vmatprep.subr.bf16.mxu1 %v11515_v23  ;;  %v11549_v46 = vld [vmem:[#allocation14 + $0x208] ss:$16 sps:$4 sm:$0xff]   ;;  %v11554_v23 = vld [vmem:[#allocation14 + $0x224] ss:$16 sps:$4 sm:$0xff]  }
 0x4db   :  { %8221 = vmatpush1.bf16.msra.mxu0 %v11510_v59  ;;  %8307 = vmatpush1.bf16.msra.mxu1 %v11513_v25  ;;  %v11557_v59 = vld [vmem:[#allocation14 + $0x22c] ss:$16 sps:$4 sm:$0xff]   ;;  %v11552_v25 = vld [vmem:[#allocation14 + $0x220] ss:$16 sps:$4 sm:$0xff]  }
 0x4dc   :  { %8222 = vmatprep.subr.bf16.mxu0 %v11518_v26  ;;  %8308 = vmatprep.subr.bf16.mxu1 %v11521_v27  ;;  %v11555_v26 = vld [vmem:[#allocation14 + $0x228] ss:$16 sps:$4 sm:$0xff]   ;;  %v11560_v27 = vld [vmem:[#allocation14 + $0x244] ss:$16 sps:$4 sm:$0xff]  }
 0x4df   :  { %8223 = vmatpush1.bf16.msra.mxu0 %v11516_v28  ;;  %8309 = vmatpush1.bf16.msra.mxu1 %v11519_v29  ;;  %v11563_v28 = vld [vmem:[#allocation14 + $0x24c] ss:$16 sps:$4 sm:$0xff]   ;;  %v11558_v29 = vld [vmem:[#allocation14 + $0x240] ss:$16 sps:$4 sm:$0xff]  }
 0x4e0   :  { %8224 = vmatprep.subr.bf16.mxu0 %v11524_v30  ;;  %8310 = vmatprep.subr.bf16.mxu1 %v11527_v31  ;;  %v11561_v30 = vld [vmem:[#allocation14 + $0x248] ss:$16 sps:$4 sm:$0xff]   ;;  %v11566_v31 = vld [vmem:[#allocation14 + $0x264] ss:$16 sps:$4 sm:$0xff]  }
 0x4e3   :  { %8225 = vmatpush1.bf16.msra.mxu0 %v11522_v32  ;;  %8311 = vmatpush1.bf16.msra.mxu1 %v11525_v0  ;;  %v11569_v32 = vld [vmem:[#allocation14 + $0x26c] ss:$16 sps:$4 sm:$0xff]   ;;  %v11564_v0 = vld [vmem:[#allocation14 + $0x260] ss:$16 sps:$4 sm:$0xff]  }
 0x4e4   :  { %8226 = vmatprep.subr.bf16.mxu0 %v11530_v9  ;;  %8312 = vmatprep.subr.bf16.mxu1 %v11533_v33  ;;  %v11567_v9 = vld [vmem:[#allocation14 + $0x268] ss:$16 sps:$4 sm:$0xff]   ;;  %v11572_v33 = vld [vmem:[#allocation14 + $0x284] ss:$16 sps:$4 sm:$0xff]  }
 0x4e7   :  { %8227 = vmatpush1.bf16.msra.mxu0 %v11528_v34  ;;  %8313 = vmatpush1.bf16.msra.mxu1 %v11531_v36  ;;  %v11575_v34 = vld [vmem:[#allocation14 + $0x28c] ss:$16 sps:$4 sm:$0xff]   ;;  %v11570_v36 = vld [vmem:[#allocation14 + $0x280] ss:$16 sps:$4 sm:$0xff]  }
 0x4e8   :  { %8228 = vmatprep.subr.bf16.mxu0 %v11536_v39  ;;  %8314 = vmatprep.subr.bf16.mxu1 %v11539_v42  ;;  %v11573_v39 = vld [vmem:[#allocation14 + $0x288] ss:$16 sps:$4 sm:$0xff]   ;;  %v11578_v42 = vld [vmem:[#allocation14 + $0x2a4] ss:$16 sps:$4 sm:$0xff]  }
 0x4eb   :  { %8229 = vmatpush1.bf16.msra.mxu0 %v11534_v2  ;;  %8315 = vmatpush1.bf16.msra.mxu1 %v11537_v43  ;;  %v11581_v2 = vld [vmem:[#allocation14 + $0x2ac] ss:$16 sps:$4 sm:$0xff]   ;;  %v11576_v43 = vld [vmem:[#allocation14 + $0x2a0] ss:$16 sps:$4 sm:$0xff]  }
 0x4ec   :  { %8230 = vmatprep.subr.bf16.mxu0 %v11542_v44  ;;  %8316 = vmatprep.subr.bf16.mxu1 %v11545_v45  ;;  %v11579_v44 = vld [vmem:[#allocation14 + $0x2a8] ss:$16 sps:$4 sm:$0xff]   ;;  %v11584_v45 = vld [vmem:[#allocation14 + $0x2c4] ss:$16 sps:$4 sm:$0xff]  }
 0x4ef   :  { %8231 = vmatpush1.bf16.msra.mxu0 %v11540_v15  ;;  %8317 = vmatpush1.bf16.msra.mxu1 %v11543_v17  ;;  %v11587_v15 = vld [vmem:[#allocation14 + $0x2cc] ss:$16 sps:$4 sm:$0xff]   ;;  %v11582_v17 = vld [vmem:[#allocation14 + $0x2c0] ss:$16 sps:$4 sm:$0xff]  }
 0x4f0   :  { %8243 = vmatprep.subr.bf16.mxu0 %v11548_v47  ;;  %8329 = vmatprep.subr.bf16.mxu1 %v11551_v63  ;;  %v11585_v47 = vld [vmem:[#allocation14 + $0x2c8] ss:$16 sps:$4 sm:$0xff]   ;;  %v11590_v63 = vld [vmem:[#allocation14 + $0x2e4] ss:$16 sps:$4 sm:$0xff]  }
 0x585   :  { %v7303_v51 = vpop.f32.mrb[4].mxu0  ;;  %v7389_v60 = vpop.f32.mrb[4].mxu1 }
 0x586   :  { %v9973_v56 = vadd.f32 %v7303_v51, %v6569_v48  ;;  %v9977_v57 = vadd.f32 %v7389_v60, %v6577_v49  ;;  %v7305_v35 = vpop.f32.mrb[5].mxu0  ;;  %v7391_v58 = vpop.f32.mrb[5].mxu1  ;;  %v11594_v51 = vld [vmem:[#allocation14 + $0x300] ss:$16 sps:$4 sm:$0xff]   ;;  %v11597_v60 = vld [vmem:[#allocation14 + $0x308] ss:$16 sps:$4 sm:$0xff]  }
 0x587   :  { %v9974_v61 = vadd.f32 %v7305_v35, %v6573_v50  ;;  %v9978_v3 = vadd.f32 %v7391_v58, %v6581_v1  ;;  %v7307_v4 = vpop.f32.mrb[6].mxu0  ;;  %v7393_v37 = vpop.f32.mrb[6].mxu1  ;;  %v11600_v35 = vld [vmem:[#allocation14 + $0x320] ss:$16 sps:$4 sm:$0xff]   ;;  %v11603_v58 = vld [vmem:[#allocation14 + $0x328] ss:$16 sps:$4 sm:$0xff]  }
 0x588   :  { %v9975_v38 = vadd.f32 %v7307_v4, %v6569_v48  ;;  %v9979_v5 = vadd.f32 %v7393_v37, %v6577_v49  ;;  %v7309_v6 = vpop.f32.mrb[7].mxu0  ;;  %v7395_v54 = vpop.f32.mrb[7].mxu1  ;;  %v7398_v12 = vmax.f32 %v9973_v56, 0.0  ;;  %v7400_v40 = vmax.f32 %v9977_v57, 0.0  ;;  %v11588_v48 = vld [vmem:[#allocation14 + $0x2e0] ss:$16 sps:$4 sm:$0xff]  }
 0x589   :  { %v9976_v8 = vadd.f32 %v7309_v6, %v6573_v50  ;;  %v9980_v11 = vadd.f32 %v7395_v54, %v6581_v1  ;;  %v7399_v14 = vmax.f32 %v9974_v61, 0.0  ;;  %v7401_v16 = vmax.f32 %v9978_v3, 0.0  ;;  %v11591_v49 = vld [vmem:[#allocation14 + $0x2e8] ss:$16 sps:$4 sm:$0xff]   ;;  %v11596_v50 = vld [vmem:[#allocation14 + $0x304] ss:$16 sps:$4 sm:$0xff]  }
 0x58a   :  { %v7402_v41 = vmax.f32 %v9975_v38, 0.0  ;;  %v7404_v13 = vmax.f32 %v9979_v5, 0.0  ;;  %v11599_v1 = vld [vmem:[#allocation14 + $0x30c] ss:$16 sps:$4 sm:$0xff]   ;;  %v11602_v56 = vld [vmem:[#allocation14 + $0x324] ss:$16 sps:$4 sm:$0xff]  }
 0x58b   :  { %v7403_v18 = vmax.f32 %v9976_v8, 0.0  ;;  %v7405_v19 = vmax.f32 %v9980_v11, 0.0  ;;  %v11605_v57 = vld [vmem:[#allocation14 + $0x32c] ss:$16 sps:$4 sm:$0xff]   ;;  %v11608_v61 = vld [vmem:[#allocation14 + $0x344] ss:$16 sps:$4 sm:$0xff]  }
 0x58c   :  { %v7406_v52 = vpack.c.bf16 %v7402_v41, %v7398_v12  ;;  %v12346_v53 = vpack.c.bf16 %v7404_v13, %v7400_v40  ;;  %v11611_v3 = vld [vmem:[#allocation14 + $0x34c] ss:$16 sps:$4 sm:$0xff]   ;;  %v11606_v4 = vld [vmem:[#allocation14 + $0x340] ss:$16 sps:$4 sm:$0xff]   ;;  %v11609_v37 = vld [vmem:[#allocation14 + $0x348] ss:$16 sps:$4 sm:$0xff]  }
 0x58d   :  { %v7407_v20 = vpack.c.bf16 %v7403_v18, %v7399_v14  ;;  %v7409_v21 = vpack.c.bf16 %v7405_v19, %v7401_v16  ;;  %v11614_v38 = vld [vmem:[#allocation14 + $0x364] ss:$16 sps:$4 sm:$0xff]   ;;  %v11617_v5 = vld [vmem:[#allocation14 + $0x36c] ss:$16 sps:$4 sm:$0xff]   ;;  %v11612_v6 = vld [vmem:[#allocation14 + $0x360] ss:$16 sps:$4 sm:$0xff]  }
 0x58e   :  { %v11615_v54 = vld [vmem:[#allocation14 + $0x368] ss:$16 sps:$4 sm:$0xff]   ;;  %v11620_v8 = vld [vmem:[#allocation14 + $0x384] ss:$16 sps:$4 sm:$0xff]   ;;  %v11623_v11 = vld [vmem:[#allocation14 + $0x38c] ss:$16 sps:$4 sm:$0xff]  }
 0x58f   :  { %8232 = vmatprep.mubr.bf16.mxu0 %v7407_v20  ;;  %8318 = vmatprep.mubr.bf16.mxu1 %v7407_v20  ;;  %v11618_v12 = vld [vmem:[#allocation14 + $0x380] ss:$16 sps:$4 sm:$0xff]   ;;  %v11621_v40 = vld [vmem:[#allocation14 + $0x388] ss:$16 sps:$4 sm:$0xff]   ;;  %v11626_v41 = vld [vmem:[#allocation14 + $0x3a4] ss:$16 sps:$4 sm:$0xff]  }
 0x590   :  { %8233 = vmatmul.mubr.bf16.vlgmr.msra.gmra.mrb[8].mxu0 %v7406_v52  ;;  %8319 = vmatmul.mubr.bf16.vlgmr.msra.gmra.mrb[8].mxu1 %v7406_v52  ;;  %v11629_v13 = vld [vmem:[#allocation14 + $0x3ac] ss:$16 sps:$4 sm:$0xff]   ;;  %v11624_v14 = vld [vmem:[#allocation14 + $0x3a0] ss:$16 sps:$4 sm:$0xff]   ;;  %v11627_v16 = vld [vmem:[#allocation14 + $0x3a8] ss:$16 sps:$4 sm:$0xff]  }
 0x591   :  { %8244 = vmatpush1.bf16.msra.mxu0 %v11546_v22  ;;  %8330 = vmatpush1.bf16.msra.mxu1 %v11549_v46  ;;  %v11632_v18 = vld [vmem:[#allocation14 + $0x3c4] ss:$16 sps:$4 sm:$0xff]   ;;  %v11635_v19 = vld [vmem:[#allocation14 + $0x3cc] ss:$16 sps:$4 sm:$0xff]   ;;  %v11630_v52 = vld [vmem:[#allocation14 + $0x3c0] ss:$16 sps:$4 sm:$0xff]  }
 0x592   :  { %8275 = vmatprep.mubr.bf16.mxu0 %v7409_v21  ;;  %8361 = vmatprep.mubr.bf16.mxu1 %v7409_v21  ;;  %v11633_v20 = vld [vmem:[#allocation14 + $0x3c8] ss:$16 sps:$4 sm:$0xff]   ;;  %v11638_v21 = vld [vmem:[#allocation14 + $0x3e4] ss:$16 sps:$4 sm:$0xff]   ;;  %v11641_v22 = vld [vmem:[#allocation14 + $0x3ec] ss:$16 sps:$4 sm:$0xff]  }
 0x593   :  { %8245 = vmatprep.subr.bf16.mxu0 %v11554_v23  ;;  %8331 = vmatprep.subr.bf16.mxu1 %v11557_v59  ;;  %v11636_v46 = vld [vmem:[#allocation14 + $0x3e0] ss:$16 sps:$4 sm:$0xff]   ;;  %v11639_v23 = vld [vmem:[#allocation14 + $0x3e8] ss:$16 sps:$4 sm:$0xff]  }
 0x594   :  { %v11642_v59 = vld [vmem:[#allocation17 + $0x40] sm:$0xff]  }
 0x595   :  { %8246 = vmatpush1.bf16.msra.mxu0 %v11552_v25  ;;  %8332 = vmatpush1.bf16.msra.mxu1 %v11555_v26  ;;  %v11643_v25 = vld [vmem:[#allocation17 + $0xc0] sm:$0xff]  }
 0x596   :  { %8247 = vmatprep.subr.bf16.mxu0 %v11560_v27  ;;  %8333 = vmatprep.subr.bf16.mxu1 %v11563_v28  ;;  %v11644_v26 = vld [vmem:[#allocation17] sm:$0xff]   ;;  %v11646_v28 = vld [vmem:[#allocation17 + $0x48] sm:$0xff]  }
 0x597   :  { %v11645_v27 = vld [vmem:[#allocation17 + $0x80] sm:$0xff]  }
 0x599   :  { %8248 = vmatpush1.bf16.msra.mxu0 %v11558_v29  ;;  %8334 = vmatpush1.bf16.msra.mxu1 %v11561_v30  ;;  %v11647_v29 = vld [vmem:[#allocation17 + $0xc8] sm:$0xff]  }
 0x59a   :  { %8249 = vmatprep.subr.bf16.mxu0 %v11566_v31  ;;  %8335 = vmatprep.subr.bf16.mxu1 %v11569_v32  ;;  %v11648_v30 = vld [vmem:[#allocation17 + $0x8] sm:$0xff]   ;;  %v11650_v32 = vld [vmem:[#allocation17 + $0x50] sm:$0xff]  }
 0x59b   :  { %v11649_v31 = vld [vmem:[#allocation17 + $0x88] sm:$0xff]  }
 0x59d   :  { %8250 = vmatpush1.bf16.msra.mxu0 %v11564_v0  ;;  %8336 = vmatpush1.bf16.msra.mxu1 %v11567_v9  ;;  %v11651_v0 = vld [vmem:[#allocation17 + $0xd0] sm:$0xff]  }
 0x59e   :  { %8251 = vmatprep.subr.bf16.mxu0 %v11572_v33  ;;  %8337 = vmatprep.subr.bf16.mxu1 %v11575_v34  ;;  %v11652_v9 = vld [vmem:[#allocation17 + $0x10] sm:$0xff]   ;;  %v11654_v34 = vld [vmem:[#allocation17 + $0x58] sm:$0xff]  }
 0x59f   :  { %v11653_v33 = vld [vmem:[#allocation17 + $0x90] sm:$0xff]  }
 0x5a1   :  { %8252 = vmatpush1.bf16.msra.mxu0 %v11570_v36  ;;  %8338 = vmatpush1.bf16.msra.mxu1 %v11573_v39  ;;  %v11655_v36 = vld [vmem:[#allocation17 + $0xd8] sm:$0xff]  }
 0x5a2   :  { %8253 = vmatprep.subr.bf16.mxu0 %v11578_v42  ;;  %8339 = vmatprep.subr.bf16.mxu1 %v11581_v2  ;;  %v11656_v39 = vld [vmem:[#allocation17 + $0x18] sm:$0xff]   ;;  %v11658_v42 = vld [vmem:[#allocation17 + $0x60] sm:$0xff]  }
 0x5a3   :  { %v11659_v2 = vld [vmem:[#allocation17 + $0xe0] sm:$0xff]  }
 0x5a5   :  { %8254 = vmatpush1.bf16.msra.mxu0 %v11576_v43  ;;  %8340 = vmatpush1.bf16.msra.mxu1 %v11579_v44  ;;  %v11660_v43 = vld [vmem:[#allocation17 + $0x20] sm:$0xff]  }
 0x5a6   :  { %8255 = vmatprep.subr.bf16.mxu0 %v11584_v45  ;;  %8341 = vmatprep.subr.bf16.mxu1 %v11587_v15  ;;  %v11661_v44 = vld [vmem:[#allocation17 + $0xa0] sm:$0xff]   ;;  %v11662_v45 = vld [vmem:[#allocation17 + $0x68] sm:$0xff]  }
 0x5a7   :  { %v11663_v15 = vld [vmem:[#allocation17 + $0xe8] sm:$0xff]  }
 0x5a9   :  { %8256 = vmatpush1.bf16.msra.mxu0 %v11582_v17  ;;  %8342 = vmatpush1.bf16.msra.mxu1 %v11585_v47  ;;  %v11664_v17 = vld [vmem:[#allocation17 + $0x28] sm:$0xff]  }
 0x5aa   :  { %8257 = vmatprep.subr.bf16.mxu0 %v11590_v63  ;;  %8343 = vmatprep.subr.bf16.mxu1 %v11593_v24  ;;  %v11665_v47 = vld [vmem:[#allocation17 + $0xa8] sm:$0xff]   ;;  %v11666_v63 = vld [vmem:[#allocation17 + $0x70] sm:$0xff]  }
 0x5ab   :  { %v11667_v24 = vld [vmem:[#allocation17 + $0xf0] sm:$0xff]  }
 0x5ad   :  { %8258 = vmatpush1.bf16.msra.mxu0 %v11588_v48  ;;  %8344 = vmatpush1.bf16.msra.mxu1 %v11591_v49  ;;  %v11668_v48 = vld [vmem:[#allocation17 + $0x30] sm:$0xff]  }
 0x5ae   :  { %8259 = vmatprep.subr.bf16.mxu0 %v11596_v50  ;;  %8345 = vmatprep.subr.bf16.mxu1 %v11599_v1  ;;  %v11669_v49 = vld [vmem:[#allocation17 + $0xb0] sm:$0xff]   ;;  %v11670_v50 = vld [vmem:[#allocation17 + $0x78] sm:$0xff]  }
 0x5af   :  { %v11671_v1 = vld [vmem:[#allocation17 + $0xf8] sm:$0xff]  }
 0x5b1   :  { %8260 = vmatpush1.bf16.msra.mxu0 %v11594_v51  ;;  %8346 = vmatpush1.bf16.msra.mxu1 %v11597_v60  ;;  %v11672_v51 = vld [vmem:[#allocation17 + $0x38] sm:$0xff]  }
 0x5b2   :  { %8261 = vmatprep.subr.bf16.mxu0 %v11602_v56  ;;  %8347 = vmatprep.subr.bf16.mxu1 %v11605_v57  ;;  %v11673_v60 = vld [vmem:[#allocation17 + $0xb8] sm:$0xff]  }
 0x5b3   :  { %v7538_v56 = vld [vmem:[#allocation15] sm:$0xf] }
 0x5b4   :  { %v7543_v57 = vrot.slane %v7538_v56, %v12323_v55 }
 0x5b5   :  { %8262 = vmatpush1.bf16.msra.mxu0 %v11600_v35  ;;  %8348 = vmatpush1.bf16.msra.mxu1 %v11603_v58  ;;  %v7551_v35 = vrot.slane %v7538_v56, %v12326_v7  ;;  %v7547_v58 = vrot.slane %v7538_v56, %v12329_v62 }
 0x5b6   :  { %8263 = vmatprep.subr.bf16.mxu0 %v11608_v61  ;;  %8349 = vmatprep.subr.bf16.mxu1 %v11611_v3  ;;  %v7555_v61 = vrot.slane %v7538_v56, %v12332_v10 }
 0x5b9   :  { %8264 = vmatpush1.bf16.msra.mxu0 %v11606_v4  ;;  %8350 = vmatpush1.bf16.msra.mxu1 %v11609_v37 }
 0x5ba   :  { %8265 = vmatprep.subr.bf16.mxu0 %v11614_v38  ;;  %8351 = vmatprep.subr.bf16.mxu1 %v11617_v5 }
 0x5bd   :  { %8266 = vmatpush1.bf16.msra.mxu0 %v11612_v6  ;;  %8352 = vmatpush1.bf16.msra.mxu1 %v11615_v54 }
 0x5be   :  { %8267 = vmatprep.subr.bf16.mxu0 %v11620_v8  ;;  %8353 = vmatprep.subr.bf16.mxu1 %v11623_v11 }
 0x5c1   :  { %8268 = vmatpush1.bf16.msra.mxu0 %v11618_v12  ;;  %8354 = vmatpush1.bf16.msra.mxu1 %v11621_v40 }
 0x5c2   :  { %8269 = vmatprep.subr.bf16.mxu0 %v11626_v41  ;;  %8355 = vmatprep.subr.bf16.mxu1 %v11629_v13 }
 0x5c5   :  { %8270 = vmatpush1.bf16.msra.mxu0 %v11624_v14  ;;  %8356 = vmatpush1.bf16.msra.mxu1 %v11627_v16 }
 0x5c6   :  { %8271 = vmatprep.subr.bf16.mxu0 %v11632_v18  ;;  %8357 = vmatprep.subr.bf16.mxu1 %v11635_v19 }
 0x5c9   :  { %8272 = vmatpush1.bf16.msra.mxu0 %v11630_v52  ;;  %8358 = vmatpush1.bf16.msra.mxu1 %v11633_v20 }
 0x5ca   :  { %8273 = vmatprep.subr.bf16.mxu0 %v11638_v21  ;;  %8359 = vmatprep.subr.bf16.mxu1 %v11641_v22 }
 0x5cd   :  { %8274 = vmatpush1.bf16.msra.mxu0 %v11636_v46  ;;  %8360 = vmatpush1.bf16.msra.mxu1 %v11639_v23 }
 0x5ce   :  { %9921 = vmatprep.subr.bf16.mxu0 %v11642_v59  ;;  %9943 = vmatprep.subr.bf16.mxu1 %v11643_v25 }
 0x5d0   :  { %8276 = vmatmul.mubr.bf16.vlgmr.msra.gmra.mrb[8].mxu0 %v12346_v53  ;;  %8362 = vmatmul.mubr.bf16.vlgmr.msra.gmra.mrb[8].mxu1 %v12346_v53  ;;  %v11657_v53 = vld [vmem:[#allocation17 + $0x98] sm:$0xff]  }
 0x5d1   :  { %9922 = vmatpush3.bf16.msra.mxu0 %v11644_v26  ;;  %9944 = vmatpush3.bf16.msra.mxu1 %v11645_v27  ;;  %v9819_v27 = vld [vmem:[#allocation18] ss:$0 sm:$0xff] }
 0x5d2   :  { %9923 = vmatprep.subr.bf16.mxu0 %v11646_v28  ;;  %9945 = vmatprep.subr.bf16.mxu1 %v11647_v29 }
 0x5d5   :  { %9924 = vmatpush3.bf16.msra.mxu0 %v11648_v30  ;;  %9946 = vmatpush3.bf16.msra.mxu1 %v11649_v31 }
 0x5d6   :  { %9925 = vmatprep.subr.bf16.mxu0 %v11650_v32  ;;  %9947 = vmatprep.subr.bf16.mxu1 %v11651_v0 }
 0x5d9   :  { %9926 = vmatpush3.bf16.msra.mxu0 %v11652_v9  ;;  %9948 = vmatpush3.bf16.msra.mxu1 %v11653_v33 }
 0x5da   :  { %9927 = vmatprep.subr.bf16.mxu0 %v11654_v34  ;;  %9949 = vmatprep.subr.bf16.mxu1 %v11655_v36 }
 0x5dd   :  { %9928 = vmatpush3.bf16.msra.mxu0 %v11656_v39  ;;  %9950 = vmatpush3.bf16.msra.mxu1 %v11657_v53 }
 0x5de   :  { %9929 = vmatprep.subr.bf16.mxu0 %v11658_v42  ;;  %9951 = vmatprep.subr.bf16.mxu1 %v11659_v2 }
 0x5e1   :  { %9930 = vmatpush3.bf16.msra.mxu0 %v11660_v43  ;;  %9952 = vmatpush3.bf16.msra.mxu1 %v11661_v44 }
 0x5e2   :  { %9931 = vmatprep.subr.bf16.mxu0 %v11662_v45  ;;  %9953 = vmatprep.subr.bf16.mxu1 %v11663_v15 }
 0x5e5   :  { %9932 = vmatpush3.bf16.msra.mxu0 %v11664_v17  ;;  %9954 = vmatpush3.bf16.msra.mxu1 %v11665_v47 }
 0x5e6   :  { %9933 = vmatprep.subr.bf16.mxu0 %v11666_v63  ;;  %9955 = vmatprep.subr.bf16.mxu1 %v11667_v24 }
 0x5e9   :  { %9934 = vmatpush3.bf16.msra.mxu0 %v11668_v48  ;;  %9956 = vmatpush3.bf16.msra.mxu1 %v11669_v49 }
 0x5ea   :  { %9935 = vmatprep.subr.bf16.mxu0 %v11670_v50  ;;  %9957 = vmatprep.subr.bf16.mxu1 %v11671_v1 }
 0x5ed   :  { %9936 = vmatpush3.bf16.msra.mxu0 %v11672_v51  ;;  %9958 = vmatpush3.bf16.msra.mxu1 %v11673_v60 }
 0x6a3   :  { %v8277_v3 = vpop.f32.mrb[8].mxu0  ;;  %v8363_v4 = vpop.f32.mrb[8].mxu1 }
 0x6a4   :  { %v9981_v37 = vadd.f32 %v8277_v3, %v7543_v57  ;;  %v9985_v38 = vadd.f32 %v8363_v4, %v7551_v35  ;;  %v8279_v5 = vpop.f32.mrb[9].mxu0  ;;  %v8365_v6 = vpop.f32.mrb[9].mxu1 }
 0x6a5   :  { %v9982_v54 = vadd.f32 %v8279_v5, %v7547_v58  ;;  %v9986_v8 = vadd.f32 %v8365_v6, %v7555_v61  ;;  %v8281_v11 = vpop.f32.mrb[10].mxu0  ;;  %v8367_v12 = vpop.f32.mrb[10].mxu1 }
 0x6a6   :  { %v9983_v40 = vadd.f32 %v8281_v11, %v7543_v57  ;;  %v9987_v41 = vadd.f32 %v8367_v12, %v7551_v35  ;;  %v8283_v13 = vpop.f32.mrb[11].mxu0  ;;  %v8369_v55 = vpop.f32.mrb[11].mxu1  ;;  %v8372_v16 = vmax.f32 %v9981_v37, 0.0  ;;  %v8374_v62 = vmax.f32 %v9985_v38, 0.0 }
 0x6a7   :  { %v9984_v14 = vadd.f32 %v8283_v13, %v7547_v58  ;;  %v9988_v7 = vadd.f32 %v8369_v55, %v7555_v61  ;;  %v8373_v19 = vmax.f32 %v9982_v54, 0.0  ;;  %v8375_v52 = vmax.f32 %v9986_v8, 0.0 }
 0x6a8   :  { %v8376_v18 = vmax.f32 %v9983_v40, 0.0  ;;  %v8378_v10 = vmax.f32 %v9987_v41, 0.0 }
 0x6a9   :  { %v8377_v20 = vmax.f32 %v9984_v14, 0.0  ;;  %v8379_v21 = vmax.f32 %v9988_v7, 0.0 }
 0x6aa   :  { %v8380_v22 = vpack.c.bf16 %v8376_v18, %v8372_v16  ;;  %v8382_v46 = vpack.c.bf16 %v8378_v10, %v8374_v62 }
 0x6ab   :  { %v8381_v23 = vpack.c.bf16 %v8377_v20, %v8373_v19  ;;  %v8383_v59 = vpack.c.bf16 %v8379_v21, %v8375_v52 }
 0x6ad   :  { %8679 = vmatprep.mubr.bf16.mxu0 %v8381_v23  ;;  %8720 = vmatprep.mubr.bf16.mxu1 %v8383_v59 }
 0x6ae   :  { %8680 = vmatmul.mubr.bf16.vlgmr.msra.gmra.mrb[12].mxu0 %v8380_v22  ;;  %8721 = vmatmul.mubr.bf16.vlgmr.msra.gmra.mrb[12].mxu1 %v8382_v46 }
 0x781   :  { %v9937_v25 = vpop.f32.mrb[12].mxu0  ;;  %v9959_v26 = vpop.f32.mrb[12].mxu1 }
 0x782   :  { %v9938_v28 = vpop.f32.mrb[13].mxu0  ;;  %v9960_v29 = vpop.f32.mrb[13].mxu1 }
 0x783   :  { %v9939_v30 = vadd.f32 %v9938_v28, %v9937_v25  ;;  %v9961_v31 = vadd.f32 %v9960_v29, %v9959_v26  ;;  %v9940_v32 = vpop.f32.mrb[14].mxu0  ;;  %v9962_v0 = vpop.f32.mrb[14].mxu1 }
 0x784   :  { %v9941_v9 = vpop.f32.mrb[15].mxu0  ;;  %v9963_v33 = vpop.f32.mrb[15].mxu1 }
 0x785   :  { %v8682_v34 = vadd.f32 %v9939_v30, %v9819_v27  ;;  %v9942_v36 = vadd.f32 %v9941_v9, %v9940_v32  ;;  %v9964_v39 = vadd.f32 %v9963_v33, %v9962_v0 }
 0x787   :  { %v8723_v53 = vadd.f32 %v9961_v31, %v8682_v34  ;;  %v8685_v42 = vadd.f32 %v9942_v36, %v9819_v27 }
 0x789   :  { %v8726_v2 = vadd.f32 %v9964_v39, %v8685_v42 }
 0x78b   :  { %v9919_v43 = vpack.c.bf16 %v8726_v2, %v8723_v53 }
 0x78d   :  { %9920 = vst [vmem:[%s12367_s10] sm:$0xff] %v9919_v43  }
 0x78e   :  { %8743 = vsyncpa [#allocation8], 1 }
 0x78f   :  { %8744 = vsyncpa [#allocation10], 1 }
 0x790   :  { %8745 = vsyncpa [#allocation13], 1 }
 0x791   :  { %8746 = vsyncpa [#allocation16], 1 }
 0x792   :  { %8747 = vsyncpa [#allocation19], 1 }

</bundles_post_ra>
